<compile_context>
chip_gen: v7x
topology: tpu7x:2x2x1
jax: 0.10.0
libtpu: 0.0.40
codegen_flags: <defaults>
</compile_context>

<pallas_src>
import math
import jax
import jax.numpy as jnp
from jax.experimental import pallas as pl
from jax.experimental.pallas import tpu as pltpu

# ----------------------------- configuration --------------------------------
B_GLOBAL = 2
SIG_LEN = 120
WIN_LENGTH = 30                       # preprocessor._win_args['win_length']
HOP_LENGTH = 15                       # preprocessor._win_args['hop_length']
INPUT_SIZE = WIN_LENGTH // 2 + 1      # 16 frequency bins
HIDDEN_SIZE = 32
NUM_LAYERS = 2
BIDIRECTIONAL = True

BATCH = B_GLOBAL
T_STEPS = SIG_LEN // HOP_LENGTH + 1   # 9 STFT frames (centered)
HID = HIDDEN_SIZE
G4 = 4 * HID                          # 128 = all four gates in one lane block
TB = T_STEPS * BATCH                  # 18 (time-major flattened rows)


# ----------------------------- fused Pallas kernel ---------------------------
def fused_bilstm_loss_kernel(x_ref, w1_ref, u1s_ref, b1_ref,
                             w2_hbm, u2s_hbm,
                             b2_ref, ws_ref, bs_ref, tar_ref, tmask_ref,
                             loss_ref,
                             xp_f, xp_b, h_f, h_b, w2_v, u2s_v, dma_sem):
    """Fused 2-layer bidirectional LSTM + scaling Linear + time mask + MSE.

    x_ref:     (TB, I)        src magnitudes, row t*B+b = frame t of batch b
    w1_ref:    (2, I, 4H)     layer-1 W_ih^T per direction (gates i|f|g|o)
    u1s_ref:   (2H, 4H)       layer-1 [W_hh_f^T ; W_hh_b^T] stacked over rows
    b1_ref:    (2, 1, 4H)     layer-1 b_ih + b_hh per direction
    w2_hbm:    (4, H, 4H)     layer-2 W_ih^T split [f<-F, f<-B, b<-F, b<-B]  (HBM)
    u2s_hbm:   (2H, 4H)       layer-2 stacked W_hh^T                          (HBM)
    b2_ref:    (2, 1, 4H)     layer-2 biases
    ws_ref:    (H, I)         scaling Linear weight^T
    bs_ref:    (1, I)         scaling Linear bias
    tar_ref:   (TB, I)        target magnitudes
    tmask_ref: (TB, 1)        per-(t,b) STFT-length mask
    loss_ref:  (1, 1)         scalar output
    """
    B, T, H = BATCH, T_STEPS, HID

    # ---- kick off layer-2 weight prefetch; it overlaps all of layer 1 -------
    cp_w2 = pltpu.make_async_copy(w2_hbm, w2_v, dma_sem.at[0])
    cp_u2 = pltpu.make_async_copy(u2s_hbm, u2s_v, dma_sem.at[1])
    cp_w2.start()
    cp_u2.start()

    # direction-row masks for the block-diagonal recurrence lhs (hoisted)
    row = jax.lax.broadcasted_iota(jnp.int32, (2 * B, 1), 0)
    m_fwd = (row < B).astype(jnp.float32)          # 1 on forward rows
    m_bwd = 1.0 - m_fwd                            # 1 on backward rows

    def run_layer(u_stacked):
        """Direction-stacked recurrence.  Carry rows [:B] = forward chain at
        time t, rows [B:] = backward chain at time T-1-t.  One MXU push and a
        single sigmoid/tanh pass per step serve both directions."""
        h = jnp.zeros((2 * B, H), jnp.float32)
        c = jnp.zeros((2 * B, H), jnp.float32)
        for t in range(T):                          # fully unrolled, static idx
            tb = T - 1 - t
            g_in = jnp.concatenate(
                [xp_f[t * B:(t + 1) * B, :], xp_b[tb * B:(tb + 1) * B, :]],
                axis=0)                             # (2B, 4H)
            # block-diagonal lhs: [hf | 0 ; 0 | hb] so fwd rows hit U_f rows
            # and bwd rows hit U_b rows of the stacked rhs.
            lhs = jnp.concatenate([h * m_fwd, h * m_bwd], axis=1)   # (2B, 2H)
            g = g_in + jnp.dot(lhs, u_stacked,
                               preferred_element_type=jnp.float32)  # (2B, 4H)
            sg = jax.nn.sigmoid(g)                  # one EUP pass, full 128 lanes
            i_g = sg[:, 0 * H:1 * H]
            f_g = sg[:, 1 * H:2 * H]
            o_g = sg[:, 3 * H:4 * H]
            g_g = jnp.tanh(g[:, 2 * H:3 * H])
            c = f_g * c + i_g * g_g
            h = o_g * jnp.tanh(c)
            h_f[t * B:(t + 1) * B, :] = h[:B, :]    # fwd hidden at time t
            h_b[tb * B:(tb + 1) * B, :] = h[B:, :]  # bwd hidden at time tb

    # ---- layer 1: batched input projection over all T*B rows (bias folded) --
    x = x_ref[...]                                                   # (TB, I)
    xp_f[...] = jnp.dot(x, w1_ref[0],
                        preferred_element_type=jnp.float32) + b1_ref[0]
    xp_b[...] = jnp.dot(x, w1_ref[1],
                        preferred_element_type=jnp.float32) + b1_ref[1]

    # ---- layer 1 recurrence --------------------------------------------------
    run_layer(u1s_ref[...])

    # ---- layer 2: wait on prefetched weights, batched projection from h1 ----
    cp_w2.wait()
    cp_u2.wait()
    hf1 = h_f[...]                                                   # (TB, H)
    hb1 = h_b[...]
    xp_f[...] = (jnp.dot(hf1, w2_v[0], preferred_element_type=jnp.float32)
                 + jnp.dot(hb1, w2_v[1], preferred_element_type=jnp.float32)
                 + b2_ref[0])
    xp_b[...] = (jnp.dot(hf1, w2_v[2], preferred_element_type=jnp.float32)
                 + jnp.dot(hb1, w2_v[3], preferred_element_type=jnp.float32)
                 + b2_ref[1])

    # ---- layer 2 recurrence (h_f / h_b reused for layer-2 hiddens) -----------
    run_layer(u2s_v[...])

    # ---- epilogue: sum directions, scaling Linear, time mask, MSE(mean) ------
    s = h_f[...] + h_b[...]                                          # (TB, H)
    pred = jnp.dot(s, ws_ref[...],
                   preferred_element_type=jnp.float32) + bs_ref[...]  # (TB, I)
    d = (pred - tar_ref[...]) * tmask_ref[...]
    loss = jnp.sum(d * d) * (1.0 / (B * T * INPUT_SIZE))
    loss_ref[...] = jnp.reshape(loss, (1, 1))


def fused_forward_pallas(x2d, p, tar2d, mask2d):
    def full(shape):
        return pl.BlockSpec(shape, lambda *_: (0,) * len(shape))

    def hbm():
        return pl.BlockSpec(memory_space=pl.ANY)

    return pl.pallas_call(
        fused_bilstm_loss_kernel,
        out_shape=jax.ShapeDtypeStruct((1, 1), jnp.float32),
        grid=(1,),
        in_specs=[
            full((TB, INPUT_SIZE)),        # x
            full((2, INPUT_SIZE, G4)),     # w1  [dir]
            full((2 * HID, G4)),           # u1 stacked [fwd ; bwd]
            full((2, 1, G4)),              # b1  [dir]
            hbm(),                         # w2  (prefetched in-kernel)
            hbm(),                         # u2 stacked (prefetched in-kernel)
            full((2, 1, G4)),              # b2  [dir]
            full((HID, INPUT_SIZE)),       # ws  (scaling weight^T)
            full((1, INPUT_SIZE)),         # bs
            full((TB, INPUT_SIZE)),        # tar
            full((TB, 1)),                 # time mask
        ],
        out_specs=full((1, 1)),
        scratch_shapes=[
            pltpu.VMEM((TB, G4), jnp.float32),        # xp_f
            pltpu.VMEM((TB, G4), jnp.float32),        # xp_b
            pltpu.VMEM((TB, HID), jnp.float32),       # h_f
            pltpu.VMEM((TB, HID), jnp.float32),       # h_b
            pltpu.VMEM((4, HID, G4), jnp.float32),    # w2 landing buffer
            pltpu.VMEM((2 * HID, G4), jnp.float32),   # u2 landing buffer
            pltpu.SemaphoreType.DMA((2,)),
        ],
        compiler_params=pltpu.CompilerParams(
            dimension_semantics=("arbitrary",)),
    )(x2d, p["w1"], p["u1s"], p["b1"], p["w2"], p["u2s"], p["b2"],
      p["ws"], p["bs"], tar2d, mask2d)


# ----------------------------- plain-JAX glue ---------------------------------
def preprocess(src):
    """STFT-magnitude preprocessor (centered, Hann window).

    src: (B, L) -> (None, linears (B, T, INPUT_SIZE), phases (B, T, INPUT_SIZE))
    """
    n_fft, hop = WIN_LENGTH, HOP_LENGTH
    pad = n_fft // 2
    x = jnp.pad(src, ((0, 0), (pad, pad)), mode="reflect")
    T = 1 + (x.shape[-1] - n_fft) // hop
    idx = jnp.arange(T)[:, None] * hop + jnp.arange(n_fft)[None, :]
    frames = x[:, idx]                                     # (B, T, n_fft)
    window = 0.5 - 0.5 * jnp.cos(2.0 * jnp.pi * jnp.arange(n_fft) / n_fft)
    spec = jnp.fft.rfft(frames * window, axis=-1)          # (B, T, n_fft//2+1)
    return None, jnp.abs(spec).astype(jnp.float32), jnp.angle(spec).astype(jnp.float32)


def pack_params(params):
    """Kernel operands from PyTorch-layout params (gate order i|f|g|o, 4H=128)."""
    l0, l1 = params["lstm"][0], params["lstm"][1]

    w1 = jnp.stack([d["weight_ih"].T for d in l0])                        # (2, I, 4H)
    u1s = jnp.concatenate([d["weight_hh"].T for d in l0], axis=0)         # (2H, 4H)
    b1 = jnp.stack([(d["bias_ih"] + d["bias_hh"])[None, :] for d in l0])  # (2, 1, 4H)

    w2_blocks = []
    for d in l1:
        wt = d["weight_ih"].T                                             # (2H, 4H)
        w2_blocks.append(wt[:HID, :])      # contribution from forward layer-1 hidden
        w2_blocks.append(wt[HID:, :])      # contribution from backward layer-1 hidden
    w2 = jnp.stack(w2_blocks)                                             # (4, H, 4H)
    u2s = jnp.concatenate([d["weight_hh"].T for d in l1], axis=0)         # (2H, 4H)
    b2 = jnp.stack([(d["bias_ih"] + d["bias_hh"])[None, :] for d in l1])  # (2, 1, 4H)

    ws = params["scale"]["weight"].T                                      # (H, I)
    bs = params["scale"]["bias"][None, :]                                 # (1, I)
    return {"w1": w1, "u1s": u1s, "b1": b1, "w2": w2, "u2s": u2s, "b2": b2,
            "ws": ws, "bs": bs}


def spec_base_forward(params, lengths, src, tar):
    """Mirrors SpecBase.forward: masked MSE between denoised src linears and
    target linears (mean over B*T*I, matching nn.MSELoss on mask-multiplied
    tensors)."""
    _, src_linears, _src_phases = preprocess(src)          # (B, T, I)
    _, tar_linears, _ = preprocess(tar)
    Bv, Tv, Iv = src_linears.shape
    assert (Bv, Tv, Iv) == (BATCH, T_STEPS, INPUT_SIZE)

    stft_lengths = lengths // HOP_LENGTH + 1
    t_mask = (jnp.arange(Tv)[None, :] < stft_lengths[:, None]).astype(jnp.float32)

    # time-major 2-D slabs: row t*B + b
    x2d = jnp.transpose(src_linears, (1, 0, 2)).reshape(Tv * Bv, Iv)
    tar2d = jnp.transpose(tar_linears, (1, 0, 2)).reshape(Tv * Bv, Iv)
    mask2d = t_mask.T.reshape(Tv * Bv, 1)

    packed = pack_params(params)
    loss = fused_forward_pallas(x2d, packed, tar2d, mask2d)
    return loss[0, 0]


# ----------------------------- parameter init ---------------------------------
def xavier_uniform(key, shape):
    fan_out, fan_in = shape
    a = math.sqrt(6.0 / (fan_in + fan_out))
    return jax.random.uniform(key, shape, jnp.float32, -a, a)


def orthogonal(key, shape):
    rows, cols = shape
    n = jax.random.normal(key, (max(rows, cols), min(rows, cols)), jnp.float32)
    q, r = jnp.linalg.qr(n)
    q = q * jnp.sign(jnp.diag(r))[None, :]
    if rows < cols:
        q = q.T
    return q.astype(jnp.float32)


def init_params(key, input_size, hidden_size, num_layers, bidirectional):
    """PyTorch-layout params with SpecBase.init_weights semantics: xavier for
    weight_ih / scaling weight, orthogonal for weight_hh, zero biases."""
    num_dir = 2 if bidirectional else 1
    lstm = []
    for layer in range(num_layers):
        in_l = input_size if layer == 0 else hidden_size * num_dir
        dirs = []
        for _ in range(num_dir):
            key, k_ih, k_hh = jax.random.split(key, 3)
            dirs.append({
                "weight_ih": xavier_uniform(k_ih, (4 * hidden_size, in_l)),
                "weight_hh": orthogonal(k_hh, (4 * hidden_size, hidden_size)),
                "bias_ih": jnp.zeros((4 * hidden_size,), jnp.float32),
                "bias_hh": jnp.zeros((4 * hidden_size,), jnp.float32),
            })
        lstm.append(dirs)
    key, k_s = jax.random.split(key)
    scale_w = xavier_uniform(k_s, (input_size, hidden_size))
    return {"lstm": lstm,
            "scale": {"weight": scale_w,
                      "bias": jnp.zeros((input_size,), jnp.float32)}}


# ----------------------------- main --------------------------------------------
if __name__ == "__main__":
    assert NUM_LAYERS == 2 and BIDIRECTIONAL, "kernel specialized to the demo config"

    key = jax.random.PRNGKey(0)
    k_src, k_tar, k_param = jax.random.split(key, 3)

    src = jax.random.normal(k_src, (B_GLOBAL, SIG_LEN), jnp.float32)
    tar = jax.random.normal(k_tar, (B_GLOBAL, SIG_LEN), jnp.float32)
    lengths = jnp.array([SIG_LEN, 90], dtype=jnp.int32)

    params = init_params(k_param, INPUT_SIZE, HIDDEN_SIZE, NUM_LAYERS, BIDIRECTIONAL)

    fwd = jax.jit(spec_base_forward)
    loss = fwd(params, lengths, src, tar)
    jax.block_until_ready(loss)
    assert loss.shape == () and bool(jnp.isfinite(loss))
    print("KERNEL_OK")
</pallas_src>

<mosaic_0001>
module attributes {stable_mosaic.version = 11 : i64} {
  func.func @fused_bilstm_loss_kernel(%arg0: i32, %arg1: memref<18x16xf32, #tpu.memory_space<vmem>>, %arg2: memref<2x16x128xf32, #tpu.memory_space<vmem>>, %arg3: memref<64x128xf32, #tpu.memory_space<vmem>>, %arg4: memref<2x1x128xf32, #tpu.memory_space<vmem>>, %arg5: memref<4x32x128xf32, #tpu.memory_space<any>>, %arg6: memref<64x128xf32, #tpu.memory_space<any>>, %arg7: memref<2x1x128xf32, #tpu.memory_space<vmem>>, %arg8: memref<32x16xf32, #tpu.memory_space<vmem>>, %arg9: memref<1x16xf32, #tpu.memory_space<vmem>>, %arg10: memref<18x16xf32, #tpu.memory_space<vmem>>, %arg11: memref<18x1xf32, #tpu.memory_space<vmem>>, %arg12: memref<1x1xf32, #tpu.memory_space<vmem>>, %arg13: memref<18x128xf32, #tpu.memory_space<vmem>>, %arg14: memref<18x128xf32, #tpu.memory_space<vmem>>, %arg15: memref<18x32xf32, #tpu.memory_space<vmem>>, %arg16: memref<18x32xf32, #tpu.memory_space<vmem>>, %arg17: memref<4x32x128xf32, #tpu.memory_space<vmem>>, %arg18: memref<64x128xf32, #tpu.memory_space<vmem>>, %arg19: memref<2x!tpu.dma_semaphore, #tpu.memory_space<semaphore_mem>>) attributes {dimension_semantics = [#tpu.dimension_semantics<arbitrary>], iteration_bounds = array<i64: 1>, scalar_prefetch = 0 : i64, scratch_operands = 7 : i64, tpu.core_type = #tpu.core_type<tc>, window_params = [{pipeline_mode = #tpu.pipeline_mode<synchronous>, transform_indices = @transform_0, window_bounds = array<i64: 18, 16>}, {pipeline_mode = #tpu.pipeline_mode<synchronous>, transform_indices = @transform_1, window_bounds = array<i64: 2, 16, 128>}, {pipeline_mode = #tpu.pipeline_mode<synchronous>, transform_indices = @transform_2, window_bounds = array<i64: 64, 128>}, {pipeline_mode = #tpu.pipeline_mode<synchronous>, transform_indices = @transform_3, window_bounds = array<i64: 2, 1, 128>}, {}, {}, {pipeline_mode = #tpu.pipeline_mode<synchronous>, transform_indices = @transform_6, window_bounds = array<i64: 2, 1, 128>}, {pipeline_mode = #tpu.pipeline_mode<synchronous>, transform_indices = @transform_7, window_bounds = array<i64: 32, 16>}, {pipeline_mode = #tpu.pipeline_mode<synchronous>, transform_indices = @transform_8, window_bounds = array<i64: 1, 16>}, {pipeline_mode = #tpu.pipeline_mode<synchronous>, transform_indices = @transform_9, window_bounds = array<i64: 18, 16>}, {pipeline_mode = #tpu.pipeline_mode<synchronous>, transform_indices = @transform_10, window_bounds = array<i64: 18, 1>}, {pipeline_mode = #tpu.pipeline_mode<synchronous>, transform_indices = @transform_11, window_bounds = array<i64: 1, 1>}]} {
    %c0_i32 = arith.constant 0 : i32
    %0 = tpu.memref_slice %arg19[%c0_i32] : memref<2x!tpu.dma_semaphore, #tpu.memory_space<semaphore_mem>> -> memref<1x!tpu.dma_semaphore, #tpu.memory_space<semaphore_mem>>
    %1 = tpu.memref_squeeze %0 : memref<1x!tpu.dma_semaphore, #tpu.memory_space<semaphore_mem>> -> memref<!tpu.dma_semaphore, #tpu.memory_space<semaphore_mem>>
    tpu.enqueue_dma source(%arg5 : memref<4x32x128xf32, #tpu.memory_space<any>>) target(%arg17 : memref<4x32x128xf32, #tpu.memory_space<vmem>>) target_semaphore(%1 : memref<!tpu.dma_semaphore, #tpu.memory_space<semaphore_mem>>)
    %c1_i32 = arith.constant 1 : i32
    %2 = tpu.memref_slice %arg19[%c1_i32] : memref<2x!tpu.dma_semaphore, #tpu.memory_space<semaphore_mem>> -> memref<1x!tpu.dma_semaphore, #tpu.memory_space<semaphore_mem>>
    %3 = tpu.memref_squeeze %2 : memref<1x!tpu.dma_semaphore, #tpu.memory_space<semaphore_mem>> -> memref<!tpu.dma_semaphore, #tpu.memory_space<semaphore_mem>>
    tpu.enqueue_dma source(%arg6 : memref<64x128xf32, #tpu.memory_space<any>>) target(%arg18 : memref<64x128xf32, #tpu.memory_space<vmem>>) target_semaphore(%3 : memref<!tpu.dma_semaphore, #tpu.memory_space<semaphore_mem>>)
    %4 = tpu.iota {dimensions = array<i32: 0>} : vector<4x1xi32>
    %c2_i32 = arith.constant 2 : i32
    %5 = vector.broadcast %c2_i32 : i32 to vector<4x1xi32>
    %6 = arith.cmpi slt, %4, %5 : vector<4x1xi32>
    %7 = arith.extui %6 : vector<4x1xi1> to vector<4x1xi32>
    %8 = arith.sitofp %7 : vector<4x1xi32> to vector<4x1xf32>
    %cst = arith.constant 1.000000e+00 : f32
    %9 = vector.broadcast %cst : f32 to vector<4x1xf32>
    %10 = arith.subf %9, %8 : vector<4x1xf32>
    %c0 = arith.constant 0 : index
    %c0_0 = arith.constant 0 : index
    %11 = vector.load %arg1[%c0, %c0_0] : memref<18x16xf32, #tpu.memory_space<vmem>>, vector<18x16xf32>
    %c0_1 = arith.constant 0 : index
    %c0_2 = arith.constant 0 : index
    %c0_3 = arith.constant 0 : index
    %12 = vector.load %arg2[%c0_1, %c0_2, %c0_3] : memref<2x16x128xf32, #tpu.memory_space<vmem>>, vector<1x16x128xf32>
    %13 = vector.shape_cast %12 : vector<1x16x128xf32> to vector<16x128xf32>
    %cst_4 = arith.constant dense<0.000000e+00> : vector<18x128xf32>
    %14 = tpu.matmul %11, %13, %cst_4 {dimension_numbers = #tpu.dot_dimension_numbers<[1], [0], [0], [1], [0, 0, 1, 1], [], []>} : vector<18x16xf32>, vector<16x128xf32>, vector<18x128xf32> -> vector<18x128xf32>
    %c0_5 = arith.constant 0 : index
    %c0_6 = arith.constant 0 : index
    %c0_7 = arith.constant 0 : index
    %15 = vector.load %arg4[%c0_5, %c0_6, %c0_7] : memref<2x1x128xf32, #tpu.memory_space<vmem>>, vector<1x1x128xf32>
    %16 = vector.shape_cast %15 : vector<1x1x128xf32> to vector<1x128xf32>
    %17 = vector.broadcast %16 : vector<1x128xf32> to vector<18x128xf32>
    %18 = arith.addf %14, %17 : vector<18x128xf32>
    %c0_8 = arith.constant 0 : index
    %c0_9 = arith.constant 0 : index
    %19 = vector.load %arg13[%c0_8, %c0_9] : memref<18x128xf32, #tpu.memory_space<vmem>>, vector<18x128xf32>
    tpu.vector_store %arg13[%c0_8, %c0_9], %18 {strides = array<i32>} : memref<18x128xf32, #tpu.memory_space<vmem>>, vector<18x128xf32>,
    %c1 = arith.constant 1 : index
    %c0_10 = arith.constant 0 : index
    %c0_11 = arith.constant 0 : index
    %20 = vector.load %arg2[%c1, %c0_10, %c0_11] : memref<2x16x128xf32, #tpu.memory_space<vmem>>, vector<1x16x128xf32>
    %21 = vector.shape_cast %20 : vector<1x16x128xf32> to vector<16x128xf32>
    %cst_12 = arith.constant dense<0.000000e+00> : vector<18x128xf32>
    %22 = tpu.matmul %11, %21, %cst_12 {dimension_numbers = #tpu.dot_dimension_numbers<[1], [0], [0], [1], [0, 0, 1, 1], [], []>} : vector<18x16xf32>, vector<16x128xf32>, vector<18x128xf32> -> vector<18x128xf32>
    %c1_13 = arith.constant 1 : index
    %c0_14 = arith.constant 0 : index
    %c0_15 = arith.constant 0 : index
    %23 = vector.load %arg4[%c1_13, %c0_14, %c0_15] : memref<2x1x128xf32, #tpu.memory_space<vmem>>, vector<1x1x128xf32>
    %24 = vector.shape_cast %23 : vector<1x1x128xf32> to vector<1x128xf32>
    %25 = vector.broadcast %24 : vector<1x128xf32> to vector<18x128xf32>
    %26 = arith.addf %22, %25 : vector<18x128xf32>
    %c0_16 = arith.constant 0 : index
    %c0_17 = arith.constant 0 : index
    %27 = vector.load %arg14[%c0_16, %c0_17] : memref<18x128xf32, #tpu.memory_space<vmem>>, vector<18x128xf32>
    tpu.vector_store %arg14[%c0_16, %c0_17], %26 {strides = array<i32>} : memref<18x128xf32, #tpu.memory_space<vmem>>, vector<18x128xf32>,
    %c0_18 = arith.constant 0 : index
    %c0_19 = arith.constant 0 : index
    %28 = vector.load %arg3[%c0_18, %c0_19] : memref<64x128xf32, #tpu.memory_space<vmem>>, vector<64x128xf32>
    %cst_20 = arith.constant 0.000000e+00 : f32
    %29 = vector.broadcast %cst_20 : f32 to vector<4x32xf32>
    %cst_21 = arith.constant 0.000000e+00 : f32
    %30 = vector.broadcast %cst_21 : f32 to vector<4x32xf32>
    %c0_22 = arith.constant 0 : index
    %c0_23 = arith.constant 0 : index
    %31 = vector.load %arg13[%c0_22, %c0_23] : memref<18x128xf32, #tpu.memory_space<vmem>>, vector<2x128xf32>
    %c16 = arith.constant 16 : index
    %c0_24 = arith.constant 0 : index
    %32 = vector.load %arg14[%c16, %c0_24] : memref<18x128xf32, #tpu.memory_space<vmem>>, vector<2x128xf32>
    %33 = tpu.concatenate %31, %32 in 0 : vector<2x128xf32>, vector<2x128xf32> -> vector<4x128xf32>
    %34 = vector.broadcast %8 : vector<4x1xf32> to vector<4x32xf32>
    %35 = arith.mulf %29, %34 : vector<4x32xf32>
    %36 = vector.broadcast %10 : vector<4x1xf32> to vector<4x32xf32>
    %37 = arith.mulf %29, %36 : vector<4x32xf32>
    %38 = tpu.concatenate %35, %37 in 1 : vector<4x32xf32>, vector<4x32xf32> -> vector<4x64xf32>
    %cst_25 = arith.constant dense<0.000000e+00> : vector<4x128xf32>
    %39 = tpu.matmul %38, %28, %cst_25 {dimension_numbers = #tpu.dot_dimension_numbers<[1], [0], [0], [1], [0, 0, 1, 1], [], []>} : vector<4x64xf32>, vector<64x128xf32>, vector<4x128xf32> -> vector<4x128xf32>
    %40 = arith.addf %33, %39 : vector<4x128xf32>
    %41 = arith.negf %40 : vector<4x128xf32>
    %42 = math.exp %41 : vector<4x128xf32>
    %cst_26 = arith.constant 1.000000e+00 : f32
    %43 = vector.broadcast %cst_26 : f32 to vector<4x128xf32>
    %44 = arith.addf %43, %42 : vector<4x128xf32>
    %45 = arith.divf %43, %44 : vector<4x128xf32>
    %46 = vector.extract_strided_slice %45 {offsets = [0, 0], sizes = [4, 32], strides = [1, 1]} : vector<4x128xf32> to vector<4x32xf32>
    %47 = vector.extract_strided_slice %45 {offsets = [0, 32], sizes = [4, 32], strides = [1, 1]} : vector<4x128xf32> to vector<4x32xf32>
    %48 = vector.extract_strided_slice %45 {offsets = [0, 96], sizes = [4, 32], strides = [1, 1]} : vector<4x128xf32> to vector<4x32xf32>
    %49 = vector.extract_strided_slice %40 {offsets = [0, 64], sizes = [4, 32], strides = [1, 1]} : vector<4x128xf32> to vector<4x32xf32>
    %50 = math.tanh %49 : vector<4x32xf32>
    %51 = arith.mulf %47, %30 : vector<4x32xf32>
    %52 = arith.mulf %46, %50 : vector<4x32xf32>
    %53 = arith.addf %51, %52 : vector<4x32xf32>
    %54 = math.tanh %53 : vector<4x32xf32>
    %55 = arith.mulf %48, %54 : vector<4x32xf32>
    %56 = vector.extract_strided_slice %55 {offsets = [0, 0], sizes = [2, 32], strides = [1, 1]} : vector<4x32xf32> to vector<2x32xf32>
    %c0_27 = arith.constant 0 : index
    %c0_28 = arith.constant 0 : index
    %57 = vector.load %arg15[%c0_27, %c0_28] : memref<18x32xf32, #tpu.memory_space<vmem>>, vector<2x32xf32>
    tpu.vector_store %arg15[%c0_27, %c0_28], %56 {strides = array<i32>} : memref<18x32xf32, #tpu.memory_space<vmem>>, vector<2x32xf32>,
    %58 = vector.extract_strided_slice %55 {offsets = [2, 0], sizes = [2, 32], strides = [1, 1]} : vector<4x32xf32> to vector<2x32xf32>
    %c16_29 = arith.constant 16 : index
    %c0_30 = arith.constant 0 : index
    %59 = vector.load %arg16[%c16_29, %c0_30] : memref<18x32xf32, #tpu.memory_space<vmem>>, vector<2x32xf32>
    tpu.vector_store %arg16[%c16_29, %c0_30], %58 {strides = array<i32>} : memref<18x32xf32, #tpu.memory_space<vmem>>, vector<2x32xf32>,
    %c2 = arith.constant 2 : index
    %c0_31 = arith.constant 0 : index
    %60 = vector.load %arg13[%c2, %c0_31] : memref<18x128xf32, #tpu.memory_space<vmem>>, vector<2x128xf32>
    %c14 = arith.constant 14 : index
    %c0_32 = arith.constant 0 : index
    %61 = vector.load %arg14[%c14, %c0_32] : memref<18x128xf32, #tpu.memory_space<vmem>>, vector<2x128xf32>
    %62 = tpu.concatenate %60, %61 in 0 : vector<2x128xf32>, vector<2x128xf32> -> vector<4x128xf32>
    %63 = vector.broadcast %8 : vector<4x1xf32> to vector<4x32xf32>
    %64 = arith.mulf %55, %63 : vector<4x32xf32>
    %65 = vector.broadcast %10 : vector<4x1xf32> to vector<4x32xf32>
    %66 = arith.mulf %55, %65 : vector<4x32xf32>
    %67 = tpu.concatenate %64, %66 in 1 : vector<4x32xf32>, vector<4x32xf32> -> vector<4x64xf32>
    %cst_33 = arith.constant dense<0.000000e+00> : vector<4x128xf32>
    %68 = tpu.matmul %67, %28, %cst_33 {dimension_numbers = #tpu.dot_dimension_numbers<[1], [0], [0], [1], [0, 0, 1, 1], [], []>} : vector<4x64xf32>, vector<64x128xf32>, vector<4x128xf32> -> vector<4x128xf32>
    %69 = arith.addf %62, %68 : vector<4x128xf32>
    %70 = arith.negf %69 : vector<4x128xf32>
    %71 = math.exp %70 : vector<4x128xf32>
    %cst_34 = arith.constant 1.000000e+00 : f32
    %72 = vector.broadcast %cst_34 : f32 to vector<4x128xf32>
    %73 = arith.addf %72, %71 : vector<4x128xf32>
    %74 = arith.divf %72, %73 : vector<4x128xf32>
    %75 = vector.extract_strided_slice %74 {offsets = [0, 0], sizes = [4, 32], strides = [1, 1]} : vector<4x128xf32> to vector<4x32xf32>
    %76 = vector.extract_strided_slice %74 {offsets = [0, 32], sizes = [4, 32], strides = [1, 1]} : vector<4x128xf32> to vector<4x32xf32>
    %77 = vector.extract_strided_slice %74 {offsets = [0, 96], sizes = [4, 32], strides = [1, 1]} : vector<4x128xf32> to vector<4x32xf32>
    %78 = vector.extract_strided_slice %69 {offsets = [0, 64], sizes = [4, 32], strides = [1, 1]} : vector<4x128xf32> to vector<4x32xf32>
    %79 = math.tanh %78 : vector<4x32xf32>
    %80 = arith.mulf %76, %53 : vector<4x32xf32>
    %81 = arith.mulf %75, %79 : vector<4x32xf32>
    %82 = arith.addf %80, %81 : vector<4x32xf32>
    %83 = math.tanh %82 : vector<4x32xf32>
    %84 = arith.mulf %77, %83 : vector<4x32xf32>
    %85 = vector.extract_strided_slice %84 {offsets = [0, 0], sizes = [2, 32], strides = [1, 1]} : vector<4x32xf32> to vector<2x32xf32>
    %c2_35 = arith.constant 2 : index
    %c0_36 = arith.constant 0 : index
    %86 = vector.load %arg15[%c2_35, %c0_36] : memref<18x32xf32, #tpu.memory_space<vmem>>, vector<2x32xf32>
    tpu.vector_store %arg15[%c2_35, %c0_36], %85 {strides = array<i32>} : memref<18x32xf32, #tpu.memory_space<vmem>>, vector<2x32xf32>,
    %87 = vector.extract_strided_slice %84 {offsets = [2, 0], sizes = [2, 32], strides = [1, 1]} : vector<4x32xf32> to vector<2x32xf32>
    %c14_37 = arith.constant 14 : index
    %c0_38 = arith.constant 0 : index
    %88 = vector.load %arg16[%c14_37, %c0_38] : memref<18x32xf32, #tpu.memory_space<vmem>>, vector<2x32xf32>
    tpu.vector_store %arg16[%c14_37, %c0_38], %87 {strides = array<i32>} : memref<18x32xf32, #tpu.memory_space<vmem>>, vector<2x32xf32>,
    %c4 = arith.constant 4 : index
    %c0_39 = arith.constant 0 : index
    %89 = vector.load %arg13[%c4, %c0_39] : memref<18x128xf32, #tpu.memory_space<vmem>>, vector<2x128xf32>
    %c12 = arith.constant 12 : index
    %c0_40 = arith.constant 0 : index
    %90 = vector.load %arg14[%c12, %c0_40] : memref<18x128xf32, #tpu.memory_space<vmem>>, vector<2x128xf32>
    %91 = tpu.concatenate %89, %90 in 0 : vector<2x128xf32>, vector<2x128xf32> -> vector<4x128xf32>
    %92 = vector.broadcast %8 : vector<4x1xf32> to vector<4x32xf32>
    %93 = arith.mulf %84, %92 : vector<4x32xf32>
    %94 = vector.broadcast %10 : vector<4x1xf32> to vector<4x32xf32>
    %95 = arith.mulf %84, %94 : vector<4x32xf32>
    %96 = tpu.concatenate %93, %95 in 1 : vector<4x32xf32>, vector<4x32xf32> -> vector<4x64xf32>
    %cst_41 = arith.constant dense<0.000000e+00> : vector<4x128xf32>
    %97 = tpu.matmul %96, %28, %cst_41 {dimension_numbers = #tpu.dot_dimension_numbers<[1], [0], [0], [1], [0, 0, 1, 1], [], []>} : vector<4x64xf32>, vector<64x128xf32>, vector<4x128xf32> -> vector<4x128xf32>
    %98 = arith.addf %91, %97 : vector<4x128xf32>
    %99 = arith.negf %98 : vector<4x128xf32>
    %100 = math.exp %99 : vector<4x128xf32>
    %cst_42 = arith.constant 1.000000e+00 : f32
    %101 = vector.broadcast %cst_42 : f32 to vector<4x128xf32>
    %102 = arith.addf %101, %100 : vector<4x128xf32>
    %103 = arith.divf %101, %102 : vector<4x128xf32>
    %104 = vector.extract_strided_slice %103 {offsets = [0, 0], sizes = [4, 32], strides = [1, 1]} : vector<4x128xf32> to vector<4x32xf32>
    %105 = vector.extract_strided_slice %103 {offsets = [0, 32], sizes = [4, 32], strides = [1, 1]} : vector<4x128xf32> to vector<4x32xf32>
    %106 = vector.extract_strided_slice %103 {offsets = [0, 96], sizes = [4, 32], strides = [1, 1]} : vector<4x128xf32> to vector<4x32xf32>
    %107 = vector.extract_strided_slice %98 {offsets = [0, 64], sizes = [4, 32], strides = [1, 1]} : vector<4x128xf32> to vector<4x32xf32>
    %108 = math.tanh %107 : vector<4x32xf32>
    %109 = arith.mulf %105, %82 : vector<4x32xf32>
    %110 = arith.mulf %104, %108 : vector<4x32xf32>
    %111 = arith.addf %109, %110 : vector<4x32xf32>
    %112 = math.tanh %111 : vector<4x32xf32>
    %113 = arith.mulf %106, %112 : vector<4x32xf32>
    %114 = vector.extract_strided_slice %113 {offsets = [0, 0], sizes = [2, 32], strides = [1, 1]} : vector<4x32xf32> to vector<2x32xf32>
    %c4_43 = arith.constant 4 : index
    %c0_44 = arith.constant 0 : index
    %115 = vector.load %arg15[%c4_43, %c0_44] : memref<18x32xf32, #tpu.memory_space<vmem>>, vector<2x32xf32>
    tpu.vector_store %arg15[%c4_43, %c0_44], %114 {strides = array<i32>} : memref<18x32xf32, #tpu.memory_space<vmem>>, vector<2x32xf32>,
    %116 = vector.extract_strided_slice %113 {offsets = [2, 0], sizes = [2, 32], strides = [1, 1]} : vector<4x32xf32> to vector<2x32xf32>
    %c12_45 = arith.constant 12 : index
    %c0_46 = arith.constant 0 : index
    %117 = vector.load %arg16[%c12_45, %c0_46] : memref<18x32xf32, #tpu.memory_space<vmem>>, vector<2x32xf32>
    tpu.vector_store %arg16[%c12_45, %c0_46], %116 {strides = array<i32>} : memref<18x32xf32, #tpu.memory_space<vmem>>, vector<2x32xf32>,
    %c6 = arith.constant 6 : index
    %c0_47 = arith.constant 0 : index
    %118 = vector.load %arg13[%c6, %c0_47] : memref<18x128xf32, #tpu.memory_space<vmem>>, vector<2x128xf32>
    %c10 = arith.constant 10 : index
    %c0_48 = arith.constant 0 : index
    %119 = vector.load %arg14[%c10, %c0_48] : memref<18x128xf32, #tpu.memory_space<vmem>>, vector<2x128xf32>
    %120 = tpu.concatenate %118, %119 in 0 : vector<2x128xf32>, vector<2x128xf32> -> vector<4x128xf32>
    %121 = vector.broadcast %8 : vector<4x1xf32> to vector<4x32xf32>
    %122 = arith.mulf %113, %121 : vector<4x32xf32>
    %123 = vector.broadcast %10 : vector<4x1xf32> to vector<4x32xf32>
    %124 = arith.mulf %113, %123 : vector<4x32xf32>
    %125 = tpu.concatenate %122, %124 in 1 : vector<4x32xf32>, vector<4x32xf32> -> vector<4x64xf32>
    %cst_49 = arith.constant dense<0.000000e+00> : vector<4x128xf32>
    %126 = tpu.matmul %125, %28, %cst_49 {dimension_numbers = #tpu.dot_dimension_numbers<[1], [0], [0], [1], [0, 0, 1, 1], [], []>} : vector<4x64xf32>, vector<64x128xf32>, vector<4x128xf32> -> vector<4x128xf32>
    %127 = arith.addf %120, %126 : vector<4x128xf32>
    %128 = arith.negf %127 : vector<4x128xf32>
    %129 = math.exp %128 : vector<4x128xf32>
    %cst_50 = arith.constant 1.000000e+00 : f32
    %130 = vector.broadcast %cst_50 : f32 to vector<4x128xf32>
    %131 = arith.addf %130, %129 : vector<4x128xf32>
    %132 = arith.divf %130, %131 : vector<4x128xf32>
    %133 = vector.extract_strided_slice %132 {offsets = [0, 0], sizes = [4, 32], strides = [1, 1]} : vector<4x128xf32> to vector<4x32xf32>
    %134 = vector.extract_strided_slice %132 {offsets = [0, 32], sizes = [4, 32], strides = [1, 1]} : vector<4x128xf32> to vector<4x32xf32>
    %135 = vector.extract_strided_slice %132 {offsets = [0, 96], sizes = [4, 32], strides = [1, 1]} : vector<4x128xf32> to vector<4x32xf32>
    %136 = vector.extract_strided_slice %127 {offsets = [0, 64], sizes = [4, 32], strides = [1, 1]} : vector<4x128xf32> to vector<4x32xf32>
    %137 = math.tanh %136 : vector<4x32xf32>
    %138 = arith.mulf %134, %111 : vector<4x32xf32>
    %139 = arith.mulf %133, %137 : vector<4x32xf32>
    %140 = arith.addf %138, %139 : vector<4x32xf32>
    %141 = math.tanh %140 : vector<4x32xf32>
    %142 = arith.mulf %135, %141 : vector<4x32xf32>
    %143 = vector.extract_strided_slice %142 {offsets = [0, 0], sizes = [2, 32], strides = [1, 1]} : vector<4x32xf32> to vector<2x32xf32>
    %c6_51 = arith.constant 6 : index
    %c0_52 = arith.constant 0 : index
    %144 = vector.load %arg15[%c6_51, %c0_52] : memref<18x32xf32, #tpu.memory_space<vmem>>, vector<2x32xf32>
    tpu.vector_store %arg15[%c6_51, %c0_52], %143 {strides = array<i32>} : memref<18x32xf32, #tpu.memory_space<vmem>>, vector<2x32xf32>,
    %145 = vector.extract_strided_slice %142 {offsets = [2, 0], sizes = [2, 32], strides = [1, 1]} : vector<4x32xf32> to vector<2x32xf32>
    %c10_53 = arith.constant 10 : index
    %c0_54 = arith.constant 0 : index
    %146 = vector.load %arg16[%c10_53, %c0_54] : memref<18x32xf32, #tpu.memory_space<vmem>>, vector<2x32xf32>
    tpu.vector_store %arg16[%c10_53, %c0_54], %145 {strides = array<i32>} : memref<18x32xf32, #tpu.memory_space<vmem>>, vector<2x32xf32>,
    %c8 = arith.constant 8 : index
    %c0_55 = arith.constant 0 : index
    %147 = vector.load %arg13[%c8, %c0_55] : memref<18x128xf32, #tpu.memory_space<vmem>>, vector<2x128xf32>
    %c8_56 = arith.constant 8 : index
    %c0_57 = arith.constant 0 : index
    %148 = vector.load %arg14[%c8_56, %c0_57] : memref<18x128xf32, #tpu.memory_space<vmem>>, vector<2x128xf32>
    %149 = tpu.concatenate %147, %148 in 0 : vector<2x128xf32>, vector<2x128xf32> -> vector<4x128xf32>
    %150 = vector.broadcast %8 : vector<4x1xf32> to vector<4x32xf32>
    %151 = arith.mulf %142, %150 : vector<4x32xf32>
    %152 = vector.broadcast %10 : vector<4x1xf32> to vector<4x32xf32>
    %153 = arith.mulf %142, %152 : vector<4x32xf32>
    %154 = tpu.concatenate %151, %153 in 1 : vector<4x32xf32>, vector<4x32xf32> -> vector<4x64xf32>
    %cst_58 = arith.constant dense<0.000000e+00> : vector<4x128xf32>
    %155 = tpu.matmul %154, %28, %cst_58 {dimension_numbers = #tpu.dot_dimension_numbers<[1], [0], [0], [1], [0, 0, 1, 1], [], []>} : vector<4x64xf32>, vector<64x128xf32>, vector<4x128xf32> -> vector<4x128xf32>
    %156 = arith.addf %149, %155 : vector<4x128xf32>
    %157 = arith.negf %156 : vector<4x128xf32>
    %158 = math.exp %157 : vector<4x128xf32>
    %cst_59 = arith.constant 1.000000e+00 : f32
    %159 = vector.broadcast %cst_59 : f32 to vector<4x128xf32>
    %160 = arith.addf %159, %158 : vector<4x128xf32>
    %161 = arith.divf %159, %160 : vector<4x128xf32>
    %162 = vector.extract_strided_slice %161 {offsets = [0, 0], sizes = [4, 32], strides = [1, 1]} : vector<4x128xf32> to vector<4x32xf32>
    %163 = vector.extract_strided_slice %161 {offsets = [0, 32], sizes = [4, 32], strides = [1, 1]} : vector<4x128xf32> to vector<4x32xf32>
    %164 = vector.extract_strided_slice %161 {offsets = [0, 96], sizes = [4, 32], strides = [1, 1]} : vector<4x128xf32> to vector<4x32xf32>
    %165 = vector.extract_strided_slice %156 {offsets = [0, 64], sizes = [4, 32], strides = [1, 1]} : vector<4x128xf32> to vector<4x32xf32>
    %166 = math.tanh %165 : vector<4x32xf32>
    %167 = arith.mulf %163, %140 : vector<4x32xf32>
    %168 = arith.mulf %162, %166 : vector<4x32xf32>
    %169 = arith.addf %167, %168 : vector<4x32xf32>
    %170 = math.tanh %169 : vector<4x32xf32>
    %171 = arith.mulf %164, %170 : vector<4x32xf32>
    %172 = vector.extract_strided_slice %171 {offsets = [0, 0], sizes = [2, 32], strides = [1, 1]} : vector<4x32xf32> to vector<2x32xf32>
    %c8_60 = arith.constant 8 : index
    %c0_61 = arith.constant 0 : index
    %173 = vector.load %arg15[%c8_60, %c0_61] : memref<18x32xf32, #tpu.memory_space<vmem>>, vector<2x32xf32>
    tpu.vector_store %arg15[%c8_60, %c0_61], %172 {strides = array<i32>} : memref<18x32xf32, #tpu.memory_space<vmem>>, vector<2x32xf32>,
    %174 = vector.extract_strided_slice %171 {offsets = [2, 0], sizes = [2, 32], strides = [1, 1]} : vector<4x32xf32> to vector<2x32xf32>
    %c8_62 = arith.constant 8 : index
    %c0_63 = arith.constant 0 : index
    %175 = vector.load %arg16[%c8_62, %c0_63] : memref<18x32xf32, #tpu.memory_space<vmem>>, vector<2x32xf32>
    tpu.vector_store %arg16[%c8_62, %c0_63], %174 {strides = array<i32>} : memref<18x32xf32, #tpu.memory_space<vmem>>, vector<2x32xf32>,
    %c10_64 = arith.constant 10 : index
    %c0_65 = arith.constant 0 : index
    %176 = vector.load %arg13[%c10_64, %c0_65] : memref<18x128xf32, #tpu.memory_space<vmem>>, vector<2x128xf32>
    %c6_66 = arith.constant 6 : index
    %c0_67 = arith.constant 0 : index
    %177 = vector.load %arg14[%c6_66, %c0_67] : memref<18x128xf32, #tpu.memory_space<vmem>>, vector<2x128xf32>
    %178 = tpu.concatenate %176, %177 in 0 : vector<2x128xf32>, vector<2x128xf32> -> vector<4x128xf32>
    %179 = vector.broadcast %8 : vector<4x1xf32> to vector<4x32xf32>
    %180 = arith.mulf %171, %179 : vector<4x32xf32>
    %181 = vector.broadcast %10 : vector<4x1xf32> to vector<4x32xf32>
    %182 = arith.mulf %171, %181 : vector<4x32xf32>
    %183 = tpu.concatenate %180, %182 in 1 : vector<4x32xf32>, vector<4x32xf32> -> vector<4x64xf32>
    %cst_68 = arith.constant dense<0.000000e+00> : vector<4x128xf32>
    %184 = tpu.matmul %183, %28, %cst_68 {dimension_numbers = #tpu.dot_dimension_numbers<[1], [0], [0], [1], [0, 0, 1, 1], [], []>} : vector<4x64xf32>, vector<64x128xf32>, vector<4x128xf32> -> vector<4x128xf32>
    %185 = arith.addf %178, %184 : vector<4x128xf32>
    %186 = arith.negf %185 : vector<4x128xf32>
    %187 = math.exp %186 : vector<4x128xf32>
    %cst_69 = arith.constant 1.000000e+00 : f32
    %188 = vector.broadcast %cst_69 : f32 to vector<4x128xf32>
    %189 = arith.addf %188, %187 : vector<4x128xf32>
    %190 = arith.divf %188, %189 : vector<4x128xf32>
    %191 = vector.extract_strided_slice %190 {offsets = [0, 0], sizes = [4, 32], strides = [1, 1]} : vector<4x128xf32> to vector<4x32xf32>
    %192 = vector.extract_strided_slice %190 {offsets = [0, 32], sizes = [4, 32], strides = [1, 1]} : vector<4x128xf32> to vector<4x32xf32>
    %193 = vector.extract_strided_slice %190 {offsets = [0, 96], sizes = [4, 32], strides = [1, 1]} : vector<4x128xf32> to vector<4x32xf32>
    %194 = vector.extract_strided_slice %185 {offsets = [0, 64], sizes = [4, 32], strides = [1, 1]} : vector<4x128xf32> to vector<4x32xf32>
    %195 = math.tanh %194 : vector<4x32xf32>
    %196 = arith.mulf %192, %169 : vector<4x32xf32>
    %197 = arith.mulf %191, %195 : vector<4x32xf32>
    %198 = arith.addf %196, %197 : vector<4x32xf32>
    %199 = math.tanh %198 : vector<4x32xf32>
    %200 = arith.mulf %193, %199 : vector<4x32xf32>
    %201 = vector.extract_strided_slice %200 {offsets = [0, 0], sizes = [2, 32], strides = [1, 1]} : vector<4x32xf32> to vector<2x32xf32>
    %c10_70 = arith.constant 10 : index
    %c0_71 = arith.constant 0 : index
    %202 = vector.load %arg15[%c10_70, %c0_71] : memref<18x32xf32, #tpu.memory_space<vmem>>, vector<2x32xf32>
    tpu.vector_store %arg15[%c10_70, %c0_71], %201 {strides = array<i32>} : memref<18x32xf32, #tpu.memory_space<vmem>>, vector<2x32xf32>,
    %203 = vector.extract_strided_slice %200 {offsets = [2, 0], sizes = [2, 32], strides = [1, 1]} : vector<4x32xf32> to vector<2x32xf32>
    %c6_72 = arith.constant 6 : index
    %c0_73 = arith.constant 0 : index
    %204 = vector.load %arg16[%c6_72, %c0_73] : memref<18x32xf32, #tpu.memory_space<vmem>>, vector<2x32xf32>
    tpu.vector_store %arg16[%c6_72, %c0_73], %203 {strides = array<i32>} : memref<18x32xf32, #tpu.memory_space<vmem>>, vector<2x32xf32>,
    %c12_74 = arith.constant 12 : index
    %c0_75 = arith.constant 0 : index
    %205 = vector.load %arg13[%c12_74, %c0_75] : memref<18x128xf32, #tpu.memory_space<vmem>>, vector<2x128xf32>
    %c4_76 = arith.constant 4 : index
    %c0_77 = arith.constant 0 : index
    %206 = vector.load %arg14[%c4_76, %c0_77] : memref<18x128xf32, #tpu.memory_space<vmem>>, vector<2x128xf32>
    %207 = tpu.concatenate %205, %206 in 0 : vector<2x128xf32>, vector<2x128xf32> -> vector<4x128xf32>
    %208 = vector.broadcast %8 : vector<4x1xf32> to vector<4x32xf32>
    %209 = arith.mulf %200, %208 : vector<4x32xf32>
    %210 = vector.broadcast %10 : vector<4x1xf32> to vector<4x32xf32>
    %211 = arith.mulf %200, %210 : vector<4x32xf32>
    %212 = tpu.concatenate %209, %211 in 1 : vector<4x32xf32>, vector<4x32xf32> -> vector<4x64xf32>
    %cst_78 = arith.constant dense<0.000000e+00> : vector<4x128xf32>
    %213 = tpu.matmul %212, %28, %cst_78 {dimension_numbers = #tpu.dot_dimension_numbers<[1], [0], [0], [1], [0, 0, 1, 1], [], []>} : vector<4x64xf32>, vector<64x128xf32>, vector<4x128xf32> -> vector<4x128xf32>
    %214 = arith.addf %207, %213 : vector<4x128xf32>
    %215 = arith.negf %214 : vector<4x128xf32>
    %216 = math.exp %215 : vector<4x128xf32>
    %cst_79 = arith.constant 1.000000e+00 : f32
    %217 = vector.broadcast %cst_79 : f32 to vector<4x128xf32>
    %218 = arith.addf %217, %216 : vector<4x128xf32>
    %219 = arith.divf %217, %218 : vector<4x128xf32>
    %220 = vector.extract_strided_slice %219 {offsets = [0, 0], sizes = [4, 32], strides = [1, 1]} : vector<4x128xf32> to vector<4x32xf32>
    %221 = vector.extract_strided_slice %219 {offsets = [0, 32], sizes = [4, 32], strides = [1, 1]} : vector<4x128xf32> to vector<4x32xf32>
    %222 = vector.extract_strided_slice %219 {offsets = [0, 96], sizes = [4, 32], strides = [1, 1]} : vector<4x128xf32> to vector<4x32xf32>
    %223 = vector.extract_strided_slice %214 {offsets = [0, 64], sizes = [4, 32], strides = [1, 1]} : vector<4x128xf32> to vector<4x32xf32>
    %224 = math.tanh %223 : vector<4x32xf32>
    %225 = arith.mulf %221, %198 : vector<4x32xf32>
    %226 = arith.mulf %220, %224 : vector<4x32xf32>
    %227 = arith.addf %225, %226 : vector<4x32xf32>
    %228 = math.tanh %227 : vector<4x32xf32>
    %229 = arith.mulf %222, %228 : vector<4x32xf32>
    %230 = vector.extract_strided_slice %229 {offsets = [0, 0], sizes = [2, 32], strides = [1, 1]} : vector<4x32xf32> to vector<2x32xf32>
    %c12_80 = arith.constant 12 : index
    %c0_81 = arith.constant 0 : index
    %231 = vector.load %arg15[%c12_80, %c0_81] : memref<18x32xf32, #tpu.memory_space<vmem>>, vector<2x32xf32>
    tpu.vector_store %arg15[%c12_80, %c0_81], %230 {strides = array<i32>} : memref<18x32xf32, #tpu.memory_space<vmem>>, vector<2x32xf32>,
    %232 = vector.extract_strided_slice %229 {offsets = [2, 0], sizes = [2, 32], strides = [1, 1]} : vector<4x32xf32> to vector<2x32xf32>
    %c4_82 = arith.constant 4 : index
    %c0_83 = arith.constant 0 : index
    %233 = vector.load %arg16[%c4_82, %c0_83] : memref<18x32xf32, #tpu.memory_space<vmem>>, vector<2x32xf32>
    tpu.vector_store %arg16[%c4_82, %c0_83], %232 {strides = array<i32>} : memref<18x32xf32, #tpu.memory_space<vmem>>, vector<2x32xf32>,
    %c14_84 = arith.constant 14 : index
    %c0_85 = arith.constant 0 : index
    %234 = vector.load %arg13[%c14_84, %c0_85] : memref<18x128xf32, #tpu.memory_space<vmem>>, vector<2x128xf32>
    %c2_86 = arith.constant 2 : index
    %c0_87 = arith.constant 0 : index
    %235 = vector.load %arg14[%c2_86, %c0_87] : memref<18x128xf32, #tpu.memory_space<vmem>>, vector<2x128xf32>
    %236 = tpu.concatenate %234, %235 in 0 : vector<2x128xf32>, vector<2x128xf32> -> vector<4x128xf32>
    %237 = vector.broadcast %8 : vector<4x1xf32> to vector<4x32xf32>
    %238 = arith.mulf %229, %237 : vector<4x32xf32>
    %239 = vector.broadcast %10 : vector<4x1xf32> to vector<4x32xf32>
    %240 = arith.mulf %229, %239 : vector<4x32xf32>
    %241 = tpu.concatenate %238, %240 in 1 : vector<4x32xf32>, vector<4x32xf32> -> vector<4x64xf32>
    %cst_88 = arith.constant dense<0.000000e+00> : vector<4x128xf32>
    %242 = tpu.matmul %241, %28, %cst_88 {dimension_numbers = #tpu.dot_dimension_numbers<[1], [0], [0], [1], [0, 0, 1, 1], [], []>} : vector<4x64xf32>, vector<64x128xf32>, vector<4x128xf32> -> vector<4x128xf32>
    %243 = arith.addf %236, %242 : vector<4x128xf32>
    %244 = arith.negf %243 : vector<4x128xf32>
    %245 = math.exp %244 : vector<4x128xf32>
    %cst_89 = arith.constant 1.000000e+00 : f32
    %246 = vector.broadcast %cst_89 : f32 to vector<4x128xf32>
    %247 = arith.addf %246, %245 : vector<4x128xf32>
    %248 = arith.divf %246, %247 : vector<4x128xf32>
    %249 = vector.extract_strided_slice %248 {offsets = [0, 0], sizes = [4, 32], strides = [1, 1]} : vector<4x128xf32> to vector<4x32xf32>
    %250 = vector.extract_strided_slice %248 {offsets = [0, 32], sizes = [4, 32], strides = [1, 1]} : vector<4x128xf32> to vector<4x32xf32>
    %251 = vector.extract_strided_slice %248 {offsets = [0, 96], sizes = [4, 32], strides = [1, 1]} : vector<4x128xf32> to vector<4x32xf32>
    %252 = vector.extract_strided_slice %243 {offsets = [0, 64], sizes = [4, 32], strides = [1, 1]} : vector<4x128xf32> to vector<4x32xf32>
    %253 = math.tanh %252 : vector<4x32xf32>
    %254 = arith.mulf %250, %227 : vector<4x32xf32>
    %255 = arith.mulf %249, %253 : vector<4x32xf32>
    %256 = arith.addf %254, %255 : vector<4x32xf32>
    %257 = math.tanh %256 : vector<4x32xf32>
    %258 = arith.mulf %251, %257 : vector<4x32xf32>
    %259 = vector.extract_strided_slice %258 {offsets = [0, 0], sizes = [2, 32], strides = [1, 1]} : vector<4x32xf32> to vector<2x32xf32>
    %c14_90 = arith.constant 14 : index
    %c0_91 = arith.constant 0 : index
    %260 = vector.load %arg15[%c14_90, %c0_91] : memref<18x32xf32, #tpu.memory_space<vmem>>, vector<2x32xf32>
    tpu.vector_store %arg15[%c14_90, %c0_91], %259 {strides = array<i32>} : memref<18x32xf32, #tpu.memory_space<vmem>>, vector<2x32xf32>,
    %261 = vector.extract_strided_slice %258 {offsets = [2, 0], sizes = [2, 32], strides = [1, 1]} : vector<4x32xf32> to vector<2x32xf32>
    %c2_92 = arith.constant 2 : index
    %c0_93 = arith.constant 0 : index
    %262 = vector.load %arg16[%c2_92, %c0_93] : memref<18x32xf32, #tpu.memory_space<vmem>>, vector<2x32xf32>
    tpu.vector_store %arg16[%c2_92, %c0_93], %261 {strides = array<i32>} : memref<18x32xf32, #tpu.memory_space<vmem>>, vector<2x32xf32>,
    %c16_94 = arith.constant 16 : index
    %c0_95 = arith.constant 0 : index
    %263 = vector.load %arg13[%c16_94, %c0_95] : memref<18x128xf32, #tpu.memory_space<vmem>>, vector<2x128xf32>
    %c0_96 = arith.constant 0 : index
    %c0_97 = arith.constant 0 : index
    %264 = vector.load %arg14[%c0_96, %c0_97] : memref<18x128xf32, #tpu.memory_space<vmem>>, vector<2x128xf32>
    %265 = tpu.concatenate %263, %264 in 0 : vector<2x128xf32>, vector<2x128xf32> -> vector<4x128xf32>
    %266 = vector.broadcast %8 : vector<4x1xf32> to vector<4x32xf32>
    %267 = arith.mulf %258, %266 : vector<4x32xf32>
    %268 = vector.broadcast %10 : vector<4x1xf32> to vector<4x32xf32>
    %269 = arith.mulf %258, %268 : vector<4x32xf32>
    %270 = tpu.concatenate %267, %269 in 1 : vector<4x32xf32>, vector<4x32xf32> -> vector<4x64xf32>
    %cst_98 = arith.constant dense<0.000000e+00> : vector<4x128xf32>
    %271 = tpu.matmul %270, %28, %cst_98 {dimension_numbers = #tpu.dot_dimension_numbers<[1], [0], [0], [1], [0, 0, 1, 1], [], []>} : vector<4x64xf32>, vector<64x128xf32>, vector<4x128xf32> -> vector<4x128xf32>
    %272 = arith.addf %265, %271 : vector<4x128xf32>
    %273 = arith.negf %272 : vector<4x128xf32>
    %274 = math.exp %273 : vector<4x128xf32>
    %cst_99 = arith.constant 1.000000e+00 : f32
    %275 = vector.broadcast %cst_99 : f32 to vector<4x128xf32>
    %276 = arith.addf %275, %274 : vector<4x128xf32>
    %277 = arith.divf %275, %276 : vector<4x128xf32>
    %278 = vector.extract_strided_slice %277 {offsets = [0, 0], sizes = [4, 32], strides = [1, 1]} : vector<4x128xf32> to vector<4x32xf32>
    %279 = vector.extract_strided_slice %277 {offsets = [0, 32], sizes = [4, 32], strides = [1, 1]} : vector<4x128xf32> to vector<4x32xf32>
    %280 = vector.extract_strided_slice %277 {offsets = [0, 96], sizes = [4, 32], strides = [1, 1]} : vector<4x128xf32> to vector<4x32xf32>
    %281 = vector.extract_strided_slice %272 {offsets = [0, 64], sizes = [4, 32], strides = [1, 1]} : vector<4x128xf32> to vector<4x32xf32>
    %282 = math.tanh %281 : vector<4x32xf32>
    %283 = arith.mulf %279, %256 : vector<4x32xf32>
    %284 = arith.mulf %278, %282 : vector<4x32xf32>
    %285 = arith.addf %283, %284 : vector<4x32xf32>
    %286 = math.tanh %285 : vector<4x32xf32>
    %287 = arith.mulf %280, %286 : vector<4x32xf32>
    %288 = vector.extract_strided_slice %287 {offsets = [0, 0], sizes = [2, 32], strides = [1, 1]} : vector<4x32xf32> to vector<2x32xf32>
    %c16_100 = arith.constant 16 : index
    %c0_101 = arith.constant 0 : index
    %289 = vector.load %arg15[%c16_100, %c0_101] : memref<18x32xf32, #tpu.memory_space<vmem>>, vector<2x32xf32>
    tpu.vector_store %arg15[%c16_100, %c0_101], %288 {strides = array<i32>} : memref<18x32xf32, #tpu.memory_space<vmem>>, vector<2x32xf32>,
    %290 = vector.extract_strided_slice %287 {offsets = [2, 0], sizes = [2, 32], strides = [1, 1]} : vector<4x32xf32> to vector<2x32xf32>
    %c0_102 = arith.constant 0 : index
    %c0_103 = arith.constant 0 : index
    %291 = vector.load %arg16[%c0_102, %c0_103] : memref<18x32xf32, #tpu.memory_space<vmem>>, vector<2x32xf32>
    tpu.vector_store %arg16[%c0_102, %c0_103], %290 {strides = array<i32>} : memref<18x32xf32, #tpu.memory_space<vmem>>, vector<2x32xf32>,
    %c0_i32_104 = arith.constant 0 : i32
    %292 = tpu.memref_slice %arg19[%c0_i32_104] : memref<2x!tpu.dma_semaphore, #tpu.memory_space<semaphore_mem>> -> memref<1x!tpu.dma_semaphore, #tpu.memory_space<semaphore_mem>>
    %293 = tpu.memref_squeeze %292 : memref<1x!tpu.dma_semaphore, #tpu.memory_space<semaphore_mem>> -> memref<!tpu.dma_semaphore, #tpu.memory_space<semaphore_mem>>
    tpu.wait_dma2 semaphore(%293 : memref<!tpu.dma_semaphore, #tpu.memory_space<semaphore_mem>>) src(%arg5 : memref<4x32x128xf32, #tpu.memory_space<any>>) dst(%arg17 : memref<4x32x128xf32, #tpu.memory_space<vmem>>)
    %c1_i32_105 = arith.constant 1 : i32
    %294 = tpu.memref_slice %arg19[%c1_i32_105] : memref<2x!tpu.dma_semaphore, #tpu.memory_space<semaphore_mem>> -> memref<1x!tpu.dma_semaphore, #tpu.memory_space<semaphore_mem>>
    %295 = tpu.memref_squeeze %294 : memref<1x!tpu.dma_semaphore, #tpu.memory_space<semaphore_mem>> -> memref<!tpu.dma_semaphore, #tpu.memory_space<semaphore_mem>>
    tpu.wait_dma2 semaphore(%295 : memref<!tpu.dma_semaphore, #tpu.memory_space<semaphore_mem>>) src(%arg6 : memref<64x128xf32, #tpu.memory_space<any>>) dst(%arg18 : memref<64x128xf32, #tpu.memory_space<vmem>>)
    %c0_106 = arith.constant 0 : index
    %c0_107 = arith.constant 0 : index
    %296 = vector.load %arg15[%c0_106, %c0_107] : memref<18x32xf32, #tpu.memory_space<vmem>>, vector<18x32xf32>
    %c0_108 = arith.constant 0 : index
    %c0_109 = arith.constant 0 : index
    %297 = vector.load %arg16[%c0_108, %c0_109] : memref<18x32xf32, #tpu.memory_space<vmem>>, vector<18x32xf32>
    %c0_110 = arith.constant 0 : index
    %c0_111 = arith.constant 0 : index
    %c0_112 = arith.constant 0 : index
    %298 = vector.load %arg17[%c0_110, %c0_111, %c0_112] : memref<4x32x128xf32, #tpu.memory_space<vmem>>, vector<1x32x128xf32>
    %299 = vector.shape_cast %298 : vector<1x32x128xf32> to vector<32x128xf32>
    %cst_113 = arith.constant dense<0.000000e+00> : vector<18x128xf32>
    %300 = tpu.matmul %296, %299, %cst_113 {dimension_numbers = #tpu.dot_dimension_numbers<[1], [0], [0], [1], [0, 0, 1, 1], [], []>} : vector<18x32xf32>, vector<32x128xf32>, vector<18x128xf32> -> vector<18x128xf32>
    %c1_114 = arith.constant 1 : index
    %c0_115 = arith.constant 0 : index
    %c0_116 = arith.constant 0 : index
    %301 = vector.load %arg17[%c1_114, %c0_115, %c0_116] : memref<4x32x128xf32, #tpu.memory_space<vmem>>, vector<1x32x128xf32>
    %302 = vector.shape_cast %301 : vector<1x32x128xf32> to vector<32x128xf32>
    %cst_117 = arith.constant dense<0.000000e+00> : vector<18x128xf32>
    %303 = tpu.matmul %297, %302, %cst_117 {dimension_numbers = #tpu.dot_dimension_numbers<[1], [0], [0], [1], [0, 0, 1, 1], [], []>} : vector<18x32xf32>, vector<32x128xf32>, vector<18x128xf32> -> vector<18x128xf32>
    %304 = arith.addf %300, %303 : vector<18x128xf32>
    %c0_118 = arith.constant 0 : index
    %c0_119 = arith.constant 0 : index
    %c0_120 = arith.constant 0 : index
    %305 = vector.load %arg7[%c0_118, %c0_119, %c0_120] : memref<2x1x128xf32, #tpu.memory_space<vmem>>, vector<1x1x128xf32>
    %306 = vector.shape_cast %305 : vector<1x1x128xf32> to vector<1x128xf32>
    %307 = vector.broadcast %306 : vector<1x128xf32> to vector<18x128xf32>
    %308 = arith.addf %304, %307 : vector<18x128xf32>
    %c0_121 = arith.constant 0 : index
    %c0_122 = arith.constant 0 : index
    %309 = vector.load %arg13[%c0_121, %c0_122] : memref<18x128xf32, #tpu.memory_space<vmem>>, vector<18x128xf32>
    tpu.vector_store %arg13[%c0_121, %c0_122], %308 {strides = array<i32>} : memref<18x128xf32, #tpu.memory_space<vmem>>, vector<18x128xf32>,
    %c2_123 = arith.constant 2 : index
    %c0_124 = arith.constant 0 : index
    %c0_125 = arith.constant 0 : index
    %310 = vector.load %arg17[%c2_123, %c0_124, %c0_125] : memref<4x32x128xf32, #tpu.memory_space<vmem>>, vector<1x32x128xf32>
    %311 = vector.shape_cast %310 : vector<1x32x128xf32> to vector<32x128xf32>
    %cst_126 = arith.constant dense<0.000000e+00> : vector<18x128xf32>
    %312 = tpu.matmul %296, %311, %cst_126 {dimension_numbers = #tpu.dot_dimension_numbers<[1], [0], [0], [1], [0, 0, 1, 1], [], []>} : vector<18x32xf32>, vector<32x128xf32>, vector<18x128xf32> -> vector<18x128xf32>
    %c3 = arith.constant 3 : index
    %c0_127 = arith.constant 0 : index
    %c0_128 = arith.constant 0 : index
    %313 = vector.load %arg17[%c3, %c0_127, %c0_128] : memref<4x32x128xf32, #tpu.memory_space<vmem>>, vector<1x32x128xf32>
    %314 = vector.shape_cast %313 : vector<1x32x128xf32> to vector<32x128xf32>
    %cst_129 = arith.constant dense<0.000000e+00> : vector<18x128xf32>
    %315 = tpu.matmul %297, %314, %cst_129 {dimension_numbers = #tpu.dot_dimension_numbers<[1], [0], [0], [1], [0, 0, 1, 1], [], []>} : vector<18x32xf32>, vector<32x128xf32>, vector<18x128xf32> -> vector<18x128xf32>
    %316 = arith.addf %312, %315 : vector<18x128xf32>
    %c1_130 = arith.constant 1 : index
    %c0_131 = arith.constant 0 : index
    %c0_132 = arith.constant 0 : index
    %317 = vector.load %arg7[%c1_130, %c0_131, %c0_132] : memref<2x1x128xf32, #tpu.memory_space<vmem>>, vector<1x1x128xf32>
    %318 = vector.shape_cast %317 : vector<1x1x128xf32> to vector<1x128xf32>
    %319 = vector.broadcast %318 : vector<1x128xf32> to vector<18x128xf32>
    %320 = arith.addf %316, %319 : vector<18x128xf32>
    %c0_133 = arith.constant 0 : index
    %c0_134 = arith.constant 0 : index
    %321 = vector.load %arg14[%c0_133, %c0_134] : memref<18x128xf32, #tpu.memory_space<vmem>>, vector<18x128xf32>
    tpu.vector_store %arg14[%c0_133, %c0_134], %320 {strides = array<i32>} : memref<18x128xf32, #tpu.memory_space<vmem>>, vector<18x128xf32>,
    %c0_135 = arith.constant 0 : index
    %c0_136 = arith.constant 0 : index
    %322 = vector.load %arg18[%c0_135, %c0_136] : memref<64x128xf32, #tpu.memory_space<vmem>>, vector<64x128xf32>
    %cst_137 = arith.constant 0.000000e+00 : f32
    %323 = vector.broadcast %cst_137 : f32 to vector<4x32xf32>
    %cst_138 = arith.constant 0.000000e+00 : f32
    %324 = vector.broadcast %cst_138 : f32 to vector<4x32xf32>
    %c0_139 = arith.constant 0 : index
    %c0_140 = arith.constant 0 : index
    %325 = vector.load %arg13[%c0_139, %c0_140] : memref<18x128xf32, #tpu.memory_space<vmem>>, vector<2x128xf32>
    %c16_141 = arith.constant 16 : index
    %c0_142 = arith.constant 0 : index
    %326 = vector.load %arg14[%c16_141, %c0_142] : memref<18x128xf32, #tpu.memory_space<vmem>>, vector<2x128xf32>
    %327 = tpu.concatenate %325, %326 in 0 : vector<2x128xf32>, vector<2x128xf32> -> vector<4x128xf32>
    %328 = vector.broadcast %8 : vector<4x1xf32> to vector<4x32xf32>
    %329 = arith.mulf %323, %328 : vector<4x32xf32>
    %330 = vector.broadcast %10 : vector<4x1xf32> to vector<4x32xf32>
    %331 = arith.mulf %323, %330 : vector<4x32xf32>
    %332 = tpu.concatenate %329, %331 in 1 : vector<4x32xf32>, vector<4x32xf32> -> vector<4x64xf32>
    %cst_143 = arith.constant dense<0.000000e+00> : vector<4x128xf32>
    %333 = tpu.matmul %332, %322, %cst_143 {dimension_numbers = #tpu.dot_dimension_numbers<[1], [0], [0], [1], [0, 0, 1, 1], [], []>} : vector<4x64xf32>, vector<64x128xf32>, vector<4x128xf32> -> vector<4x128xf32>
    %334 = arith.addf %327, %333 : vector<4x128xf32>
    %335 = arith.negf %334 : vector<4x128xf32>
    %336 = math.exp %335 : vector<4x128xf32>
    %cst_144 = arith.constant 1.000000e+00 : f32
    %337 = vector.broadcast %cst_144 : f32 to vector<4x128xf32>
    %338 = arith.addf %337, %336 : vector<4x128xf32>
    %339 = arith.divf %337, %338 : vector<4x128xf32>
    %340 = vector.extract_strided_slice %339 {offsets = [0, 0], sizes = [4, 32], strides = [1, 1]} : vector<4x128xf32> to vector<4x32xf32>
    %341 = vector.extract_strided_slice %339 {offsets = [0, 32], sizes = [4, 32], strides = [1, 1]} : vector<4x128xf32> to vector<4x32xf32>
    %342 = vector.extract_strided_slice %339 {offsets = [0, 96], sizes = [4, 32], strides = [1, 1]} : vector<4x128xf32> to vector<4x32xf32>
    %343 = vector.extract_strided_slice %334 {offsets = [0, 64], sizes = [4, 32], strides = [1, 1]} : vector<4x128xf32> to vector<4x32xf32>
    %344 = math.tanh %343 : vector<4x32xf32>
    %345 = arith.mulf %341, %324 : vector<4x32xf32>
    %346 = arith.mulf %340, %344 : vector<4x32xf32>
    %347 = arith.addf %345, %346 : vector<4x32xf32>
    %348 = math.tanh %347 : vector<4x32xf32>
    %349 = arith.mulf %342, %348 : vector<4x32xf32>
    %350 = vector.extract_strided_slice %349 {offsets = [0, 0], sizes = [2, 32], strides = [1, 1]} : vector<4x32xf32> to vector<2x32xf32>
    %c0_145 = arith.constant 0 : index
    %c0_146 = arith.constant 0 : index
    %351 = vector.load %arg15[%c0_145, %c0_146] : memref<18x32xf32, #tpu.memory_space<vmem>>, vector<2x32xf32>
    tpu.vector_store %arg15[%c0_145, %c0_146], %350 {strides = array<i32>} : memref<18x32xf32, #tpu.memory_space<vmem>>, vector<2x32xf32>,
    %352 = vector.extract_strided_slice %349 {offsets = [2, 0], sizes = [2, 32], strides = [1, 1]} : vector<4x32xf32> to vector<2x32xf32>
    %c16_147 = arith.constant 16 : index
    %c0_148 = arith.constant 0 : index
    %353 = vector.load %arg16[%c16_147, %c0_148] : memref<18x32xf32, #tpu.memory_space<vmem>>, vector<2x32xf32>
    tpu.vector_store %arg16[%c16_147, %c0_148], %352 {strides = array<i32>} : memref<18x32xf32, #tpu.memory_space<vmem>>, vector<2x32xf32>,
    %c2_149 = arith.constant 2 : index
    %c0_150 = arith.constant 0 : index
    %354 = vector.load %arg13[%c2_149, %c0_150] : memref<18x128xf32, #tpu.memory_space<vmem>>, vector<2x128xf32>
    %c14_151 = arith.constant 14 : index
    %c0_152 = arith.constant 0 : index
    %355 = vector.load %arg14[%c14_151, %c0_152] : memref<18x128xf32, #tpu.memory_space<vmem>>, vector<2x128xf32>
    %356 = tpu.concatenate %354, %355 in 0 : vector<2x128xf32>, vector<2x128xf32> -> vector<4x128xf32>
    %357 = vector.broadcast %8 : vector<4x1xf32> to vector<4x32xf32>
    %358 = arith.mulf %349, %357 : vector<4x32xf32>
    %359 = vector.broadcast %10 : vector<4x1xf32> to vector<4x32xf32>
    %360 = arith.mulf %349, %359 : vector<4x32xf32>
    %361 = tpu.concatenate %358, %360 in 1 : vector<4x32xf32>, vector<4x32xf32> -> vector<4x64xf32>
    %cst_153 = arith.constant dense<0.000000e+00> : vector<4x128xf32>
    %362 = tpu.matmul %361, %322, %cst_153 {dimension_numbers = #tpu.dot_dimension_numbers<[1], [0], [0], [1], [0, 0, 1, 1], [], []>} : vector<4x64xf32>, vector<64x128xf32>, vector<4x128xf32> -> vector<4x128xf32>
    %363 = arith.addf %356, %362 : vector<4x128xf32>
    %364 = arith.negf %363 : vector<4x128xf32>
    %365 = math.exp %364 : vector<4x128xf32>
    %cst_154 = arith.constant 1.000000e+00 : f32
    %366 = vector.broadcast %cst_154 : f32 to vector<4x128xf32>
    %367 = arith.addf %366, %365 : vector<4x128xf32>
    %368 = arith.divf %366, %367 : vector<4x128xf32>
    %369 = vector.extract_strided_slice %368 {offsets = [0, 0], sizes = [4, 32], strides = [1, 1]} : vector<4x128xf32> to vector<4x32xf32>
    %370 = vector.extract_strided_slice %368 {offsets = [0, 32], sizes = [4, 32], strides = [1, 1]} : vector<4x128xf32> to vector<4x32xf32>
    %371 = vector.extract_strided_slice %368 {offsets = [0, 96], sizes = [4, 32], strides = [1, 1]} : vector<4x128xf32> to vector<4x32xf32>
    %372 = vector.extract_strided_slice %363 {offsets = [0, 64], sizes = [4, 32], strides = [1, 1]} : vector<4x128xf32> to vector<4x32xf32>
    %373 = math.tanh %372 : vector<4x32xf32>
    %374 = arith.mulf %370, %347 : vector<4x32xf32>
    %375 = arith.mulf %369, %373 : vector<4x32xf32>
    %376 = arith.addf %374, %375 : vector<4x32xf32>
    %377 = math.tanh %376 : vector<4x32xf32>
    %378 = arith.mulf %371, %377 : vector<4x32xf32>
    %379 = vector.extract_strided_slice %378 {offsets = [0, 0], sizes = [2, 32], strides = [1, 1]} : vector<4x32xf32> to vector<2x32xf32>
    %c2_155 = arith.constant 2 : index
    %c0_156 = arith.constant 0 : index
    %380 = vector.load %arg15[%c2_155, %c0_156] : memref<18x32xf32, #tpu.memory_space<vmem>>, vector<2x32xf32>
    tpu.vector_store %arg15[%c2_155, %c0_156], %379 {strides = array<i32>} : memref<18x32xf32, #tpu.memory_space<vmem>>, vector<2x32xf32>,
    %381 = vector.extract_strided_slice %378 {offsets = [2, 0], sizes = [2, 32], strides = [1, 1]} : vector<4x32xf32> to vector<2x32xf32>
    %c14_157 = arith.constant 14 : index
    %c0_158 = arith.constant 0 : index
    %382 = vector.load %arg16[%c14_157, %c0_158] : memref<18x32xf32, #tpu.memory_space<vmem>>, vector<2x32xf32>
    tpu.vector_store %arg16[%c14_157, %c0_158], %381 {strides = array<i32>} : memref<18x32xf32, #tpu.memory_space<vmem>>, vector<2x32xf32>,
    %c4_159 = arith.constant 4 : index
    %c0_160 = arith.constant 0 : index
    %383 = vector.load %arg13[%c4_159, %c0_160] : memref<18x128xf32, #tpu.memory_space<vmem>>, vector<2x128xf32>
    %c12_161 = arith.constant 12 : index
    %c0_162 = arith.constant 0 : index
    %384 = vector.load %arg14[%c12_161, %c0_162] : memref<18x128xf32, #tpu.memory_space<vmem>>, vector<2x128xf32>
    %385 = tpu.concatenate %383, %384 in 0 : vector<2x128xf32>, vector<2x128xf32> -> vector<4x128xf32>
    %386 = vector.broadcast %8 : vector<4x1xf32> to vector<4x32xf32>
    %387 = arith.mulf %378, %386 : vector<4x32xf32>
    %388 = vector.broadcast %10 : vector<4x1xf32> to vector<4x32xf32>
    %389 = arith.mulf %378, %388 : vector<4x32xf32>
    %390 = tpu.concatenate %387, %389 in 1 : vector<4x32xf32>, vector<4x32xf32> -> vector<4x64xf32>
    %cst_163 = arith.constant dense<0.000000e+00> : vector<4x128xf32>
    %391 = tpu.matmul %390, %322, %cst_163 {dimension_numbers = #tpu.dot_dimension_numbers<[1], [0], [0], [1], [0, 0, 1, 1], [], []>} : vector<4x64xf32>, vector<64x128xf32>, vector<4x128xf32> -> vector<4x128xf32>
    %392 = arith.addf %385, %391 : vector<4x128xf32>
    %393 = arith.negf %392 : vector<4x128xf32>
    %394 = math.exp %393 : vector<4x128xf32>
    %cst_164 = arith.constant 1.000000e+00 : f32
    %395 = vector.broadcast %cst_164 : f32 to vector<4x128xf32>
    %396 = arith.addf %395, %394 : vector<4x128xf32>
    %397 = arith.divf %395, %396 : vector<4x128xf32>
    %398 = vector.extract_strided_slice %397 {offsets = [0, 0], sizes = [4, 32], strides = [1, 1]} : vector<4x128xf32> to vector<4x32xf32>
    %399 = vector.extract_strided_slice %397 {offsets = [0, 32], sizes = [4, 32], strides = [1, 1]} : vector<4x128xf32> to vector<4x32xf32>
    %400 = vector.extract_strided_slice %397 {offsets = [0, 96], sizes = [4, 32], strides = [1, 1]} : vector<4x128xf32> to vector<4x32xf32>
    %401 = vector.extract_strided_slice %392 {offsets = [0, 64], sizes = [4, 32], strides = [1, 1]} : vector<4x128xf32> to vector<4x32xf32>
    %402 = math.tanh %401 : vector<4x32xf32>
    %403 = arith.mulf %399, %376 : vector<4x32xf32>
    %404 = arith.mulf %398, %402 : vector<4x32xf32>
    %405 = arith.addf %403, %404 : vector<4x32xf32>
    %406 = math.tanh %405 : vector<4x32xf32>
    %407 = arith.mulf %400, %406 : vector<4x32xf32>
    %408 = vector.extract_strided_slice %407 {offsets = [0, 0], sizes = [2, 32], strides = [1, 1]} : vector<4x32xf32> to vector<2x32xf32>
    %c4_165 = arith.constant 4 : index
    %c0_166 = arith.constant 0 : index
    %409 = vector.load %arg15[%c4_165, %c0_166] : memref<18x32xf32, #tpu.memory_space<vmem>>, vector<2x32xf32>
    tpu.vector_store %arg15[%c4_165, %c0_166], %408 {strides = array<i32>} : memref<18x32xf32, #tpu.memory_space<vmem>>, vector<2x32xf32>,
    %410 = vector.extract_strided_slice %407 {offsets = [2, 0], sizes = [2, 32], strides = [1, 1]} : vector<4x32xf32> to vector<2x32xf32>
    %c12_167 = arith.constant 12 : index
    %c0_168 = arith.constant 0 : index
    %411 = vector.load %arg16[%c12_167, %c0_168] : memref<18x32xf32, #tpu.memory_space<vmem>>, vector<2x32xf32>
    tpu.vector_store %arg16[%c12_167, %c0_168], %410 {strides = array<i32>} : memref<18x32xf32, #tpu.memory_space<vmem>>, vector<2x32xf32>,
    %c6_169 = arith.constant 6 : index
    %c0_170 = arith.constant 0 : index
    %412 = vector.load %arg13[%c6_169, %c0_170] : memref<18x128xf32, #tpu.memory_space<vmem>>, vector<2x128xf32>
    %c10_171 = arith.constant 10 : index
    %c0_172 = arith.constant 0 : index
    %413 = vector.load %arg14[%c10_171, %c0_172] : memref<18x128xf32, #tpu.memory_space<vmem>>, vector<2x128xf32>
    %414 = tpu.concatenate %412, %413 in 0 : vector<2x128xf32>, vector<2x128xf32> -> vector<4x128xf32>
    %415 = vector.broadcast %8 : vector<4x1xf32> to vector<4x32xf32>
    %416 = arith.mulf %407, %415 : vector<4x32xf32>
    %417 = vector.broadcast %10 : vector<4x1xf32> to vector<4x32xf32>
    %418 = arith.mulf %407, %417 : vector<4x32xf32>
    %419 = tpu.concatenate %416, %418 in 1 : vector<4x32xf32>, vector<4x32xf32> -> vector<4x64xf32>
    %cst_173 = arith.constant dense<0.000000e+00> : vector<4x128xf32>
    %420 = tpu.matmul %419, %322, %cst_173 {dimension_numbers = #tpu.dot_dimension_numbers<[1], [0], [0], [1], [0, 0, 1, 1], [], []>} : vector<4x64xf32>, vector<64x128xf32>, vector<4x128xf32> -> vector<4x128xf32>
    %421 = arith.addf %414, %420 : vector<4x128xf32>
    %422 = arith.negf %421 : vector<4x128xf32>
    %423 = math.exp %422 : vector<4x128xf32>
    %cst_174 = arith.constant 1.000000e+00 : f32
    %424 = vector.broadcast %cst_174 : f32 to vector<4x128xf32>
    %425 = arith.addf %424, %423 : vector<4x128xf32>
    %426 = arith.divf %424, %425 : vector<4x128xf32>
    %427 = vector.extract_strided_slice %426 {offsets = [0, 0], sizes = [4, 32], strides = [1, 1]} : vector<4x128xf32> to vector<4x32xf32>
    %428 = vector.extract_strided_slice %426 {offsets = [0, 32], sizes = [4, 32], strides = [1, 1]} : vector<4x128xf32> to vector<4x32xf32>
    %429 = vector.extract_strided_slice %426 {offsets = [0, 96], sizes = [4, 32], strides = [1, 1]} : vector<4x128xf32> to vector<4x32xf32>
    %430 = vector.extract_strided_slice %421 {offsets = [0, 64], sizes = [4, 32], strides = [1, 1]} : vector<4x128xf32> to vector<4x32xf32>
    %431 = math.tanh %430 : vector<4x32xf32>
    %432 = arith.mulf %428, %405 : vector<4x32xf32>
    %433 = arith.mulf %427, %431 : vector<4x32xf32>
    %434 = arith.addf %432, %433 : vector<4x32xf32>
    %435 = math.tanh %434 : vector<4x32xf32>
    %436 = arith.mulf %429, %435 : vector<4x32xf32>
    %437 = vector.extract_strided_slice %436 {offsets = [0, 0], sizes = [2, 32], strides = [1, 1]} : vector<4x32xf32> to vector<2x32xf32>
    %c6_175 = arith.constant 6 : index
    %c0_176 = arith.constant 0 : index
    %438 = vector.load %arg15[%c6_175, %c0_176] : memref<18x32xf32, #tpu.memory_space<vmem>>, vector<2x32xf32>
    tpu.vector_store %arg15[%c6_175, %c0_176], %437 {strides = array<i32>} : memref<18x32xf32, #tpu.memory_space<vmem>>, vector<2x32xf32>,
    %439 = vector.extract_strided_slice %436 {offsets = [2, 0], sizes = [2, 32], strides = [1, 1]} : vector<4x32xf32> to vector<2x32xf32>
    %c10_177 = arith.constant 10 : index
    %c0_178 = arith.constant 0 : index
    %440 = vector.load %arg16[%c10_177, %c0_178] : memref<18x32xf32, #tpu.memory_space<vmem>>, vector<2x32xf32>
    tpu.vector_store %arg16[%c10_177, %c0_178], %439 {strides = array<i32>} : memref<18x32xf32, #tpu.memory_space<vmem>>, vector<2x32xf32>,
    %c8_179 = arith.constant 8 : index
    %c0_180 = arith.constant 0 : index
    %441 = vector.load %arg13[%c8_179, %c0_180] : memref<18x128xf32, #tpu.memory_space<vmem>>, vector<2x128xf32>
    %c8_181 = arith.constant 8 : index
    %c0_182 = arith.constant 0 : index
    %442 = vector.load %arg14[%c8_181, %c0_182] : memref<18x128xf32, #tpu.memory_space<vmem>>, vector<2x128xf32>
    %443 = tpu.concatenate %441, %442 in 0 : vector<2x128xf32>, vector<2x128xf32> -> vector<4x128xf32>
    %444 = vector.broadcast %8 : vector<4x1xf32> to vector<4x32xf32>
    %445 = arith.mulf %436, %444 : vector<4x32xf32>
    %446 = vector.broadcast %10 : vector<4x1xf32> to vector<4x32xf32>
    %447 = arith.mulf %436, %446 : vector<4x32xf32>
    %448 = tpu.concatenate %445, %447 in 1 : vector<4x32xf32>, vector<4x32xf32> -> vector<4x64xf32>
    %cst_183 = arith.constant dense<0.000000e+00> : vector<4x128xf32>
    %449 = tpu.matmul %448, %322, %cst_183 {dimension_numbers = #tpu.dot_dimension_numbers<[1], [0], [0], [1], [0, 0, 1, 1], [], []>} : vector<4x64xf32>, vector<64x128xf32>, vector<4x128xf32> -> vector<4x128xf32>
    %450 = arith.addf %443, %449 : vector<4x128xf32>
    %451 = arith.negf %450 : vector<4x128xf32>
    %452 = math.exp %451 : vector<4x128xf32>
    %cst_184 = arith.constant 1.000000e+00 : f32
    %453 = vector.broadcast %cst_184 : f32 to vector<4x128xf32>
    %454 = arith.addf %453, %452 : vector<4x128xf32>
    %455 = arith.divf %453, %454 : vector<4x128xf32>
    %456 = vector.extract_strided_slice %455 {offsets = [0, 0], sizes = [4, 32], strides = [1, 1]} : vector<4x128xf32> to vector<4x32xf32>
    %457 = vector.extract_strided_slice %455 {offsets = [0, 32], sizes = [4, 32], strides = [1, 1]} : vector<4x128xf32> to vector<4x32xf32>
    %458 = vector.extract_strided_slice %455 {offsets = [0, 96], sizes = [4, 32], strides = [1, 1]} : vector<4x128xf32> to vector<4x32xf32>
    %459 = vector.extract_strided_slice %450 {offsets = [0, 64], sizes = [4, 32], strides = [1, 1]} : vector<4x128xf32> to vector<4x32xf32>
    %460 = math.tanh %459 : vector<4x32xf32>
    %461 = arith.mulf %457, %434 : vector<4x32xf32>
    %462 = arith.mulf %456, %460 : vector<4x32xf32>
    %463 = arith.addf %461, %462 : vector<4x32xf32>
    %464 = math.tanh %463 : vector<4x32xf32>
    %465 = arith.mulf %458, %464 : vector<4x32xf32>
    %466 = vector.extract_strided_slice %465 {offsets = [0, 0], sizes = [2, 32], strides = [1, 1]} : vector<4x32xf32> to vector<2x32xf32>
    %c8_185 = arith.constant 8 : index
    %c0_186 = arith.constant 0 : index
    %467 = vector.load %arg15[%c8_185, %c0_186] : memref<18x32xf32, #tpu.memory_space<vmem>>, vector<2x32xf32>
    tpu.vector_store %arg15[%c8_185, %c0_186], %466 {strides = array<i32>} : memref<18x32xf32, #tpu.memory_space<vmem>>, vector<2x32xf32>,
    %468 = vector.extract_strided_slice %465 {offsets = [2, 0], sizes = [2, 32], strides = [1, 1]} : vector<4x32xf32> to vector<2x32xf32>
    %c8_187 = arith.constant 8 : index
    %c0_188 = arith.constant 0 : index
    %469 = vector.load %arg16[%c8_187, %c0_188] : memref<18x32xf32, #tpu.memory_space<vmem>>, vector<2x32xf32>
    tpu.vector_store %arg16[%c8_187, %c0_188], %468 {strides = array<i32>} : memref<18x32xf32, #tpu.memory_space<vmem>>, vector<2x32xf32>,
    %c10_189 = arith.constant 10 : index
    %c0_190 = arith.constant 0 : index
    %470 = vector.load %arg13[%c10_189, %c0_190] : memref<18x128xf32, #tpu.memory_space<vmem>>, vector<2x128xf32>
    %c6_191 = arith.constant 6 : index
    %c0_192 = arith.constant 0 : index
    %471 = vector.load %arg14[%c6_191, %c0_192] : memref<18x128xf32, #tpu.memory_space<vmem>>, vector<2x128xf32>
    %472 = tpu.concatenate %470, %471 in 0 : vector<2x128xf32>, vector<2x128xf32> -> vector<4x128xf32>
    %473 = vector.broadcast %8 : vector<4x1xf32> to vector<4x32xf32>
    %474 = arith.mulf %465, %473 : vector<4x32xf32>
    %475 = vector.broadcast %10 : vector<4x1xf32> to vector<4x32xf32>
    %476 = arith.mulf %465, %475 : vector<4x32xf32>
    %477 = tpu.concatenate %474, %476 in 1 : vector<4x32xf32>, vector<4x32xf32> -> vector<4x64xf32>
    %cst_193 = arith.constant dense<0.000000e+00> : vector<4x128xf32>
    %478 = tpu.matmul %477, %322, %cst_193 {dimension_numbers = #tpu.dot_dimension_numbers<[1], [0], [0], [1], [0, 0, 1, 1], [], []>} : vector<4x64xf32>, vector<64x128xf32>, vector<4x128xf32> -> vector<4x128xf32>
    %479 = arith.addf %472, %478 : vector<4x128xf32>
    %480 = arith.negf %479 : vector<4x128xf32>
    %481 = math.exp %480 : vector<4x128xf32>
    %cst_194 = arith.constant 1.000000e+00 : f32
    %482 = vector.broadcast %cst_194 : f32 to vector<4x128xf32>
    %483 = arith.addf %482, %481 : vector<4x128xf32>
    %484 = arith.divf %482, %483 : vector<4x128xf32>
    %485 = vector.extract_strided_slice %484 {offsets = [0, 0], sizes = [4, 32], strides = [1, 1]} : vector<4x128xf32> to vector<4x32xf32>
    %486 = vector.extract_strided_slice %484 {offsets = [0, 32], sizes = [4, 32], strides = [1, 1]} : vector<4x128xf32> to vector<4x32xf32>
    %487 = vector.extract_strided_slice %484 {offsets = [0, 96], sizes = [4, 32], strides = [1, 1]} : vector<4x128xf32> to vector<4x32xf32>
    %488 = vector.extract_strided_slice %479 {offsets = [0, 64], sizes = [4, 32], strides = [1, 1]} : vector<4x128xf32> to vector<4x32xf32>
    %489 = math.tanh %488 : vector<4x32xf32>
    %490 = arith.mulf %486, %463 : vector<4x32xf32>
    %491 = arith.mulf %485, %489 : vector<4x32xf32>
    %492 = arith.addf %490, %491 : vector<4x32xf32>
    %493 = math.tanh %492 : vector<4x32xf32>
    %494 = arith.mulf %487, %493 : vector<4x32xf32>
    %495 = vector.extract_strided_slice %494 {offsets = [0, 0], sizes = [2, 32], strides = [1, 1]} : vector<4x32xf32> to vector<2x32xf32>
    %c10_195 = arith.constant 10 : index
    %c0_196 = arith.constant 0 : index
    %496 = vector.load %arg15[%c10_195, %c0_196] : memref<18x32xf32, #tpu.memory_space<vmem>>, vector<2x32xf32>
    tpu.vector_store %arg15[%c10_195, %c0_196], %495 {strides = array<i32>} : memref<18x32xf32, #tpu.memory_space<vmem>>, vector<2x32xf32>,
    %497 = vector.extract_strided_slice %494 {offsets = [2, 0], sizes = [2, 32], strides = [1, 1]} : vector<4x32xf32> to vector<2x32xf32>
    %c6_197 = arith.constant 6 : index
    %c0_198 = arith.constant 0 : index
    %498 = vector.load %arg16[%c6_197, %c0_198] : memref<18x32xf32, #tpu.memory_space<vmem>>, vector<2x32xf32>
    tpu.vector_store %arg16[%c6_197, %c0_198], %497 {strides = array<i32>} : memref<18x32xf32, #tpu.memory_space<vmem>>, vector<2x32xf32>,
    %c12_199 = arith.constant 12 : index
    %c0_200 = arith.constant 0 : index
    %499 = vector.load %arg13[%c12_199, %c0_200] : memref<18x128xf32, #tpu.memory_space<vmem>>, vector<2x128xf32>
    %c4_201 = arith.constant 4 : index
    %c0_202 = arith.constant 0 : index
    %500 = vector.load %arg14[%c4_201, %c0_202] : memref<18x128xf32, #tpu.memory_space<vmem>>, vector<2x128xf32>
    %501 = tpu.concatenate %499, %500 in 0 : vector<2x128xf32>, vector<2x128xf32> -> vector<4x128xf32>
    %502 = vector.broadcast %8 : vector<4x1xf32> to vector<4x32xf32>
    %503 = arith.mulf %494, %502 : vector<4x32xf32>
    %504 = vector.broadcast %10 : vector<4x1xf32> to vector<4x32xf32>
    %505 = arith.mulf %494, %504 : vector<4x32xf32>
    %506 = tpu.concatenate %503, %505 in 1 : vector<4x32xf32>, vector<4x32xf32> -> vector<4x64xf32>
    %cst_203 = arith.constant dense<0.000000e+00> : vector<4x128xf32>
    %507 = tpu.matmul %506, %322, %cst_203 {dimension_numbers = #tpu.dot_dimension_numbers<[1], [0], [0], [1], [0, 0, 1, 1], [], []>} : vector<4x64xf32>, vector<64x128xf32>, vector<4x128xf32> -> vector<4x128xf32>
    %508 = arith.addf %501, %507 : vector<4x128xf32>
    %509 = arith.negf %508 : vector<4x128xf32>
    %510 = math.exp %509 : vector<4x128xf32>
    %cst_204 = arith.constant 1.000000e+00 : f32
    %511 = vector.broadcast %cst_204 : f32 to vector<4x128xf32>
    %512 = arith.addf %511, %510 : vector<4x128xf32>
    %513 = arith.divf %511, %512 : vector<4x128xf32>
    %514 = vector.extract_strided_slice %513 {offsets = [0, 0], sizes = [4, 32], strides = [1, 1]} : vector<4x128xf32> to vector<4x32xf32>
    %515 = vector.extract_strided_slice %513 {offsets = [0, 32], sizes = [4, 32], strides = [1, 1]} : vector<4x128xf32> to vector<4x32xf32>
    %516 = vector.extract_strided_slice %513 {offsets = [0, 96], sizes = [4, 32], strides = [1, 1]} : vector<4x128xf32> to vector<4x32xf32>
    %517 = vector.extract_strided_slice %508 {offsets = [0, 64], sizes = [4, 32], strides = [1, 1]} : vector<4x128xf32> to vector<4x32xf32>
    %518 = math.tanh %517 : vector<4x32xf32>
    %519 = arith.mulf %515, %492 : vector<4x32xf32>
    %520 = arith.mulf %514, %518 : vector<4x32xf32>
    %521 = arith.addf %519, %520 : vector<4x32xf32>
    %522 = math.tanh %521 : vector<4x32xf32>
    %523 = arith.mulf %516, %522 : vector<4x32xf32>
    %524 = vector.extract_strided_slice %523 {offsets = [0, 0], sizes = [2, 32], strides = [1, 1]} : vector<4x32xf32> to vector<2x32xf32>
    %c12_205 = arith.constant 12 : index
    %c0_206 = arith.constant 0 : index
    %525 = vector.load %arg15[%c12_205, %c0_206] : memref<18x32xf32, #tpu.memory_space<vmem>>, vector<2x32xf32>
    tpu.vector_store %arg15[%c12_205, %c0_206], %524 {strides = array<i32>} : memref<18x32xf32, #tpu.memory_space<vmem>>, vector<2x32xf32>,
    %526 = vector.extract_strided_slice %523 {offsets = [2, 0], sizes = [2, 32], strides = [1, 1]} : vector<4x32xf32> to vector<2x32xf32>
    %c4_207 = arith.constant 4 : index
    %c0_208 = arith.constant 0 : index
    %527 = vector.load %arg16[%c4_207, %c0_208] : memref<18x32xf32, #tpu.memory_space<vmem>>, vector<2x32xf32>
    tpu.vector_store %arg16[%c4_207, %c0_208], %526 {strides = array<i32>} : memref<18x32xf32, #tpu.memory_space<vmem>>, vector<2x32xf32>,
    %c14_209 = arith.constant 14 : index
    %c0_210 = arith.constant 0 : index
    %528 = vector.load %arg13[%c14_209, %c0_210] : memref<18x128xf32, #tpu.memory_space<vmem>>, vector<2x128xf32>
    %c2_211 = arith.constant 2 : index
    %c0_212 = arith.constant 0 : index
    %529 = vector.load %arg14[%c2_211, %c0_212] : memref<18x128xf32, #tpu.memory_space<vmem>>, vector<2x128xf32>
    %530 = tpu.concatenate %528, %529 in 0 : vector<2x128xf32>, vector<2x128xf32> -> vector<4x128xf32>
    %531 = vector.broadcast %8 : vector<4x1xf32> to vector<4x32xf32>
    %532 = arith.mulf %523, %531 : vector<4x32xf32>
    %533 = vector.broadcast %10 : vector<4x1xf32> to vector<4x32xf32>
    %534 = arith.mulf %523, %533 : vector<4x32xf32>
    %535 = tpu.concatenate %532, %534 in 1 : vector<4x32xf32>, vector<4x32xf32> -> vector<4x64xf32>
    %cst_213 = arith.constant dense<0.000000e+00> : vector<4x128xf32>
    %536 = tpu.matmul %535, %322, %cst_213 {dimension_numbers = #tpu.dot_dimension_numbers<[1], [0], [0], [1], [0, 0, 1, 1], [], []>} : vector<4x64xf32>, vector<64x128xf32>, vector<4x128xf32> -> vector<4x128xf32>
    %537 = arith.addf %530, %536 : vector<4x128xf32>
    %538 = arith.negf %537 : vector<4x128xf32>
    %539 = math.exp %538 : vector<4x128xf32>
    %cst_214 = arith.constant 1.000000e+00 : f32
    %540 = vector.broadcast %cst_214 : f32 to vector<4x128xf32>
    %541 = arith.addf %540, %539 : vector<4x128xf32>
    %542 = arith.divf %540, %541 : vector<4x128xf32>
    %543 = vector.extract_strided_slice %542 {offsets = [0, 0], sizes = [4, 32], strides = [1, 1]} : vector<4x128xf32> to vector<4x32xf32>
    %544 = vector.extract_strided_slice %542 {offsets = [0, 32], sizes = [4, 32], strides = [1, 1]} : vector<4x128xf32> to vector<4x32xf32>
    %545 = vector.extract_strided_slice %542 {offsets = [0, 96], sizes = [4, 32], strides = [1, 1]} : vector<4x128xf32> to vector<4x32xf32>
    %546 = vector.extract_strided_slice %537 {offsets = [0, 64], sizes = [4, 32], strides = [1, 1]} : vector<4x128xf32> to vector<4x32xf32>
    %547 = math.tanh %546 : vector<4x32xf32>
    %548 = arith.mulf %544, %521 : vector<4x32xf32>
    %549 = arith.mulf %543, %547 : vector<4x32xf32>
    %550 = arith.addf %548, %549 : vector<4x32xf32>
    %551 = math.tanh %550 : vector<4x32xf32>
    %552 = arith.mulf %545, %551 : vector<4x32xf32>
    %553 = vector.extract_strided_slice %552 {offsets = [0, 0], sizes = [2, 32], strides = [1, 1]} : vector<4x32xf32> to vector<2x32xf32>
    %c14_215 = arith.constant 14 : index
    %c0_216 = arith.constant 0 : index
    %554 = vector.load %arg15[%c14_215, %c0_216] : memref<18x32xf32, #tpu.memory_space<vmem>>, vector<2x32xf32>
    tpu.vector_store %arg15[%c14_215, %c0_216], %553 {strides = array<i32>} : memref<18x32xf32, #tpu.memory_space<vmem>>, vector<2x32xf32>,
    %555 = vector.extract_strided_slice %552 {offsets = [2, 0], sizes = [2, 32], strides = [1, 1]} : vector<4x32xf32> to vector<2x32xf32>
    %c2_217 = arith.constant 2 : index
    %c0_218 = arith.constant 0 : index
    %556 = vector.load %arg16[%c2_217, %c0_218] : memref<18x32xf32, #tpu.memory_space<vmem>>, vector<2x32xf32>
    tpu.vector_store %arg16[%c2_217, %c0_218], %555 {strides = array<i32>} : memref<18x32xf32, #tpu.memory_space<vmem>>, vector<2x32xf32>,
    %c16_219 = arith.constant 16 : index
    %c0_220 = arith.constant 0 : index
    %557 = vector.load %arg13[%c16_219, %c0_220] : memref<18x128xf32, #tpu.memory_space<vmem>>, vector<2x128xf32>
    %c0_221 = arith.constant 0 : index
    %c0_222 = arith.constant 0 : index
    %558 = vector.load %arg14[%c0_221, %c0_222] : memref<18x128xf32, #tpu.memory_space<vmem>>, vector<2x128xf32>
    %559 = tpu.concatenate %557, %558 in 0 : vector<2x128xf32>, vector<2x128xf32> -> vector<4x128xf32>
    %560 = vector.broadcast %8 : vector<4x1xf32> to vector<4x32xf32>
    %561 = arith.mulf %552, %560 : vector<4x32xf32>
    %562 = vector.broadcast %10 : vector<4x1xf32> to vector<4x32xf32>
    %563 = arith.mulf %552, %562 : vector<4x32xf32>
    %564 = tpu.concatenate %561, %563 in 1 : vector<4x32xf32>, vector<4x32xf32> -> vector<4x64xf32>
    %cst_223 = arith.constant dense<0.000000e+00> : vector<4x128xf32>
    %565 = tpu.matmul %564, %322, %cst_223 {dimension_numbers = #tpu.dot_dimension_numbers<[1], [0], [0], [1], [0, 0, 1, 1], [], []>} : vector<4x64xf32>, vector<64x128xf32>, vector<4x128xf32> -> vector<4x128xf32>
    %566 = arith.addf %559, %565 : vector<4x128xf32>
    %567 = arith.negf %566 : vector<4x128xf32>
    %568 = math.exp %567 : vector<4x128xf32>
    %cst_224 = arith.constant 1.000000e+00 : f32
    %569 = vector.broadcast %cst_224 : f32 to vector<4x128xf32>
    %570 = arith.addf %569, %568 : vector<4x128xf32>
    %571 = arith.divf %569, %570 : vector<4x128xf32>
    %572 = vector.extract_strided_slice %571 {offsets = [0, 0], sizes = [4, 32], strides = [1, 1]} : vector<4x128xf32> to vector<4x32xf32>
    %573 = vector.extract_strided_slice %571 {offsets = [0, 32], sizes = [4, 32], strides = [1, 1]} : vector<4x128xf32> to vector<4x32xf32>
    %574 = vector.extract_strided_slice %571 {offsets = [0, 96], sizes = [4, 32], strides = [1, 1]} : vector<4x128xf32> to vector<4x32xf32>
    %575 = vector.extract_strided_slice %566 {offsets = [0, 64], sizes = [4, 32], strides = [1, 1]} : vector<4x128xf32> to vector<4x32xf32>
    %576 = math.tanh %575 : vector<4x32xf32>
    %577 = arith.mulf %573, %550 : vector<4x32xf32>
    %578 = arith.mulf %572, %576 : vector<4x32xf32>
    %579 = arith.addf %577, %578 : vector<4x32xf32>
    %580 = math.tanh %579 : vector<4x32xf32>
    %581 = arith.mulf %574, %580 : vector<4x32xf32>
    %582 = vector.extract_strided_slice %581 {offsets = [0, 0], sizes = [2, 32], strides = [1, 1]} : vector<4x32xf32> to vector<2x32xf32>
    %c16_225 = arith.constant 16 : index
    %c0_226 = arith.constant 0 : index
    %583 = vector.load %arg15[%c16_225, %c0_226] : memref<18x32xf32, #tpu.memory_space<vmem>>, vector<2x32xf32>
    tpu.vector_store %arg15[%c16_225, %c0_226], %582 {strides = array<i32>} : memref<18x32xf32, #tpu.memory_space<vmem>>, vector<2x32xf32>,
    %584 = vector.extract_strided_slice %581 {offsets = [2, 0], sizes = [2, 32], strides = [1, 1]} : vector<4x32xf32> to vector<2x32xf32>
    %c0_227 = arith.constant 0 : index
    %c0_228 = arith.constant 0 : index
    %585 = vector.load %arg16[%c0_227, %c0_228] : memref<18x32xf32, #tpu.memory_space<vmem>>, vector<2x32xf32>
    tpu.vector_store %arg16[%c0_227, %c0_228], %584 {strides = array<i32>} : memref<18x32xf32, #tpu.memory_space<vmem>>, vector<2x32xf32>,
    %c0_229 = arith.constant 0 : index
    %c0_230 = arith.constant 0 : index
    %586 = vector.load %arg15[%c0_229, %c0_230] : memref<18x32xf32, #tpu.memory_space<vmem>>, vector<18x32xf32>
    %c0_231 = arith.constant 0 : index
    %c0_232 = arith.constant 0 : index
    %587 = vector.load %arg16[%c0_231, %c0_232] : memref<18x32xf32, #tpu.memory_space<vmem>>, vector<18x32xf32>
    %588 = arith.addf %586, %587 : vector<18x32xf32>
    %c0_233 = arith.constant 0 : index
    %c0_234 = arith.constant 0 : index
    %589 = vector.load %arg8[%c0_233, %c0_234] : memref<32x16xf32, #tpu.memory_space<vmem>>, vector<32x16xf32>
    %cst_235 = arith.constant dense<0.000000e+00> : vector<18x16xf32>
    %590 = tpu.matmul %588, %589, %cst_235 {dimension_numbers = #tpu.dot_dimension_numbers<[1], [0], [0], [1], [0, 0, 1, 1], [], []>} : vector<18x32xf32>, vector<32x16xf32>, vector<18x16xf32> -> vector<18x16xf32>
    %c0_236 = arith.constant 0 : index
    %c0_237 = arith.constant 0 : index
    %591 = vector.load %arg9[%c0_236, %c0_237] : memref<1x16xf32, #tpu.memory_space<vmem>>, vector<1x16xf32>
    %592 = vector.broadcast %591 : vector<1x16xf32> to vector<18x16xf32>
    %593 = arith.addf %590, %592 : vector<18x16xf32>
    %c0_238 = arith.constant 0 : index
    %c0_239 = arith.constant 0 : index
    %594 = vector.load %arg10[%c0_238, %c0_239] : memref<18x16xf32, #tpu.memory_space<vmem>>, vector<18x16xf32>
    %595 = arith.subf %593, %594 : vector<18x16xf32>
    %c0_240 = arith.constant 0 : index
    %c0_241 = arith.constant 0 : index
    %596 = vector.load %arg11[%c0_240, %c0_241] : memref<18x1xf32, #tpu.memory_space<vmem>>, vector<18x1xf32>
    %597 = vector.broadcast %596 : vector<18x1xf32> to vector<18x16xf32>
    %598 = arith.mulf %595, %597 : vector<18x16xf32>
    %599 = arith.mulf %598, %598 : vector<18x16xf32>
    %600 = vector.shape_cast %599 : vector<18x16xf32> to vector<1x18x16xf32>
    %cst_242 = arith.constant dense<0.000000e+00> : vector<1xf32>
    %601 = vector.multi_reduction <add>, %600, %cst_242 [1, 2] : vector<1x18x16xf32> to vector<1xf32>
    %602 = vector.shape_cast %601 : vector<1xf32> to vector<1x1x1xf32>
    %603 = vector.extract %602[0, 0, 0] : f32 from vector<1x1x1xf32>
    %cst_243 = arith.constant 0.00347222225 : f32
    %604 = arith.mulf %603, %cst_243 : f32
    %605 = vector.broadcast %604 : f32 to vector<1x1xf32>
    %c0_244 = arith.constant 0 : index
    %c0_245 = arith.constant 0 : index
    %606 = vector.load %arg12[%c0_244, %c0_245] : memref<1x1xf32, #tpu.memory_space<vmem>>, vector<1x1xf32>
    tpu.vector_store %arg12[%c0_244, %c0_245], %605 {strides = array<i32>} : memref<1x1xf32, #tpu.memory_space<vmem>>, vector<1x1xf32>,
    return
  }
  func.func @transform_0(%arg0: i32) -> (i32, i32) {
    %c0_i32 = arith.constant 0 : i32
    %c0_i32_0 = arith.constant 0 : i32
    %c0_i32_1 = arith.constant 0 : i32
    return %c0_i32, %c0_i32_0 : i32, i32
  }
  func.func @transform_1(%arg0: i32) -> (i32, i32, i32) {
    %c0_i32 = arith.constant 0 : i32
    %c0_i32_0 = arith.constant 0 : i32
    %c0_i32_1 = arith.constant 0 : i32
    %c0_i32_2 = arith.constant 0 : i32
    return %c0_i32, %c0_i32_0, %c0_i32_1 : i32, i32, i32
  }
  func.func @transform_2(%arg0: i32) -> (i32, i32) {
    %c0_i32 = arith.constant 0 : i32
    %c0_i32_0 = arith.constant 0 : i32
    %c0_i32_1 = arith.constant 0 : i32
    return %c0_i32, %c0_i32_0 : i32, i32
  }
  func.func @transform_3(%arg0: i32) -> (i32, i32, i32) {
    %c0_i32 = arith.constant 0 : i32
    %c0_i32_0 = arith.constant 0 : i32
    %c0_i32_1 = arith.constant 0 : i32
    %c0_i32_2 = arith.constant 0 : i32
    return %c0_i32, %c0_i32_0, %c0_i32_1 : i32, i32, i32
  }
  func.func @transform_6(%arg0: i32) -> (i32, i32, i32) {
    %c0_i32 = arith.constant 0 : i32
    %c0_i32_0 = arith.constant 0 : i32
    %c0_i32_1 = arith.constant 0 : i32
    %c0_i32_2 = arith.constant 0 : i32
    return %c0_i32, %c0_i32_0, %c0_i32_1 : i32, i32, i32
  }
  func.func @transform_7(%arg0: i32) -> (i32, i32) {
    %c0_i32 = arith.constant 0 : i32
    %c0_i32_0 = arith.constant 0 : i32
    %c0_i32_1 = arith.constant 0 : i32
    return %c0_i32, %c0_i32_0 : i32, i32
  }
  func.func @transform_8(%arg0: i32) -> (i32, i32) {
    %c0_i32 = arith.constant 0 : i32
    %c0_i32_0 = arith.constant 0 : i32
    %c0_i32_1 = arith.constant 0 : i32
    return %c0_i32, %c0_i32_0 : i32, i32
  }
  func.func @transform_9(%arg0: i32) -> (i32, i32) {
    %c0_i32 = arith.constant 0 : i32
    %c0_i32_0 = arith.constant 0 : i32
    %c0_i32_1 = arith.constant 0 : i32
    return %c0_i32, %c0_i32_0 : i32, i32
  }
  func.func @transform_10(%arg0: i32) -> (i32, i32) {
    %c0_i32 = arith.constant 0 : i32
    %c0_i32_0 = arith.constant 0 : i32
    %c0_i32_1 = arith.constant 0 : i32
    return %c0_i32, %c0_i32_0 : i32, i32
  }
  func.func @transform_11(%arg0: i32) -> (i32, i32) {
    %c0_i32 = arith.constant 0 : i32
    %c0_i32_0 = arith.constant 0 : i32
    %c0_i32_1 = arith.constant 0 : i32
    return %c0_i32, %c0_i32_0 : i32, i32
  }
}

</mosaic_0001>

<bundles_post_ra>
// kernel: spec_base_forward.1
= control target key start
LH: loop header
LB: loop body
LE: loop exit
PB: predicated region body
PF: predicated region fallthrough
CT: control target
= control target key end

     0   :  { %16 = vsyncpa [#allocation10], 0  ;;  %s5201_s0 = inlined_call_operand.vmem [shape: f32[18,16], index: 0, kind: input, shape index: {}]   ;;  %s5202_s1 = inlined_call_operand.vmem [shape: f32[2,16,128], index: 1, kind: input, shape index: {}]   ;;  %s5203_s2 = inlined_call_operand.vmem [shape: f32[64,128], index: 2, kind: input, shape index: {}]   ;;  %s5204_s3 = inlined_call_operand.vmem [shape: f32[2,1,128], index: 3, kind: input, shape index: {}]   ;;  %s5205_s4 = inlined_call_operand.vmem [shape: f32[4,32,128], index: 4, kind: input, shape index: {}]   ;;  %s5206_s5 = inlined_call_operand.vmem [shape: f32[64,128], index: 5, kind: input, shape index: {}]   ;;  %s5207_s6 = inlined_call_operand.vmem [shape: f32[2,1,128], index: 6, kind: input, shape index: {}]   ;;  %s5208_s7 = inlined_call_operand.vmem [shape: f32[32,16], index: 7, kind: input, shape index: {}]   ;;  %s5209_s8 = inlined_call_operand.vmem [shape: f32[1,16], index: 8, kind: input, shape index: {}]   ;;  %s5210_s9 = inlined_call_operand.vmem [shape: f32[18,16], index: 9, kind: input, shape index: {}]   ;;  %s5211_s10 = inlined_call_operand.vmem [shape: f32[18,1], index: 10, kind: input, shape index: {}]   ;;  %s5212_s11 = inlined_call_operand.hbm [shape: f32[1,1], index: 11, kind: output, shape index: {}]  }
   0x1   :  { %v4378_v0 = vld [vmem:[%s5205_s4] sm:$0xff]  ;;  %v4383_v1 = vld [vmem:[%s5205_s4 + $0x8] sm:$0xff]  ;;  %v4388_v2 = vld [vmem:[%s5205_s4 + $0x10] sm:$0xff] }
   0x2   :  { %v4393_v3 = vld [vmem:[%s5205_s4 + $0x18] sm:$0xff]  ;;  %v4398_v4 = vld [vmem:[%s5205_s4 + $0x20] sm:$0xff]  ;;  %v4403_v5 = vld [vmem:[%s5205_s4 + $0x28] sm:$0xff] }
   0x3   :  { %v4408_v6 = vld [vmem:[%s5205_s4 + $0x30] sm:$0xff]  ;;  %v4413_v7 = vld [vmem:[%s5205_s4 + $0x38] sm:$0xff]  ;;  %v4418_v8 = vld [vmem:[%s5205_s4 + $0x40] sm:$0xff] }
   0x4   :  { %v4423_v9 = vld [vmem:[%s5205_s4 + $0x48] sm:$0xff]  ;;  %v4428_v10 = vld [vmem:[%s5205_s4 + $0x50] sm:$0xff]  ;;  %v4433_v11 = vld [vmem:[%s5205_s4 + $0x58] sm:$0xff] }
   0x5   :  { %v4438_v12 = vld [vmem:[%s5205_s4 + $0x60] sm:$0xff]  ;;  %v4443_v13 = vld [vmem:[%s5205_s4 + $0x68] sm:$0xff]  ;;  %v4448_v14 = vld [vmem:[%s5205_s4 + $0x70] sm:$0xff] }
   0x6   :  { %v4453_v15 = vld [vmem:[%s5205_s4 + $0x78] sm:$0xff] }
   0x7   :  { %106 = vsyncadd [#allocation8], 2048  ;;  %v4458_v16 = vld [vmem:[%s5206_s5] sm:$0xff]  ;;  %v4463_v17 = vld [vmem:[%s5206_s5 + $0x8] sm:$0xff] }
   0x8   :  { %v4468_v18 = vld [vmem:[%s5206_s5 + $0x10] sm:$0xff]  ;;  %v4473_v19 = vld [vmem:[%s5206_s5 + $0x18] sm:$0xff]  ;;  %v4478_v20 = vld [vmem:[%s5206_s5 + $0x20] sm:$0xff] }
   0x9   :  { %v4483_v21 = vld [vmem:[%s5206_s5 + $0x28] sm:$0xff]  ;;  %v4488_v22 = vld [vmem:[%s5206_s5 + $0x30] sm:$0xff]  ;;  %v4493_v23 = vld [vmem:[%s5206_s5 + $0x38] sm:$0xff] }
   0xa   :  { %163 = vsyncadd [#allocation8 + $0x1], 1024  ;;  %v173_v24 = vld [vmem:[%s5202_s1] sm:$0xff]  ;;  %v174_v25 = vld [vmem:[%s5202_s1 + $0x8] sm:$0xff]  ;;  %v164_v26 = vlaneseq  ;;  %v4308_v27 = vmov 0.0|0.0   ;;  %vm4309_vm0 = vmmov 0  }
   0xb   :  { %3873 = vmatprep.subr.bf16.mxu0 %v4308_v27  ;;  %3876 = vmatprep.subr.bf16.mxu1 %v4308_v27  ;;  %v3874_v28 = vpack.c.bf16 %v174_v25, %v173_v24  ;;  %v3149_v29 = vld [vmem:[%s5202_s1 + $0x10] sm:$0xff]  ;;  %v3150_v30 = vld [vmem:[%s5202_s1 + $0x18] sm:$0xff]  ;;  %v4310_v32 = vmov 0.0   ;;  %v369_v33 = vld [vmem:[%s5203_s2] sm:$0xff]  ;;  %vm182_vm1 = vcmask 130048   ;;  %vm386_vm3 = vcmask 261120  }
   0xc   :  { %v3877_v31 = vpack.c.bf16 %v3150_v30, %v3149_v29  ;;  %3424 = vmatprep.mubr.msk.f32.mxu0 %vm4309_vm0, %v4310_v32  ;;  %3437 = vmatprep.mubr.msk.f32.mxu1 %vm4309_vm0, %v4310_v32  ;;  %v370_v34 = vld [vmem:[%s5203_s2 + $0x8] sm:$0xff]  ;;  %v165_v35 = vshrl.u32 %v164_v26, 7  ;;  %v170_v36 = vld [vmem:[%s5201_s0] sm:$0xff]  ;;  %v371_v38 = vld [vmem:[%s5203_s2 + $0x10] sm:$0xff]  ;;  %vm388_vm4 = vcmask 523264   ;;  %vm382_vm5 = vcmask 1041408  }
   0xd   :  { %3875 = vmatpush3.bf16.msra.mxu0 %v3874_v28  ;;  %v4523_v37 = vpack.c.bf16 %v370_v34, %v369_v33  ;;  %v372_v39 = vld [vmem:[%s5203_s2 + $0x18] sm:$0xff]  ;;  %v171_v40 = vld [vmem:[%s5201_s0 + $0x8] sm:$0xff]  ;;  %v373_v42 = vld [vmem:[%s5203_s2 + $0x20] sm:$0xff]  ;;  %s4312_s16 = smov 32   ;;  %vm491_vm6 = vcmask 254976   ;;  %vm493_vm7 = vcmask 257026  }
   0xe   :  { %3878 = vmatpush3.bf16.msra.mxu1 %v3877_v31  ;;  %3879 = vmatprep.subr.bf16.mxu0 %v4308_v27  ;;  %vm166_vm2 = vcmp.lt.s32.totalorder %v165_v35, 2  ;;  %v4542_v41 = vpack.c.bf16 %v372_v39, %v371_v38  ;;  %v374_v43 = vld [vmem:[%s5203_s2 + $0x28] sm:$0xff]  ;;  %v172_v45 = vld [vmem:[%s5201_s0 + $0x10] sm:$0x3]  ;;  %v376_v49 = vld [vmem:[%s5203_s2 + $0x38] sm:$0xff] }
   0xf   :  { %3891 = vmatprep.subr.bf16.mxu1 %v4308_v27  ;;  %v4552_v44 = vsel %vm166_vm2, 1.0, %v4310_v32  ;;  %v4566_v46 = vpack.c.bf16 %v374_v43, %v373_v42  ;;  %v375_v48 = vld [vmem:[%s5203_s2 + $0x30] sm:$0xff]  ;;  %v3152_v54 = vld [vmem:[%s5204_s3 + $0x1] ss:$0 sm:$0xff]  ;;  %v3145_v55 = vld [vmem:[%s5204_s3] ss:$0 sm:$0xff] }
  0x10   :  { %3425 = vmatmul.mubr.msk.f32.vlgmr.msra.gmra.mrb[0].mxu0 %vm182_vm1, %v170_v36  ;;  %v4569_v47 = vsub.f32 1.0, %v4552_v44  ;;  %v4585_v50 = vpack.c.bf16 %v376_v49, %v375_v48  ;;  %v384_v51 = vmul.f32 0.0, %v4552_v44  ;;  %s4311_s3 = smov 64  }
  0x11   :  { %3438 = vmatmul.mubr.msk.f32.vlgmr.msra.gmra.mrb[0].mxu1 %vm182_vm1, %v170_v36  ;;  %3427 = vmatprep.mubr.msk.f32.mxu0 %vm4309_vm0, %v4310_v32 }
  0x12   :  { %3440 = vmatprep.mubr.msk.f32.mxu1 %vm4309_vm0, %v4310_v32  ;;  %3881 = vmatpush3.bf16.msra.mxu0 %v4523_v37  ;;  %v385_v52 = vmul.f32 0.0, %v4569_v47 }
  0x13   :  { %3882 = vmatprep.subr.bf16.mxu0 %v4308_v27  ;;  %3893 = vmatpush3.bf16.msra.mxu1 %v4523_v37 }
  0x14   :  { %3428 = vmatmul.mubr.msk.f32.gmra.mrb[2].mxu0 %vm182_vm1, %v171_v40  ;;  %3894 = vmatprep.subr.bf16.mxu1 %v4308_v27  ;;  %v4596_v53 = vsel %vm386_vm3, %v384_v51, %v385_v52 }
  0x15   :  { %3441 = vmatmul.mubr.msk.f32.gmra.mrb[2].mxu1 %vm182_vm1, %v171_v40  ;;  %3430 = vmatprep.mubr.msk.f32.mxu0 %vm4309_vm0, %v4310_v32 }
  0x16   :  { %3443 = vmatprep.mubr.msk.f32.mxu1 %vm4309_vm0, %v4310_v32  ;;  %3884 = vmatpush3.bf16.msra.mxu0 %v4542_v41 }
  0x17   :  { %3885 = vmatprep.subr.bf16.mxu0 %v4308_v27  ;;  %3896 = vmatpush3.bf16.msra.mxu1 %v4542_v41 }
  0x18   :  { %3431 = vmatmul.mubr.msk.f32.gmra.mrb[4].mxu0 %vm182_vm1, %v172_v45  ;;  %3897 = vmatprep.subr.bf16.mxu1 %v4308_v27 }
  0x19   :  { %3444 = vmatmul.mubr.msk.f32.gmra.mrb[4].mxu1 %vm182_vm1, %v172_v45  ;;  %3462 = vmatprep.mubr.msk.f32.mxu0 %vm4309_vm0, %v4310_v32 }
  0x1a   :  { %3887 = vmatpush3.bf16.msra.mxu0 %v4566_v46  ;;  %3481 = vmatprep.mubr.msk.f32.mxu1 %vm4309_vm0, %v4310_v32 }
  0x1b   :  { %3888 = vmatprep.subr.bf16.mxu0 %v4308_v27  ;;  %3899 = vmatpush3.bf16.msra.mxu1 %v4566_v46 }
  0x1c   :  { %3900 = vmatprep.subr.bf16.mxu1 %v4308_v27 }
  0x1e   :  { %3890 = vmatpush3.bf16.msra.mxu0 %v4585_v50 }
  0x1f   :  { %3902 = vmatpush3.bf16.msra.mxu1 %v4585_v50  ;;  %3903 = vmatprep.subr.bf16.mxu0 %v4308_v27 }
  0x20   :  { %3915 = vmatprep.subr.bf16.mxu1 %v4308_v27 }
  0x21   :  { %3463 = vmatmul.mubr.msk.f32.vlgmr.msra.gmra.mrb[6].mxu0 %vm388_vm4, %v4596_v53 }
  0x22   :  { %3905 = vmatpush3.bf16.msra.mxu0 %v4523_v37  ;;  %3500 = vmatprep.mubr.msk.f32.mxu0 %vm4309_vm0, %v4310_v32 }
  0x23   :  { %3906 = vmatprep.subr.bf16.mxu0 %v4308_v27 }
  0x26   :  { %3908 = vmatpush3.bf16.msra.mxu0 %v4542_v41 }
  0x27   :  { %3909 = vmatprep.subr.bf16.mxu0 %v4308_v27 }
  0x2a   :  { %3911 = vmatpush3.bf16.msra.mxu0 %v4566_v46 }
  0x2b   :  { %3912 = vmatprep.subr.bf16.mxu0 %v4308_v27 }
  0x2e   :  { %3914 = vmatpush3.bf16.msra.mxu0 %v4585_v50 }
  0x2f   :  { %3927 = vmatprep.subr.bf16.mxu0 %v4308_v27 }
  0xe3   :  { %v258_v56 = vpop.f32.mrb[0].mxu0 }
  0xe4   :  { %v352_v57 = vpop.f32.mrb[0].mxu1  ;;  %v259_v58 = vadd.f32 %v3145_v55, %v258_v56  ;;  %v3426_v59 = vpop.f32.mrb[1].mxu0 }
  0xe5   :  { %v353_v60 = vadd.f32 %v3152_v54, %v352_v57  ;;  %v3439_v61 = vpop.f32.mrb[1].mxu1 }
  0xe6   :  { %272 = vst [vmem:[#allocation2] sm:$0xff] %v259_v58 }
  0xe7   :  { %366 = vst [vmem:[#allocation3] sm:$0xff] %v353_v60  ;;  %v263_v62 = vpop.f32.mrb[2].mxu0 }
  0xe8   :  { %v264_v63 = vadd.f32 %v3145_v55, %v263_v62  ;;  %v357_v24 = vpop.f32.mrb[2].mxu1  ;;  %v3429_v25 = vpop.f32.mrb[3].mxu0 }
  0xe9   :  { %v358_v26 = vadd.f32 %v3152_v54, %v357_v24  ;;  %v3442_v28 = vpop.f32.mrb[3].mxu1 }
  0xea   :  { %273 = vst [vmem:[#allocation2 + $0x8] sm:$0xff] %v264_v63 }
  0xeb   :  { %367 = vst [vmem:[#allocation3 + $0x8] sm:$0xff] %v358_v26  ;;  %v268_v29 = vpop.f32.mrb[4].mxu0 }
  0xec   :  { %v269_v30 = vadd.f32 %v3145_v55, %v268_v29  ;;  %v362_v31 = vpop.f32.mrb[4].mxu1  ;;  %v3432_v33 = vpop.f32.mrb[5].mxu0 }
  0xed   :  { %v363_v34 = vadd.f32 %v3152_v54, %v362_v31  ;;  %v3445_v35 = vpop.f32.mrb[5].mxu1  ;;  %v377_v42 = vld [vmem:[#allocation2] sm:$0x3]  ;;  %v495_v31 = vld [vmem:[#allocation2 + $0x2] sm:$0x3] }
  0xee   :  { %274 = vst [vmem:[#allocation2 + $0x10] sm:$0x3] %v269_v30 }
  0xef   :  { %368 = vst [vmem:[#allocation3 + $0x10] sm:$0x3] %v363_v34 }
  0xf2   :  { %v496_v29 = vld [vmem:[#allocation3 + $0xe] sm:$0x3] }
  0xf3   :  { %v498_v30 = vrot.slane %v496_v29, 6 }
  0xf4   :  { %v458_v36 = vpop.f32.mrb[6].mxu0 }
  0xf5   :  { %v3464_v38 = vpop.f32.mrb[7].mxu0  ;;  %v500_v33 = vsel %vm382_vm5, %v495_v31, %v498_v30 }
  0xf6   :  { %v378_v39 = vld [vmem:[#allocation3 + $0x10] sm:$0x3] }
  0xf7   :  { %v380_v40 = vrot.slane %v378_v39, 6 }
  0xf9   :  { %v383_v43 = vsel %vm382_vm5, %v377_v42, %v380_v40 }
  0xfa   :  { %v462_v45 = vadd.f32 %v458_v36, %v383_v43 }
  0xfc   :  { %4134 = vtanh.f32 %v462_v45  ;;  %v3157_v49 = vmul.f32 -1.442695, %v462_v45 }
  0xfe   :  { %4136 = vpow2.f32 %v3157_v49 }
 0x106   :  { %v4135_v48 = vpop.eup %4134 }
 0x107   :  { %472 = vrot.lane.b32.xlu0 %v4135_v48, %s4311_s3 }
 0x108   :  { %v4137_v51 = vpop.eup %4136 }
 0x109   :  { %v466_v52 = vadd.f32 1.0, %v4137_v51 }
 0x10b   :  { %4138 = vrcp.f32 %v466_v52 }
 0x115   :  { %v4139_v54 = vpop.eup %4138 }
 0x116   :  { %v470_v57 = vmul.f32 0.0, %v4139_v54 }
 0x179   :  { %v473_v55 = vpop.permute.xlu0 %472 }
 0x17a   :  { %v475_v56 = vmul.f32 %v4139_v54, %v473_v55 }
 0x17c   :  { %477 = vrot.lane.b32.xlu0 %v475_v56, %s4312_s16 }
 0x1ee   :  { %v478_v58 = vpop.permute.xlu0 %477 }
 0x1ef   :  { %v480_v59 = vadd.f32 %v478_v58, %v470_v57 }
 0x1f1   :  { %4140 = vtanh.f32 %v480_v59 }
 0x1fb   :  { %v4141_v60 = vpop.eup %4140 }
 0x1fc   :  { %483 = vrot.lane.b32.xlu1 %v4141_v60, %s4311_s3 }
 0x26e   :  { %v484_v61 = vpop.permute.xlu1 %483 }
 0x26f   :  { %v4623_v62 = vmul.f32 %v4139_v54, %v484_v61 }
 0x271   :  { %v502_v63 = vmul.f32 %v4623_v62, %v4569_v47  ;;  %v501_v24 = vmul.f32 %v4552_v44, %v4623_v62 }
 0x273   :  { %508 = vrot.lane.b32.xlu0 %v502_v63, %s4311_s3  ;;  %504 = vrot.lane.b32.xlu1 %v501_v24, %s4312_s16  ;;  %v617_v63 = vld [vmem:[#allocation3 + $0xc] sm:$0x3] }
 0x274   :  { %v619_v24 = vrot.slane %v617_v63, 6 }
 0x2e5   :  { %v509_v25 = vpop.permute.xlu0 %508  ;;  %v505_v26 = vpop.permute.xlu1 %504 }
 0x2e6   :  { %v511_v28 = vsel %vm386_vm3, %v505_v26, %v509_v25  ;;  %v616_v25 = vld [vmem:[#allocation2 + $0x4] sm:$0x3] }
 0x2e7   :  { %3482 = vmatmul.mubr.msk.f32.vlgmr.msra.gmra.mrb[6].mxu1 %vm388_vm4, %v511_v28  ;;  %v621_v26 = vsel %vm382_vm5, %v616_v25, %v619_v24 }
 0x2e8   :  { %3917 = vmatpush3.bf16.msra.mxu1 %v4523_v37  ;;  %3519 = vmatprep.mubr.msk.f32.mxu1 %vm4309_vm0, %v4310_v32 }
 0x2e9   :  { %3918 = vmatprep.subr.bf16.mxu1 %v4308_v27 }
 0x2ec   :  { %3920 = vmatpush3.bf16.msra.mxu1 %v4542_v41 }
 0x2ed   :  { %3921 = vmatprep.subr.bf16.mxu1 %v4308_v27 }
 0x2f0   :  { %3923 = vmatpush3.bf16.msra.mxu1 %v4566_v46 }
 0x2f1   :  { %3924 = vmatprep.subr.bf16.mxu1 %v4308_v27 }
 0x2f4   :  { %3926 = vmatpush3.bf16.msra.mxu1 %v4585_v50 }
 0x2f5   :  { %3939 = vmatprep.subr.bf16.mxu1 %v4308_v27 }
 0x3ba   :  { %v581_v34 = vpop.f32.mrb[6].mxu1 }
 0x3bb   :  { %v585_v35 = vadd.f32 %v581_v34, %v500_v33  ;;  %v3483_v36 = vpop.f32.mrb[7].mxu1 }
 0x3bd   :  { %4142 = vtanh.f32 %v585_v35  ;;  %v3159_v39 = vmul.f32 -1.442695, %v585_v35 }
 0x3bf   :  { %4144 = vpow2.f32 %v3159_v39 }
 0x3c7   :  { %v4143_v38 = vpop.eup %4142 }
 0x3c8   :  { %595 = vrot.lane.b32.xlu1 %v4143_v38, %s4311_s3 }
 0x3c9   :  { %v4145_v40 = vpop.eup %4144 }
 0x3ca   :  { %v589_v42 = vadd.f32 1.0, %v4145_v40 }
 0x3cc   :  { %4146 = vrcp.f32 %v589_v42 }
 0x3d6   :  { %v4147_v43 = vpop.eup %4146 }
 0x3d7   :  { %v593_v49 = vmul.f32 %v4147_v43, %v480_v59 }
 0x43a   :  { %v596_v45 = vpop.permute.xlu1 %595 }
 0x43b   :  { %v598_v48 = vmul.f32 %v4147_v43, %v596_v45 }
 0x43d   :  { %600 = vrot.lane.b32.xlu0 %v598_v48, %s4312_s16 }
 0x4af   :  { %v601_v51 = vpop.permute.xlu0 %600 }
 0x4b0   :  { %v603_v52 = vadd.f32 %v601_v51, %v593_v49 }
 0x4b2   :  { %4148 = vtanh.f32 %v603_v52 }
 0x4bc   :  { %v4149_v54 = vpop.eup %4148 }
 0x4bd   :  { %606 = vrot.lane.b32.xlu1 %v4149_v54, %s4311_s3 }
 0x52f   :  { %v607_v55 = vpop.permute.xlu1 %606 }
 0x530   :  { %v4647_v56 = vmul.f32 %v4147_v43, %v607_v55 }
 0x532   :  { %v623_v57 = vmul.f32 %v4647_v56, %v4569_v47  ;;  %v622_v58 = vmul.f32 %v4552_v44, %v4647_v56 }
 0x534   :  { %629 = vrot.lane.b32.xlu1 %v623_v57, %s4311_s3  ;;  %625 = vrot.lane.b32.xlu0 %v622_v58, %s4312_s16  ;;  %v738_v58 = vld [vmem:[#allocation3 + $0xa] sm:$0x3] }
 0x5a6   :  { %v630_v59 = vpop.permute.xlu1 %629  ;;  %v626_v60 = vpop.permute.xlu0 %625 }
 0x5a7   :  { %v632_v61 = vsel %vm386_vm3, %v626_v60, %v630_v59  ;;  %v740_v59 = vrot.slane %v738_v58, 6  ;;  %v737_v60 = vld [vmem:[#allocation2 + $0x6] sm:$0x3] }
 0x5a8   :  { %3501 = vmatmul.mubr.msk.f32.vlgmr.msra.gmra.mrb[8].mxu0 %vm388_vm4, %v632_v61 }
 0x5a9   :  { %3929 = vmatpush3.bf16.msra.mxu0 %v4523_v37  ;;  %3538 = vmatprep.mubr.msk.f32.mxu0 %vm4309_vm0, %v4310_v32  ;;  %v742_v61 = vsel %vm382_vm5, %v737_v60, %v740_v59 }
 0x5aa   :  { %3930 = vmatprep.subr.bf16.mxu0 %v4308_v27 }
 0x5ad   :  { %3932 = vmatpush3.bf16.msra.mxu0 %v4542_v41 }
 0x5ae   :  { %3933 = vmatprep.subr.bf16.mxu0 %v4308_v27 }
 0x5b1   :  { %3935 = vmatpush3.bf16.msra.mxu0 %v4566_v46 }
 0x5b2   :  { %3936 = vmatprep.subr.bf16.mxu0 %v4308_v27 }
 0x5b5   :  { %3938 = vmatpush3.bf16.msra.mxu0 %v4585_v50 }
 0x5b6   :  { %3951 = vmatprep.subr.bf16.mxu0 %v4308_v27 }
 0x67b   :  { %v702_v28 = vpop.f32.mrb[8].mxu0 }
 0x67c   :  { %v706_v29 = vadd.f32 %v702_v28, %v621_v26  ;;  %v3502_v30 = vpop.f32.mrb[9].mxu0 }
 0x67e   :  { %4150 = vtanh.f32 %v706_v29  ;;  %v3161_v33 = vmul.f32 -1.442695, %v706_v29 }
 0x680   :  { %4152 = vpow2.f32 %v3161_v33 }
 0x688   :  { %v4151_v31 = vpop.eup %4150 }
 0x689   :  { %716 = vrot.lane.b32.xlu0 %v4151_v31, %s4311_s3 }
 0x68a   :  { %v4153_v34 = vpop.eup %4152 }
 0x68b   :  { %v710_v35 = vadd.f32 1.0, %v4153_v34 }
 0x68d   :  { %4154 = vrcp.f32 %v710_v35 }
 0x697   :  { %v4155_v36 = vpop.eup %4154 }
 0x698   :  { %v714_v40 = vmul.f32 %v4155_v36, %v603_v52 }
 0x6fb   :  { %v717_v38 = vpop.permute.xlu0 %716 }
 0x6fc   :  { %v719_v39 = vmul.f32 %v4155_v36, %v717_v38 }
 0x6fe   :  { %721 = vrot.lane.b32.xlu1 %v719_v39, %s4312_s16 }
 0x770   :  { %v722_v42 = vpop.permute.xlu1 %721 }
 0x771   :  { %v724_v43 = vadd.f32 %v722_v42, %v714_v40 }
 0x773   :  { %4156 = vtanh.f32 %v724_v43 }
 0x77d   :  { %v4157_v45 = vpop.eup %4156 }
 0x77e   :  { %727 = vrot.lane.b32.xlu0 %v4157_v45, %s4311_s3 }
 0x7f0   :  { %v728_v48 = vpop.permute.xlu0 %727 }
 0x7f1   :  { %v4671_v49 = vmul.f32 %v4155_v36, %v728_v48 }
 0x7f3   :  { %v744_v51 = vmul.f32 %v4671_v49, %v4569_v47  ;;  %v743_v54 = vmul.f32 %v4552_v44, %v4671_v49 }
 0x7f5   :  { %750 = vrot.lane.b32.xlu0 %v744_v51, %s4311_s3  ;;  %746 = vrot.lane.b32.xlu1 %v743_v54, %s4312_s16 }
 0x867   :  { %v751_v52 = vpop.permute.xlu0 %750  ;;  %v747_v55 = vpop.permute.xlu1 %746 }
 0x868   :  { %v753_v57 = vsel %vm386_vm3, %v747_v55, %v751_v52  ;;  %v859_v52 = vld [vmem:[#allocation3 + $0x8] sm:$0x3] }
 0x869   :  { %3520 = vmatmul.mubr.msk.f32.vlgmr.msra.gmra.mrb[8].mxu1 %vm388_vm4, %v753_v57  ;;  %v861_v55 = vrot.slane %v859_v52, 6  ;;  %v858_v57 = vld [vmem:[#allocation2 + $0x8] sm:$0x3] }
 0x86a   :  { %3941 = vmatpush3.bf16.msra.mxu1 %v4523_v37  ;;  %3557 = vmatprep.mubr.msk.f32.mxu1 %vm4309_vm0, %v4310_v32 }
 0x86b   :  { %3942 = vmatprep.subr.bf16.mxu1 %v4308_v27  ;;  %v863_v58 = vsel %vm382_vm5, %v858_v57, %v861_v55 }
 0x86e   :  { %3944 = vmatpush3.bf16.msra.mxu1 %v4542_v41 }
 0x86f   :  { %3945 = vmatprep.subr.bf16.mxu1 %v4308_v27 }
 0x872   :  { %3947 = vmatpush3.bf16.msra.mxu1 %v4566_v46 }
 0x873   :  { %3948 = vmatprep.subr.bf16.mxu1 %v4308_v27 }
 0x876   :  { %3950 = vmatpush3.bf16.msra.mxu1 %v4585_v50 }
 0x877   :  { %3963 = vmatprep.subr.bf16.mxu1 %v4308_v27 }
 0x93c   :  { %v823_v63 = vpop.f32.mrb[8].mxu1 }
 0x93d   :  { %v827_v24 = vadd.f32 %v823_v63, %v742_v61  ;;  %v3521_v25 = vpop.f32.mrb[9].mxu1 }
 0x93f   :  { %4158 = vtanh.f32 %v827_v24  ;;  %v3163_v28 = vmul.f32 -1.442695, %v827_v24 }
 0x941   :  { %4160 = vpow2.f32 %v3163_v28 }
 0x949   :  { %v4159_v26 = vpop.eup %4158 }
 0x94a   :  { %837 = vrot.lane.b32.xlu1 %v4159_v26, %s4311_s3 }
 0x94b   :  { %v4161_v29 = vpop.eup %4160 }
 0x94c   :  { %v831_v30 = vadd.f32 1.0, %v4161_v29 }
 0x94e   :  { %4162 = vrcp.f32 %v831_v30 }
 0x958   :  { %v4163_v31 = vpop.eup %4162 }
 0x959   :  { %v835_v35 = vmul.f32 %v4163_v31, %v724_v43 }
 0x9bc   :  { %v838_v33 = vpop.permute.xlu1 %837 }
 0x9bd   :  { %v840_v34 = vmul.f32 %v4163_v31, %v838_v33 }
 0x9bf   :  { %842 = vrot.lane.b32.xlu0 %v840_v34, %s4312_s16 }
 0xa31   :  { %v843_v36 = vpop.permute.xlu0 %842 }
 0xa32   :  { %v845_v38 = vadd.f32 %v843_v36, %v835_v35 }
 0xa34   :  { %4164 = vtanh.f32 %v845_v38 }
 0xa3e   :  { %v4165_v39 = vpop.eup %4164 }
 0xa3f   :  { %848 = vrot.lane.b32.xlu1 %v4165_v39, %s4311_s3 }
 0xab1   :  { %v849_v40 = vpop.permute.xlu1 %848 }
 0xab2   :  { %v4695_v42 = vmul.f32 %v4163_v31, %v849_v40 }
 0xab4   :  { %v865_v45 = vmul.f32 %v4695_v42, %v4569_v47  ;;  %v864_v48 = vmul.f32 %v4552_v44, %v4695_v42 }
 0xab6   :  { %871 = vrot.lane.b32.xlu1 %v865_v45, %s4311_s3  ;;  %867 = vrot.lane.b32.xlu0 %v864_v48, %s4312_s16 }
 0xb28   :  { %v872_v43 = vpop.permute.xlu1 %871  ;;  %v868_v51 = vpop.permute.xlu0 %867 }
 0xb29   :  { %v874_v54 = vsel %vm386_vm3, %v868_v51, %v872_v43  ;;  %v980_v51 = vld [vmem:[#allocation3 + $0x6] sm:$0x3] }
 0xb2a   :  { %3539 = vmatmul.mubr.msk.f32.vlgmr.msra.gmra.mrb[10].mxu0 %vm388_vm4, %v874_v54  ;;  %v979_v54 = vld [vmem:[#allocation2 + $0xa] sm:$0x3]  ;;  %v982_v52 = vrot.slane %v980_v51, 6  ;;  %v1100_v51 = vld [vmem:[#allocation2 + $0xc] sm:$0x3] }
 0xb2b   :  { %3953 = vmatpush3.bf16.msra.mxu0 %v4523_v37  ;;  %3576 = vmatprep.mubr.msk.f32.mxu0 %vm4309_vm0, %v4310_v32 }
 0xb2c   :  { %3954 = vmatprep.subr.bf16.mxu0 %v4308_v27  ;;  %v984_v55 = vsel %vm382_vm5, %v979_v54, %v982_v52 }
 0xb2f   :  { %3956 = vmatpush3.bf16.msra.mxu0 %v4542_v41 }
 0xb30   :  { %3957 = vmatprep.subr.bf16.mxu0 %v4308_v27 }
 0xb33   :  { %3959 = vmatpush3.bf16.msra.mxu0 %v4566_v46 }
 0xb34   :  { %3960 = vmatprep.subr.bf16.mxu0 %v4308_v27 }
 0xb37   :  { %3962 = vmatpush3.bf16.msra.mxu0 %v4585_v50 }
 0xb38   :  { %3975 = vmatprep.subr.bf16.mxu0 %v4308_v27 }
 0xbfd   :  { %v944_v59 = vpop.f32.mrb[10].mxu0 }
 0xbfe   :  { %v948_v60 = vadd.f32 %v944_v59, %v863_v58  ;;  %v3540_v61 = vpop.f32.mrb[11].mxu0 }
 0xc00   :  { %4166 = vtanh.f32 %v948_v60  ;;  %v3165_v24 = vmul.f32 -1.442695, %v948_v60 }
 0xc02   :  { %4168 = vpow2.f32 %v3165_v24 }
 0xc0a   :  { %v4167_v63 = vpop.eup %4166 }
 0xc0b   :  { %958 = vrot.lane.b32.xlu0 %v4167_v63, %s4311_s3 }
 0xc0c   :  { %v4169_v25 = vpop.eup %4168 }
 0xc0d   :  { %v952_v26 = vadd.f32 1.0, %v4169_v25 }
 0xc0f   :  { %4170 = vrcp.f32 %v952_v26 }
 0xc19   :  { %v4171_v28 = vpop.eup %4170 }
 0xc1a   :  { %v956_v31 = vmul.f32 %v4171_v28, %v845_v38 }
 0xc7d   :  { %v959_v29 = vpop.permute.xlu0 %958 }
 0xc7e   :  { %v961_v30 = vmul.f32 %v4171_v28, %v959_v29 }
 0xc80   :  { %963 = vrot.lane.b32.xlu1 %v961_v30, %s4312_s16 }
 0xcf2   :  { %v964_v33 = vpop.permute.xlu1 %963 }
 0xcf3   :  { %v966_v34 = vadd.f32 %v964_v33, %v956_v31 }
 0xcf5   :  { %4172 = vtanh.f32 %v966_v34 }
 0xcff   :  { %v4173_v35 = vpop.eup %4172 }
 0xd00   :  { %969 = vrot.lane.b32.xlu0 %v4173_v35, %s4311_s3 }
 0xd72   :  { %v970_v36 = vpop.permute.xlu0 %969 }
 0xd73   :  { %v4719_v39 = vmul.f32 %v4171_v28, %v970_v36 }
 0xd75   :  { %v986_v40 = vmul.f32 %v4719_v39, %v4569_v47  ;;  %v985_v45 = vmul.f32 %v4552_v44, %v4719_v39 }
 0xd77   :  { %992 = vrot.lane.b32.xlu0 %v986_v40, %s4311_s3  ;;  %988 = vrot.lane.b32.xlu1 %v985_v45, %s4312_s16 }
 0xde9   :  { %v993_v38 = vpop.permute.xlu0 %992  ;;  %v989_v48 = vpop.permute.xlu1 %988 }
 0xdea   :  { %v995_v43 = vsel %vm386_vm3, %v989_v48, %v993_v38 }
 0xdeb   :  { %3558 = vmatmul.mubr.msk.f32.vlgmr.msra.gmra.mrb[10].mxu1 %vm388_vm4, %v995_v43  ;;  %v1101_v43 = vld [vmem:[#allocation3 + $0x4] sm:$0x3] }
 0xdec   :  { %3965 = vmatpush3.bf16.msra.mxu1 %v4523_v37  ;;  %3595 = vmatprep.mubr.msk.f32.mxu1 %vm4309_vm0, %v4310_v32  ;;  %v1103_v54 = vrot.slane %v1101_v43, 6 }
 0xded   :  { %3966 = vmatprep.subr.bf16.mxu1 %v4308_v27 }
 0xdf0   :  { %3968 = vmatpush3.bf16.msra.mxu1 %v4542_v41 }
 0xdf1   :  { %3969 = vmatprep.subr.bf16.mxu1 %v4308_v27 }
 0xdf4   :  { %3971 = vmatpush3.bf16.msra.mxu1 %v4566_v46 }
 0xdf5   :  { %3972 = vmatprep.subr.bf16.mxu1 %v4308_v27 }
 0xdf8   :  { %3974 = vmatpush3.bf16.msra.mxu1 %v4585_v50 }
 0xebe   :  { %v1065_v57 = vpop.f32.mrb[10].mxu1 }
 0xebf   :  { %v1069_v58 = vadd.f32 %v1065_v57, %v984_v55  ;;  %v3559_v59 = vpop.f32.mrb[11].mxu1 }
 0xec1   :  { %4174 = vtanh.f32 %v1069_v58  ;;  %v3167_v61 = vmul.f32 -1.442695, %v1069_v58 }
 0xec3   :  { %4176 = vpow2.f32 %v3167_v61 }
 0xecb   :  { %v4175_v60 = vpop.eup %4174 }
 0xecc   :  { %1079 = vrot.lane.b32.xlu1 %v4175_v60, %s4311_s3 }
 0xecd   :  { %v4177_v63 = vpop.eup %4176 }
 0xece   :  { %v1073_v24 = vadd.f32 1.0, %v4177_v63 }
 0xed0   :  { %4178 = vrcp.f32 %v1073_v24 }
 0xeda   :  { %v4179_v25 = vpop.eup %4178 }
 0xedb   :  { %v1077_v29 = vmul.f32 %v4179_v25, %v966_v34 }
 0xf3e   :  { %v1080_v26 = vpop.permute.xlu1 %1079 }
 0xf3f   :  { %v1082_v28 = vmul.f32 %v4179_v25, %v1080_v26 }
 0xf41   :  { %1084 = vrot.lane.b32.xlu0 %v1082_v28, %s4312_s16 }
 0xfb3   :  { %v1085_v30 = vpop.permute.xlu0 %1084 }
 0xfb4   :  { %v1087_v31 = vadd.f32 %v1085_v30, %v1077_v29 }
 0xfb6   :  { %4180 = vtanh.f32 %v1087_v31 }
 0xfc0   :  { %v4181_v33 = vpop.eup %4180 }
 0xfc1   :  { %1090 = vrot.lane.b32.xlu1 %v4181_v33, %s4311_s3 }
0x1033   :  { %v1091_v35 = vpop.permute.xlu1 %1090 }
0x1034   :  { %v4742_v36 = vmul.f32 %v4179_v25, %v1091_v35 }
0x1036   :  { %v1107_v40 = vmul.f32 %v4742_v36, %v4569_v47  ;;  %v1106_v45 = vmul.f32 %v4552_v44, %v4742_v36 }
0x1038   :  { %1113 = vrot.lane.b32.xlu1 %v1107_v40, %s4311_s3  ;;  %1109 = vrot.lane.b32.xlu0 %v1106_v45, %s4312_s16  ;;  %v1222_v45 = vld [vmem:[#allocation3 + $0x2] sm:$0x3] }
0x10aa   :  { %v1114_v34 = vpop.permute.xlu1 %1113  ;;  %v1110_v38 = vpop.permute.xlu0 %1109 }
0x10ab   :  { %v1116_v48 = vsel %vm386_vm3, %v1110_v38, %v1114_v34  ;;  %v1221_v34 = vld [vmem:[#allocation2 + $0xe] sm:$0x3]  ;;  %v1224_v38 = vrot.slane %v1222_v45, 6 }
0x10ac   :  { %3577 = vmatmul.mubr.msk.f32.vlgmr.msra.gmra.mrb[12].mxu0 %vm388_vm4, %v1116_v48 }
0x10ad   :  { %3977 = vmatpush3.bf16.msra.mxu0 %v4523_v37  ;;  %3614 = vmatprep.mubr.msk.f32.mxu0 %vm4309_vm0, %v4310_v32  ;;  %v1105_v37 = vsel %vm382_vm5, %v1100_v51, %v1103_v54  ;;  %v1226_v48 = vsel %vm382_vm5, %v1221_v34, %v1224_v38 }
0x10ae   :  { %3978 = vmatprep.subr.bf16.mxu0 %v4308_v27 }
0x10b1   :  { %3980 = vmatpush3.bf16.msra.mxu0 %v4542_v41 }
0x10b2   :  { %3981 = vmatprep.subr.bf16.mxu0 %v4308_v27 }
0x10b5   :  { %3983 = vmatpush3.bf16.msra.mxu0 %v4566_v46 }
0x10b6   :  { %3984 = vmatprep.subr.bf16.mxu0 %v4308_v27 }
0x10b9   :  { %3986 = vmatpush3.bf16.msra.mxu0 %v4585_v50 }
0x117f   :  { %v1186_v52 = vpop.f32.mrb[12].mxu0 }
0x1180   :  { %v1190_v55 = vadd.f32 %v1186_v52, %v1105_v37  ;;  %v3578_v57 = vpop.f32.mrb[13].mxu0 }
0x1182   :  { %4182 = vtanh.f32 %v1190_v55  ;;  %v3169_v41 = vmul.f32 -1.442695, %v1190_v55 }
0x1184   :  { %4184 = vpow2.f32 %v3169_v41 }
0x118c   :  { %v4183_v58 = vpop.eup %4182 }
0x118d   :  { %1200 = vrot.lane.b32.xlu0 %v4183_v58, %s4311_s3 }
0x118e   :  { %v4185_v59 = vpop.eup %4184 }
0x118f   :  { %v1194_v46 = vadd.f32 1.0, %v4185_v59 }
0x1191   :  { %4186 = vrcp.f32 %v1194_v46 }
0x119b   :  { %v4187_v60 = vpop.eup %4186 }
0x119c   :  { %v1198_v63 = vmul.f32 %v4187_v60, %v1087_v31 }
0x11ff   :  { %v1201_v61 = vpop.permute.xlu0 %1200 }
0x1200   :  { %v1203_v50 = vmul.f32 %v4187_v60, %v1201_v61 }
0x1202   :  { %1205 = vrot.lane.b32.xlu1 %v1203_v50, %s4312_s16 }
0x1274   :  { %v1206_v24 = vpop.permute.xlu1 %1205 }
0x1275   :  { %v1208_v25 = vadd.f32 %v1206_v24, %v1198_v63 }
0x1277   :  { %4188 = vtanh.f32 %v1208_v25 }
0x1281   :  { %v4189_v26 = vpop.eup %4188 }
0x1282   :  { %1211 = vrot.lane.b32.xlu0 %v4189_v26, %s4311_s3 }
0x12f4   :  { %v1212_v28 = vpop.permute.xlu0 %1211 }
0x12f5   :  { %v4765_v29 = vmul.f32 %v4187_v60, %v1212_v28 }
0x12f7   :  { %v1228_v30 = vmul.f32 %v4765_v29, %v4569_v47  ;;  %v1227_v33 = vmul.f32 %v4552_v44, %v4765_v29 }
0x12f9   :  { %1234 = vrot.lane.b32.xlu0 %v1228_v30, %s4311_s3  ;;  %1230 = vrot.lane.b32.xlu1 %v1227_v33, %s4312_s16 }
0x136b   :  { %v1235_v31 = vpop.permute.xlu0 %1234  ;;  %v1231_v35 = vpop.permute.xlu1 %1230 }
0x136c   :  { %v1237_v40 = vsel %vm386_vm3, %v1231_v35, %v1235_v31  ;;  %v1343_v31 = vld [vmem:[#allocation3] sm:$0x3]  ;;  %v1342_v35 = vld [vmem:[#allocation2 + $0x10] sm:$0x3] }
0x136d   :  { %3596 = vmatmul.mubr.msk.f32.vlgmr.msra.gmra.mrb[12].mxu1 %vm388_vm4, %v1237_v40  ;;  %v1345_v40 = vrot.slane %v1343_v31, 6 }
0x136f   :  { %v1347_v45 = vsel %vm382_vm5, %v1342_v35, %v1345_v40 }
0x1440   :  { %v1307_v43 = vpop.f32.mrb[12].mxu1 }
0x1441   :  { %v1311_v51 = vadd.f32 %v1307_v43, %v1226_v48  ;;  %v3597_v54 = vpop.f32.mrb[13].mxu1 }
0x1443   :  { %4190 = vtanh.f32 %v1311_v51  ;;  %v3171_v52 = vmul.f32 -1.442695, %v1311_v51 }
0x1445   :  { %4192 = vpow2.f32 %v3171_v52 }
0x144d   :  { %v4191_v37 = vpop.eup %4190 }
0x144e   :  { %1321 = vrot.lane.b32.xlu1 %v4191_v37, %s4311_s3 }
0x144f   :  { %v4193_v55 = vpop.eup %4192 }
0x1450   :  { %v1315_v57 = vadd.f32 1.0, %v4193_v55 }
0x1452   :  { %4194 = vrcp.f32 %v1315_v57 }
0x145c   :  { %v4195_v58 = vpop.eup %4194 }
0x145d   :  { %v1319_v46 = vmul.f32 %v4195_v58, %v1208_v25 }
0x14c0   :  { %v1322_v41 = vpop.permute.xlu1 %1321 }
0x14c1   :  { %v1324_v59 = vmul.f32 %v4195_v58, %v1322_v41 }
0x14c3   :  { %1326 = vrot.lane.b32.xlu0 %v1324_v59, %s4312_s16 }
0x1535   :  { %v1327_v60 = vpop.permute.xlu0 %1326 }
0x1536   :  { %v1329_v61 = vadd.f32 %v1327_v60, %v1319_v46 }
0x1538   :  { %4196 = vtanh.f32 %v1329_v61 }
0x1542   :  { %v4197_v50 = vpop.eup %4196 }
0x1543   :  { %1332 = vrot.lane.b32.xlu1 %v4197_v50, %s4311_s3 }
0x15b5   :  { %v1333_v63 = vpop.permute.xlu1 %1332 }
0x15b6   :  { %v1335_v24 = vmul.f32 %v4195_v58, %v1333_v63 }
0x15b8   :  { %v1349_v26 = vmul.f32 %v1335_v24, %v4569_v47  ;;  %v1348_v28 = vmul.f32 %v4552_v44, %v1335_v24 }
0x15ba   :  { %1355 = vrot.lane.b32.xlu1 %v1349_v26, %s4311_s3  ;;  %1351 = vrot.lane.b32.xlu0 %v1348_v28, %s4312_s16 }
0x162c   :  { %v1356_v30 = vpop.permute.xlu1 %1355  ;;  %v1352_v33 = vpop.permute.xlu0 %1351 }
0x162d   :  { %v1358_v25 = vsel %vm386_vm3, %v1352_v33, %v1356_v30 }
0x162e   :  { %3615 = vmatmul.mubr.msk.f32.vlgmr.msra.gmra.mrb[14].mxu0 %vm388_vm4, %v1358_v25 }
0x1701   :  { %v1428_v34 = vpop.f32.mrb[14].mxu0 }
0x1702   :  { %v1432_v38 = vadd.f32 %v1428_v34, %v1347_v45  ;;  %v3616_v48 = vpop.f32.mrb[15].mxu0 }
0x1704   :  { %4198 = vtanh.f32 %v1432_v38  ;;  %v3173_v51 = vmul.f32 -1.442695, %v1432_v38 }
0x1706   :  { %4200 = vpow2.f32 %v3173_v51 }
0x170e   :  { %v4199_v43 = vpop.eup %4198 }
0x170f   :  { %1442 = vrot.lane.b32.xlu0 %v4199_v43, %s4311_s3 }
0x1710   :  { %v4201_v54 = vpop.eup %4200 }
0x1711   :  { %v1436_v37 = vadd.f32 1.0, %v4201_v54 }
0x1713   :  { %4202 = vrcp.f32 %v1436_v37 }
0x171d   :  { %v4203_v52 = vpop.eup %4202 }
0x171e   :  { %v1440_v58 = vmul.f32 %v4203_v52, %v1329_v61 }
0x1781   :  { %v1443_v55 = vpop.permute.xlu0 %1442 }
0x1782   :  { %v1445_v57 = vmul.f32 %v4203_v52, %v1443_v55 }
0x1784   :  { %1447 = vrot.lane.b32.xlu1 %v1445_v57, %s4312_s16 }
0x1788   :  { %488 = vrot.lane.b32.xlu1 %v4623_v62, %s4312_s16 }
0x178c   :  { %732 = vrot.lane.b32.xlu1 %v4671_v49, %s4312_s16 }
0x1790   :  { %974 = vrot.lane.b32.xlu1 %v4719_v39, %s4312_s16 }
0x1794   :  { %1216 = vrot.lane.b32.xlu1 %v4765_v29, %s4312_s16 }
0x17f6   :  { %v1448_v41 = vpop.permute.xlu1 %1447 }
0x17f7   :  { %v1450_v59 = vadd.f32 %v1448_v41, %v1440_v58 }
0x17f9   :  { %4204 = vtanh.f32 %v1450_v59 }
0x17fa   :  { %v489_v46 = vpop.permute.xlu1 %488 }
0x17fb   :  { %492 = vst.msk [vmem:[#allocation4] sm:$0x3] %vm491_vm6, %v489_v46 }
0x17fc   :  { %494 = vst.msk [vmem:[#allocation5 + $0xe] sm:$0xc] %vm493_vm7, %v489_v46 }
0x17fe   :  { %v733_v62 = vpop.permute.xlu1 %732 }
0x17ff   :  { %735 = vst.msk [vmem:[#allocation4 + $0x4] sm:$0x3] %vm491_vm6, %v733_v62 }
0x1800   :  { %736 = vst.msk [vmem:[#allocation5 + $0xa] sm:$0xc] %vm493_vm7, %v733_v62 }
0x1802   :  { %v975_v49 = vpop.permute.xlu1 %974 }
0x1803   :  { %v4205_v39 = vpop.eup %4204  ;;  %977 = vst.msk [vmem:[#allocation4 + $0x8] sm:$0x3] %vm491_vm6, %v975_v49 }
0x1804   :  { %978 = vst.msk [vmem:[#allocation5 + $0x6] sm:$0xc] %vm493_vm7, %v975_v49  ;;  %1453 = vrot.lane.b32.xlu0 %v4205_v39, %s4311_s3 }
0x1806   :  { %v1217_v29 = vpop.permute.xlu1 %1216 }
0x1807   :  { %1219 = vst.msk [vmem:[#allocation4 + $0xc] sm:$0x3] %vm491_vm6, %v1217_v29 }
0x1808   :  { %1220 = vst.msk [vmem:[#allocation5 + $0x2] sm:$0xc] %vm493_vm7, %v1217_v29  ;;  %611 = vrot.lane.b32.xlu0 %v4647_v56, %s4312_s16 }
0x180c   :  { %853 = vrot.lane.b32.xlu0 %v4695_v42, %s4312_s16 }
0x1810   :  { %1095 = vrot.lane.b32.xlu0 %v4742_v36, %s4312_s16 }
0x1814   :  { %1337 = vrot.lane.b32.xlu0 %v1335_v24, %s4312_s16 }
0x1876   :  { %v1454_v60 = vpop.permute.xlu0 %1453 }
0x1877   :  { %v1456_v61 = vmul.f32 %v4203_v52, %v1454_v60 }
0x1879   :  { %1458 = vrot.lane.b32.xlu1 %v1456_v61, %s4312_s16 }
0x187a   :  { %v612_v50 = vpop.permute.xlu0 %611 }
0x187b   :  { %614 = vst.msk [vmem:[#allocation4 + $0x2] sm:$0x3] %vm491_vm6, %v612_v50 }
0x187c   :  { %615 = vst.msk [vmem:[#allocation5 + $0xc] sm:$0xc] %vm493_vm7, %v612_v50 }
0x187e   :  { %v854_v63 = vpop.permute.xlu0 %853 }
0x187f   :  { %856 = vst.msk [vmem:[#allocation4 + $0x6] sm:$0x3] %vm491_vm6, %v854_v63 }
0x1880   :  { %857 = vst.msk [vmem:[#allocation5 + $0x8] sm:$0xc] %vm493_vm7, %v854_v63 }
0x1882   :  { %v1096_v56 = vpop.permute.xlu0 %1095 }
0x1883   :  { %1098 = vst.msk [vmem:[#allocation4 + $0xa] sm:$0x3] %vm491_vm6, %v1096_v56 }
0x1884   :  { %1099 = vst.msk [vmem:[#allocation5 + $0x4] sm:$0xc] %vm493_vm7, %v1096_v56 }
0x1886   :  { %v1338_v42 = vpop.permute.xlu0 %1337 }
0x1887   :  { %1340 = vst.msk [vmem:[#allocation4 + $0xe] sm:$0x3] %vm491_vm6, %v1338_v42 }
0x1888   :  { %1341 = vst.msk [vmem:[#allocation5] sm:$0xc] %vm493_vm7, %v1338_v42 }
0x18eb   :  { %v1459_v36 = vpop.permute.xlu1 %1458 }
0x18ec   :  { %1461 = vst.msk [vmem:[#allocation4 + $0x10] sm:$0x3] %vm491_vm6, %v1459_v36 }
0x18ed   :  { %1462 = vst.msk [vmem:[#allocation5 - $0x2] sm:$0xc] %vm493_vm7, %v1459_v36 }
0x18ee   :  { %4302 = dma.done.wait [#allocation8], 2048 }
0x18ef   :  { %4303 = vsyncadd [#allocation8], 4294965248 }
0x18f0   :  { %4304 = dma.done.wait [#allocation8 + $0x1], 1024 }
0x18f1   :  { %4305 = vsyncadd [#allocation8 + $0x1], 4294966272  ;;  %3987 = vmatprep.subr.bf16.mxu1 %v4308_v27  ;;  %v3988_v24 = vpack.c.bf16 %v4403_v5, %v4398_v4  ;;  %3625 = vmatprep.mubr.msk.f32.mxu1 %vm4309_vm0, %v4310_v32  ;;  %v4000_v26 = vpack.c.bf16 %v4443_v13, %v4438_v12  ;;  %v3991_v28 = vpack.c.bf16 %v4413_v7, %v4408_v6  ;;  %v1474_v7 = vld [vmem:[#allocation5 + $0x8] sm:$0xff]  ;;  %v3180_v31 = vld [vmem:[%s5207_s6] ss:$0 sm:$0xff]  ;;  %vm3085_vm8 = vcmask 123904  }
0x18f2   :  { %3999 = vmatprep.subr.bf16.mxu0 %v4308_v27  ;;  %3659 = vmatprep.mubr.msk.f32.mxu0 %vm4309_vm0, %v4310_v32  ;;  %v4003_v4 = vpack.c.bf16 %v4453_v15, %v4448_v14  ;;  %v3994_v5 = vpack.c.bf16 %v4383_v1, %v4378_v0  ;;  %v4845_v6 = vpack.c.bf16 %v4463_v17, %v4458_v16  ;;  %v1470_v13 = vld [vmem:[#allocation4] sm:$0xff]  ;;  %v3188_v41 = vld [vmem:[%s5207_s6 + $0x1] ss:$0 sm:$0xff]  ;;  %vm3099_vm9 = vcmask 0  }
0x18f3   :  { %3989 = vmatpush3.bf16.msra.mxu1 %v3988_v24  ;;  %4001 = vmatpush3.bf16.msra.mxu0 %v4000_v26  ;;  %v3997_v0 = vpack.c.bf16 %v4393_v3, %v4388_v2  ;;  %v4859_v1 = vpack.c.bf16 %v4473_v19, %v4468_v18  ;;  %v1475_v2 = vld [vmem:[#allocation5 + $0x10] sm:$0x3]  ;;  %v4872_v3 = vpack.c.bf16 %v4483_v21, %v4478_v20  ;;  %v1472_v16 = vld [vmem:[#allocation4 + $0x10] sm:$0x3] }
0x18f4   :  { %3990 = vmatprep.subr.bf16.mxu1 %v4308_v27  ;;  %4002 = vmatprep.subr.bf16.mxu0 %v4308_v27  ;;  %v1473_v12 = vld [vmem:[#allocation5] sm:$0xff]  ;;  %v4006_v14 = vpack.c.bf16 %v4423_v9, %v4418_v8  ;;  %v4884_v15 = vpack.c.bf16 %v4493_v23, %v4488_v22  ;;  %v1471_v8 = vld [vmem:[#allocation4 + $0x8] sm:$0xff]  ;;  %v4009_v9 = vpack.c.bf16 %v4433_v11, %v4428_v10 }
0x18f7   :  { %3992 = vmatpush3.bf16.msra.mxu1 %v3991_v28  ;;  %4004 = vmatpush3.bf16.msra.mxu0 %v4003_v4 }
0x18f8   :  { %3993 = vmatprep.subr.bf16.mxu1 %v4308_v27  ;;  %4011 = vmatprep.subr.bf16.mxu0 %v4308_v27 }
0x18fa   :  { %3626 = vmatmul.mubr.msk.f32.vlgmr.msra.gmra.mrb[14].mxu1 %vm386_vm3, %v1473_v12  ;;  %3660 = vmatmul.mubr.msk.f32.vlgmr.msra.gmra.mrb[16].mxu0 %vm386_vm3, %v1473_v12 }
0x18fb   :  { %3995 = vmatpush3.bf16.msra.mxu1 %v3994_v5  ;;  %3628 = vmatprep.mubr.msk.f32.mxu1 %vm4309_vm0, %v4310_v32 }
0x18fc   :  { %3996 = vmatprep.subr.bf16.mxu1 %v4308_v27  ;;  %3662 = vmatprep.mubr.msk.f32.mxu0 %vm4309_vm0, %v4310_v32 }
0x18fd   :  { %4013 = vmatpush3.bf16.msra.mxu0 %v4845_v6 }
0x18fe   :  { %3629 = vmatmul.mubr.msk.f32.gmra.mrb[16].mxu1 %vm386_vm3, %v1474_v7  ;;  %4014 = vmatprep.subr.bf16.mxu0 %v4308_v27 }
0x18ff   :  { %3631 = vmatprep.mubr.msk.f32.mxu1 %vm4309_vm0, %v4310_v32  ;;  %3998 = vmatpush3.bf16.msra.mxu1 %v3997_v0 }
0x1900   :  { %4005 = vmatprep.subr.bf16.mxu1 %v4308_v27  ;;  %3663 = vmatmul.mubr.msk.f32.gmra.mrb[18].mxu0 %vm386_vm3, %v1474_v7 }
0x1901   :  { %3665 = vmatprep.mubr.msk.f32.mxu0 %vm4309_vm0, %v4310_v32  ;;  %4016 = vmatpush3.bf16.msra.mxu0 %v4859_v1 }
0x1902   :  { %3632 = vmatmul.mubr.msk.f32.gmra.mrb[18].mxu1 %vm386_vm3, %v1475_v2  ;;  %4017 = vmatprep.subr.bf16.mxu0 %v4308_v27 }
0x1903   :  { %3642 = vmatprep.mubr.msk.f32.mxu1 %vm4309_vm0, %v4310_v32 }
0x1904   :  { %3666 = vmatmul.mubr.msk.f32.gmra.mrb[20].mxu0 %vm386_vm3, %v1475_v2 }
0x1905   :  { %4019 = vmatpush3.bf16.msra.mxu0 %v4872_v3  ;;  %3701 = vmatprep.mubr.msk.f32.mxu0 %vm4309_vm0, %v4310_v32 }
0x1906   :  { %3643 = vmatmul.mubr.msk.f32.vlgmr.msra.gmra.mrb[20].mxu1 %vm386_vm3, %v1470_v13  ;;  %4020 = vmatprep.subr.bf16.mxu0 %v4308_v27 }
0x1907   :  { %4007 = vmatpush3.bf16.msra.mxu1 %v4006_v14  ;;  %3645 = vmatprep.mubr.msk.f32.mxu1 %vm4309_vm0, %v4310_v32 }
0x1908   :  { %4008 = vmatprep.subr.bf16.mxu1 %v4308_v27 }
0x1909   :  { %4022 = vmatpush3.bf16.msra.mxu0 %v4884_v15 }
0x190a   :  { %3646 = vmatmul.mubr.msk.f32.gmra.mrb[22].mxu1 %vm386_vm3, %v1471_v8  ;;  %4035 = vmatprep.subr.bf16.mxu0 %v4308_v27 }
0x190b   :  { %3648 = vmatprep.mubr.msk.f32.mxu1 %vm4309_vm0, %v4310_v32  ;;  %4010 = vmatpush3.bf16.msra.mxu1 %v4009_v9 }
0x190c   :  { %3702 = vmatmul.mubr.msk.f32.vlgmr.msra.gmra.mrb[22].mxu0 %vm388_vm4, %v4596_v53  ;;  %4023 = vmatprep.subr.bf16.mxu1 %v4308_v27 }
0x190d   :  { %4037 = vmatpush3.bf16.msra.mxu0 %v4845_v6  ;;  %3739 = vmatprep.mubr.msk.f32.mxu0 %vm4309_vm0, %v4310_v32 }
0x190e   :  { %3649 = vmatmul.mubr.msk.f32.gmra.mrb[24].mxu1 %vm386_vm3, %v1472_v16  ;;  %4038 = vmatprep.subr.bf16.mxu0 %v4308_v27 }
0x190f   :  { %3676 = vmatprep.mubr.msk.f32.mxu1 %vm4309_vm0, %v4310_v32 }
0x1911   :  { %4040 = vmatpush3.bf16.msra.mxu0 %v4859_v1 }
0x1912   :  { %3677 = vmatmul.mubr.msk.f32.vlgmr.msra.gmra.mrb[26].mxu1 %vm386_vm3, %v1470_v13  ;;  %4041 = vmatprep.subr.bf16.mxu0 %v4308_v27 }
0x1913   :  { %3679 = vmatprep.mubr.msk.f32.mxu1 %vm4309_vm0, %v4310_v32  ;;  %4025 = vmatpush3.bf16.msra.mxu1 %v4845_v6 }
0x1914   :  { %4026 = vmatprep.subr.bf16.mxu1 %v4308_v27 }
0x1915   :  { %4043 = vmatpush3.bf16.msra.mxu0 %v4872_v3 }
0x1916   :  { %3680 = vmatmul.mubr.msk.f32.gmra.mrb[28].mxu1 %vm386_vm3, %v1471_v8  ;;  %4044 = vmatprep.subr.bf16.mxu0 %v4308_v27 }
0x1917   :  { %3682 = vmatprep.mubr.msk.f32.mxu1 %vm4309_vm0, %v4310_v32  ;;  %4028 = vmatpush3.bf16.msra.mxu1 %v4859_v1 }
0x1918   :  { %4029 = vmatprep.subr.bf16.mxu1 %v4308_v27 }
0x1919   :  { %4046 = vmatpush3.bf16.msra.mxu0 %v4884_v15 }
0x191a   :  { %3683 = vmatmul.mubr.msk.f32.gmra.mrb[30].mxu1 %vm386_vm3, %v1472_v16  ;;  %4059 = vmatprep.subr.bf16.mxu0 %v4308_v27 }
0x191b   :  { %4031 = vmatpush3.bf16.msra.mxu1 %v4872_v3  ;;  %3720 = vmatprep.mubr.msk.f32.mxu1 %vm4309_vm0, %v4310_v32 }
0x191c   :  { %4032 = vmatprep.subr.bf16.mxu1 %v4308_v27 }
0x191f   :  { %4034 = vmatpush3.bf16.msra.mxu1 %v4884_v15 }
0x1920   :  { %4047 = vmatprep.subr.bf16.mxu1 %v4308_v27 }
0x19cd   :  { %v1560_v10 = vpop.f32.mrb[14].mxu1  ;;  %v1752_v17 = vpop.f32.mrb[16].mxu0 }
0x19ce   :  { %v3627_v11 = vpop.f32.mrb[15].mxu1  ;;  %v3661_v18 = vpop.f32.mrb[17].mxu0 }
0x19d1   :  { %v1565_v19 = vpop.f32.mrb[16].mxu1 }
0x19d2   :  { %v3630_v20 = vpop.f32.mrb[17].mxu1 }
0x19d3   :  { %v1757_v21 = vpop.f32.mrb[18].mxu0 }
0x19d4   :  { %v3664_v22 = vpop.f32.mrb[19].mxu0 }
0x19d5   :  { %v1570_v23 = vpop.f32.mrb[18].mxu1 }
0x19d6   :  { %v3633_v53 = vpop.f32.mrb[19].mxu1 }
0x19d7   :  { %v1762_v30 = vpop.f32.mrb[20].mxu0 }
0x19d8   :  { %v3667_v33 = vpop.f32.mrb[21].mxu0 }
0x19d9   :  { %v1649_v25 = vpop.f32.mrb[20].mxu1 }
0x19da   :  { %v1650_v35 = vadd.f32 %v1649_v25, %v1560_v10  ;;  %v3644_v40 = vpop.f32.mrb[21].mxu1 }
0x19dc   :  { %v1670_v45 = vadd.f32 %v3180_v31, %v1650_v35 }
0x19dd   :  { %v1654_v34 = vpop.f32.mrb[22].mxu1 }
0x19de   :  { %1673 = vst [vmem:[#allocation2] sm:$0xff] %v1670_v45  ;;  %v1655_v38 = vadd.f32 %v1654_v34, %v1565_v19  ;;  %v3647_v48 = vpop.f32.mrb[23].mxu1 }
0x19df   :  { %v1940_v43 = vpop.f32.mrb[22].mxu0 }
0x19e0   :  { %v1671_v51 = vadd.f32 %v3180_v31, %v1655_v38  ;;  %v3703_v54 = vpop.f32.mrb[23].mxu0 }
0x19e1   :  { %v1659_v37 = vpop.f32.mrb[24].mxu1 }
0x19e2   :  { %1674 = vst [vmem:[#allocation2 + $0x8] sm:$0xff] %v1671_v51  ;;  %v1660_v52 = vadd.f32 %v1659_v37, %v1570_v23  ;;  %v3650_v55 = vpop.f32.mrb[25].mxu1 }
0x19e4   :  { %v1672_v57 = vadd.f32 %v3180_v31, %v1660_v52 }
0x19e5   :  { %v1832_v58 = vpop.f32.mrb[26].mxu1  ;;  %v1868_v24 = vld [vmem:[#allocation2] sm:$0x3]  ;;  %v1975_v53 = vld [vmem:[#allocation2 + $0x2] sm:$0x3] }
0x19e6   :  { %1675 = vst [vmem:[#allocation2 + $0x10] sm:$0x3] %v1672_v57  ;;  %v1833_v59 = vadd.f32 %v1832_v58, %v1752_v17  ;;  %v3678_v46 = vpop.f32.mrb[27].mxu1 }
0x19e8   :  { %v1854_v62 = vadd.f32 %v3188_v41, %v1833_v59 }
0x19e9   :  { %v1837_v49 = vpop.f32.mrb[28].mxu1 }
0x19ea   :  { %1857 = vst [vmem:[#allocation3] sm:$0xff] %v1854_v62  ;;  %v1838_v39 = vadd.f32 %v1837_v49, %v1757_v21  ;;  %v3681_v29 = vpop.f32.mrb[29].mxu1 }
0x19eb   :  { %v2096_v29 = vld [vmem:[#allocation2 + $0x4] sm:$0x3] }
0x19ec   :  { %v1855_v60 = vadd.f32 %v3188_v41, %v1838_v39 }
0x19ed   :  { %v1842_v61 = vpop.f32.mrb[30].mxu1 }
0x19ee   :  { %1858 = vst [vmem:[#allocation3 + $0x8] sm:$0xff] %v1855_v60  ;;  %v1843_v50 = vadd.f32 %v1842_v61, %v1762_v30  ;;  %v3684_v63 = vpop.f32.mrb[31].mxu1 }
0x19f0   :  { %v1856_v56 = vadd.f32 %v3188_v41, %v1843_v50 }
0x19f2   :  { %1859 = vst [vmem:[#allocation3 + $0x10] sm:$0x3] %v1856_v56 }
0x19f5   :  { %v1976_v22 = vld [vmem:[#allocation3 + $0xe] sm:$0x3]  ;;  %v2097_v49 = vld [vmem:[#allocation3 + $0xc] sm:$0x3] }
0x19f6   :  { %v1978_v23 = vrot.slane %v1976_v22, 6  ;;  %v2099_v39 = vrot.slane %v2097_v49, 6 }
0x19f8   :  { %v1980_v30 = vsel %vm382_vm5, %v1975_v53, %v1978_v23  ;;  %v2101_v60 = vsel %vm382_vm5, %v2096_v29, %v2099_v39 }
0x19f9   :  { %v1869_v42 = vld [vmem:[#allocation3 + $0x10] sm:$0x3] }
0x19fa   :  { %v1871_v36 = vrot.slane %v1869_v42, 6 }
0x19fc   :  { %v1873_v26 = vsel %vm382_vm5, %v1868_v24, %v1871_v36 }
0x19fd   :  { %v1944_v28 = vadd.f32 %v1940_v43, %v1873_v26 }
0x19ff   :  { %4208 = vtanh.f32 %v1944_v28  ;;  %v3190_v5 = vmul.f32 -1.442695, %v1944_v28 }
0x1a01   :  { %4210 = vpow2.f32 %v3190_v5 }
0x1a09   :  { %v4209_v4 = vpop.eup %4208 }
0x1a0a   :  { %1954 = vrot.lane.b32.xlu0 %v4209_v4, %s4311_s3 }
0x1a0b   :  { %v4211_v12 = vpop.eup %4210 }
0x1a0c   :  { %v1948_v7 = vadd.f32 1.0, %v4211_v12 }
0x1a0e   :  { %4212 = vrcp.f32 %v1948_v7 }
0x1a18   :  { %v4213_v0 = vpop.eup %4212 }
0x1a19   :  { %v1952_v14 = vmul.f32 0.0, %v4213_v0 }
0x1a7c   :  { %v1955_v2 = vpop.permute.xlu0 %1954 }
0x1a7d   :  { %v1957_v13 = vmul.f32 %v4213_v0, %v1955_v2 }
0x1a7f   :  { %1959 = vrot.lane.b32.xlu0 %v1957_v13, %s4312_s16 }
0x1af1   :  { %v1960_v8 = vpop.permute.xlu0 %1959 }
0x1af2   :  { %v1962_v9 = vadd.f32 %v1960_v8, %v1952_v14 }
0x1af4   :  { %4214 = vtanh.f32 %v1962_v9 }
0x1afe   :  { %v4215_v16 = vpop.eup %4214 }
0x1aff   :  { %1965 = vrot.lane.b32.xlu1 %v4215_v16, %s4311_s3 }
0x1b71   :  { %v1966_v10 = vpop.permute.xlu1 %1965 }
0x1b72   :  { %v4943_v11 = vmul.f32 %v4213_v0, %v1966_v10 }
0x1b74   :  { %v1982_v17 = vmul.f32 %v4943_v11, %v4569_v47  ;;  %v1981_v18 = vmul.f32 %v4552_v44, %v4943_v11 }
0x1b76   :  { %1988 = vrot.lane.b32.xlu0 %v1982_v17, %s4311_s3  ;;  %1984 = vrot.lane.b32.xlu1 %v1981_v18, %s4312_s16  ;;  %v2218_v17 = vld [vmem:[#allocation3 + $0xa] sm:$0x3] }
0x1b77   :  { %v2220_v18 = vrot.slane %v2218_v17, 6 }
0x1be8   :  { %v1989_v19 = vpop.permute.xlu0 %1988  ;;  %v1985_v20 = vpop.permute.xlu1 %1984 }
0x1be9   :  { %v1991_v21 = vsel %vm386_vm3, %v1985_v20, %v1989_v19  ;;  %v2217_v19 = vld [vmem:[#allocation2 + $0x6] sm:$0x3] }
0x1bea   :  { %3721 = vmatmul.mubr.msk.f32.vlgmr.msra.gmra.mrb[32].mxu1 %vm388_vm4, %v1991_v21  ;;  %v2222_v20 = vsel %vm382_vm5, %v2217_v19, %v2220_v18 }
0x1beb   :  { %4049 = vmatpush3.bf16.msra.mxu1 %v4845_v6  ;;  %3758 = vmatprep.mubr.msk.f32.mxu1 %vm4309_vm0, %v4310_v32 }
0x1bec   :  { %4050 = vmatprep.subr.bf16.mxu1 %v4308_v27 }
0x1bef   :  { %4052 = vmatpush3.bf16.msra.mxu1 %v4859_v1 }
0x1bf0   :  { %4053 = vmatprep.subr.bf16.mxu1 %v4308_v27 }
0x1bf3   :  { %4055 = vmatpush3.bf16.msra.mxu1 %v4872_v3 }
0x1bf4   :  { %4056 = vmatprep.subr.bf16.mxu1 %v4308_v27 }
0x1bf7   :  { %4058 = vmatpush3.bf16.msra.mxu1 %v4884_v15 }
0x1bf8   :  { %4071 = vmatprep.subr.bf16.mxu1 %v4308_v27 }
0x1cbd   :  { %v2061_v33 = vpop.f32.mrb[32].mxu1 }
0x1cbe   :  { %v2065_v25 = vadd.f32 %v2061_v33, %v1980_v30  ;;  %v3722_v31 = vpop.f32.mrb[33].mxu1 }
0x1cc0   :  { %4216 = vtanh.f32 %v2065_v25  ;;  %v3192_v40 = vmul.f32 -1.442695, %v2065_v25 }
0x1cc2   :  { %4218 = vpow2.f32 %v3192_v40 }
0x1cca   :  { %v4217_v35 = vpop.eup %4216 }
0x1ccb   :  { %2075 = vrot.lane.b32.xlu1 %v4217_v35, %s4311_s3 }
0x1ccc   :  { %v4219_v45 = vpop.eup %4218 }
0x1ccd   :  { %v2069_v34 = vadd.f32 1.0, %v4219_v45 }
0x1ccf   :  { %4220 = vrcp.f32 %v2069_v34 }
0x1cd9   :  { %v4221_v38 = vpop.eup %4220 }
0x1cda   :  { %v2073_v51 = vmul.f32 %v4221_v38, %v1962_v9 }
0x1d3d   :  { %v2076_v48 = vpop.permute.xlu1 %2075 }
0x1d3e   :  { %v2078_v43 = vmul.f32 %v4221_v38, %v2076_v48 }
0x1d40   :  { %2080 = vrot.lane.b32.xlu0 %v2078_v43, %s4312_s16 }
0x1db2   :  { %v2081_v54 = vpop.permute.xlu0 %2080 }
0x1db3   :  { %v2083_v37 = vadd.f32 %v2081_v54, %v2073_v51 }
0x1db5   :  { %4222 = vtanh.f32 %v2083_v37 }
0x1dbf   :  { %v4223_v52 = vpop.eup %4222 }
0x1dc0   :  { %2086 = vrot.lane.b32.xlu1 %v4223_v52, %s4311_s3 }
0x1e32   :  { %v2087_v55 = vpop.permute.xlu1 %2086 }
0x1e33   :  { %v4967_v57 = vmul.f32 %v4221_v38, %v2087_v55 }
0x1e35   :  { %v2103_v58 = vmul.f32 %v4967_v57, %v4569_v47  ;;  %v2102_v41 = vmul.f32 %v4552_v44, %v4967_v57 }
0x1e37   :  { %2109 = vrot.lane.b32.xlu1 %v2103_v58, %s4311_s3  ;;  %2105 = vrot.lane.b32.xlu0 %v2102_v41, %s4312_s16  ;;  %v2339_v41 = vld [vmem:[#allocation3 + $0x8] sm:$0x3] }
0x1ea9   :  { %v2110_v59 = vpop.permute.xlu1 %2109  ;;  %v2106_v46 = vpop.permute.xlu0 %2105 }
0x1eaa   :  { %v2112_v62 = vsel %vm386_vm3, %v2106_v46, %v2110_v59  ;;  %v2341_v59 = vrot.slane %v2339_v41, 6  ;;  %v2338_v46 = vld [vmem:[#allocation2 + $0x8] sm:$0x3]  ;;  %v2580_v41 = vld [vmem:[#allocation2 + $0xc] sm:$0x3] }
0x1eab   :  { %3740 = vmatmul.mubr.msk.f32.vlgmr.msra.gmra.mrb[24].mxu0 %vm388_vm4, %v2112_v62 }
0x1eac   :  { %4061 = vmatpush3.bf16.msra.mxu0 %v4845_v6  ;;  %3777 = vmatprep.mubr.msk.f32.mxu0 %vm4309_vm0, %v4310_v32  ;;  %v2343_v62 = vsel %vm382_vm5, %v2338_v46, %v2341_v59 }
0x1ead   :  { %4062 = vmatprep.subr.bf16.mxu0 %v4308_v27 }
0x1eb0   :  { %4064 = vmatpush3.bf16.msra.mxu0 %v4859_v1 }
0x1eb1   :  { %4065 = vmatprep.subr.bf16.mxu0 %v4308_v27 }
0x1eb4   :  { %4067 = vmatpush3.bf16.msra.mxu0 %v4872_v3 }
0x1eb5   :  { %4068 = vmatprep.subr.bf16.mxu0 %v4308_v27 }
0x1eb8   :  { %4070 = vmatpush3.bf16.msra.mxu0 %v4884_v15 }
0x1eb9   :  { %4083 = vmatprep.subr.bf16.mxu0 %v4308_v27 }
0x1f7e   :  { %v2182_v61 = vpop.f32.mrb[24].mxu0 }
0x1f7f   :  { %v2186_v50 = vadd.f32 %v2182_v61, %v2101_v60  ;;  %v3741_v63 = vpop.f32.mrb[25].mxu0 }
0x1f81   :  { %4224 = vtanh.f32 %v2186_v50  ;;  %v3194_v42 = vmul.f32 -1.442695, %v2186_v50 }
0x1f83   :  { %4226 = vpow2.f32 %v3194_v42 }
0x1f8b   :  { %v4225_v56 = vpop.eup %4224 }
0x1f8c   :  { %2196 = vrot.lane.b32.xlu0 %v4225_v56, %s4311_s3 }
0x1f8d   :  { %v4227_v36 = vpop.eup %4226 }
0x1f8e   :  { %v2190_v24 = vadd.f32 1.0, %v4227_v36 }
0x1f90   :  { %4228 = vrcp.f32 %v2190_v24 }
0x1f9a   :  { %v4229_v26 = vpop.eup %4228 }
0x1f9b   :  { %v2194_v5 = vmul.f32 %v4229_v26, %v2083_v37 }
0x1ffe   :  { %v2197_v28 = vpop.permute.xlu0 %2196 }
0x1fff   :  { %v2199_v4 = vmul.f32 %v4229_v26, %v2197_v28 }
0x2001   :  { %2201 = vrot.lane.b32.xlu1 %v2199_v4, %s4312_s16 }
0x2073   :  { %v2202_v12 = vpop.permute.xlu1 %2201 }
0x2074   :  { %v2204_v7 = vadd.f32 %v2202_v12, %v2194_v5 }
0x2076   :  { %4230 = vtanh.f32 %v2204_v7 }
0x2080   :  { %v4231_v0 = vpop.eup %4230 }
0x2081   :  { %2207 = vrot.lane.b32.xlu0 %v4231_v0, %s4311_s3 }
0x20f3   :  { %v2208_v2 = vpop.permute.xlu0 %2207 }
0x20f4   :  { %v4991_v13 = vmul.f32 %v4229_v26, %v2208_v2 }
0x20f6   :  { %v2224_v14 = vmul.f32 %v4991_v13, %v4569_v47  ;;  %v2223_v8 = vmul.f32 %v4552_v44, %v4991_v13 }
0x20f8   :  { %2230 = vrot.lane.b32.xlu0 %v2224_v14, %s4311_s3  ;;  %2226 = vrot.lane.b32.xlu1 %v2223_v8, %s4312_s16 }
0x216a   :  { %v2231_v9 = vpop.permute.xlu0 %2230  ;;  %v2227_v16 = vpop.permute.xlu1 %2226 }
0x216b   :  { %v2233_v10 = vsel %vm386_vm3, %v2227_v16, %v2231_v9  ;;  %v2460_v9 = vld [vmem:[#allocation3 + $0x6] sm:$0x3] }
0x216c   :  { %3759 = vmatmul.mubr.msk.f32.vlgmr.msra.gmra.mrb[34].mxu1 %vm388_vm4, %v2233_v10  ;;  %v2462_v16 = vrot.slane %v2460_v9, 6  ;;  %v2459_v10 = vld [vmem:[#allocation2 + $0xa] sm:$0x3] }
0x216d   :  { %4073 = vmatpush3.bf16.msra.mxu1 %v4845_v6  ;;  %3796 = vmatprep.mubr.msk.f32.mxu1 %vm4309_vm0, %v4310_v32 }
0x216e   :  { %4074 = vmatprep.subr.bf16.mxu1 %v4308_v27  ;;  %v2464_v17 = vsel %vm382_vm5, %v2459_v10, %v2462_v16 }
0x2171   :  { %4076 = vmatpush3.bf16.msra.mxu1 %v4859_v1 }
0x2172   :  { %4077 = vmatprep.subr.bf16.mxu1 %v4308_v27 }
0x2175   :  { %4079 = vmatpush3.bf16.msra.mxu1 %v4872_v3 }
0x2176   :  { %4080 = vmatprep.subr.bf16.mxu1 %v4308_v27 }
0x2179   :  { %4082 = vmatpush3.bf16.msra.mxu1 %v4884_v15 }
0x217a   :  { %4095 = vmatprep.subr.bf16.mxu1 %v4308_v27 }
0x223f   :  { %v2303_v21 = vpop.f32.mrb[34].mxu1 }
0x2240   :  { %v2307_v22 = vadd.f32 %v2303_v21, %v2222_v20  ;;  %v3760_v23 = vpop.f32.mrb[35].mxu1 }
0x2242   :  { %4232 = vtanh.f32 %v2307_v22  ;;  %v3196_v30 = vmul.f32 -1.442695, %v2307_v22 }
0x2244   :  { %4234 = vpow2.f32 %v3196_v30 }
0x224c   :  { %v4233_v53 = vpop.eup %4232 }
0x224d   :  { %2317 = vrot.lane.b32.xlu1 %v4233_v53, %s4311_s3 }
0x224e   :  { %v4235_v33 = vpop.eup %4234 }
0x224f   :  { %v2311_v25 = vadd.f32 1.0, %v4235_v33 }
0x2251   :  { %4236 = vrcp.f32 %v2311_v25 }
0x225b   :  { %v4237_v31 = vpop.eup %4236 }
0x225c   :  { %v2315_v45 = vmul.f32 %v4237_v31, %v2204_v7 }
0x22bf   :  { %v2318_v35 = vpop.permute.xlu1 %2317 }
0x22c0   :  { %v2320_v40 = vmul.f32 %v4237_v31, %v2318_v35 }
0x22c2   :  { %2322 = vrot.lane.b32.xlu0 %v2320_v40, %s4312_s16 }
0x2334   :  { %v2323_v34 = vpop.permute.xlu0 %2322 }
0x2335   :  { %v2325_v38 = vadd.f32 %v2323_v34, %v2315_v45 }
0x2337   :  { %4238 = vtanh.f32 %v2325_v38 }
0x2341   :  { %v4239_v48 = vpop.eup %4238 }
0x2342   :  { %2328 = vrot.lane.b32.xlu1 %v4239_v48, %s4311_s3 }
0x23b4   :  { %v2329_v43 = vpop.permute.xlu1 %2328 }
0x23b5   :  { %v5015_v51 = vmul.f32 %v4237_v31, %v2329_v43 }
0x23b7   :  { %v2345_v54 = vmul.f32 %v5015_v51, %v4569_v47  ;;  %v2344_v37 = vmul.f32 %v4552_v44, %v5015_v51 }
0x23b9   :  { %2351 = vrot.lane.b32.xlu1 %v2345_v54, %s4311_s3  ;;  %2347 = vrot.lane.b32.xlu0 %v2344_v37, %s4312_s16 }
0x242b   :  { %v2352_v52 = vpop.permute.xlu1 %2351  ;;  %v2348_v55 = vpop.permute.xlu0 %2347 }
0x242c   :  { %v2354_v58 = vsel %vm386_vm3, %v2348_v55, %v2352_v52  ;;  %v2581_v55 = vld [vmem:[#allocation3 + $0x4] sm:$0x3] }
0x242d   :  { %3778 = vmatmul.mubr.msk.f32.vlgmr.msra.gmra.mrb[26].mxu0 %vm388_vm4, %v2354_v58  ;;  %v2583_v58 = vrot.slane %v2581_v55, 6 }
0x242e   :  { %4085 = vmatpush3.bf16.msra.mxu0 %v4845_v6  ;;  %3815 = vmatprep.mubr.msk.f32.mxu0 %vm4309_vm0, %v4310_v32 }
0x242f   :  { %4086 = vmatprep.subr.bf16.mxu0 %v4308_v27 }
0x2432   :  { %4088 = vmatpush3.bf16.msra.mxu0 %v4859_v1 }
0x2433   :  { %4089 = vmatprep.subr.bf16.mxu0 %v4308_v27 }
0x2436   :  { %4091 = vmatpush3.bf16.msra.mxu0 %v4872_v3 }
0x2437   :  { %4092 = vmatprep.subr.bf16.mxu0 %v4308_v27 }
0x243a   :  { %4094 = vmatpush3.bf16.msra.mxu0 %v4884_v15 }
0x243b   :  { %4107 = vmatprep.subr.bf16.mxu0 %v4308_v27 }
0x2500   :  { %v2424_v49 = vpop.f32.mrb[26].mxu0 }
0x2501   :  { %v2428_v39 = vadd.f32 %v2424_v49, %v2343_v62  ;;  %v3779_v29 = vpop.f32.mrb[27].mxu0 }
0x2503   :  { %4240 = vtanh.f32 %v2428_v39  ;;  %v3198_v61 = vmul.f32 -1.442695, %v2428_v39 }
0x2505   :  { %4242 = vpow2.f32 %v3198_v61 }
0x250d   :  { %v4241_v60 = vpop.eup %4240 }
0x250e   :  { %2438 = vrot.lane.b32.xlu0 %v4241_v60, %s4311_s3 }
0x250f   :  { %v4243_v50 = vpop.eup %4242 }
0x2510   :  { %v2432_v63 = vadd.f32 1.0, %v4243_v50 }
0x2512   :  { %4244 = vrcp.f32 %v2432_v63 }
0x251c   :  { %v4245_v56 = vpop.eup %4244 }
0x251d   :  { %v2436_v24 = vmul.f32 %v4245_v56, %v2325_v38 }
0x2580   :  { %v2439_v42 = vpop.permute.xlu0 %2438 }
0x2581   :  { %v2441_v36 = vmul.f32 %v4245_v56, %v2439_v42 }
0x2583   :  { %2443 = vrot.lane.b32.xlu1 %v2441_v36, %s4312_s16 }
0x25f5   :  { %v2444_v26 = vpop.permute.xlu1 %2443 }
0x25f6   :  { %v2446_v28 = vadd.f32 %v2444_v26, %v2436_v24 }
0x25f8   :  { %4246 = vtanh.f32 %v2446_v28 }
0x2602   :  { %v4247_v4 = vpop.eup %4246 }
0x2603   :  { %2449 = vrot.lane.b32.xlu0 %v4247_v4, %s4311_s3 }
0x2675   :  { %v2450_v5 = vpop.permute.xlu0 %2449 }
0x2676   :  { %v5039_v12 = vmul.f32 %v4245_v56, %v2450_v5 }
0x2678   :  { %v2466_v7 = vmul.f32 %v5039_v12, %v4569_v47  ;;  %v2465_v0 = vmul.f32 %v4552_v44, %v5039_v12 }
0x267a   :  { %2472 = vrot.lane.b32.xlu0 %v2466_v7, %s4311_s3  ;;  %2468 = vrot.lane.b32.xlu1 %v2465_v0, %s4312_s16  ;;  %v2702_v7 = vld [vmem:[#allocation3 + $0x2] sm:$0x3] }
0x267b   :  { %v2704_v0 = vrot.slane %v2702_v7, 6 }
0x26ec   :  { %v2473_v2 = vpop.permute.xlu0 %2472  ;;  %v2469_v14 = vpop.permute.xlu1 %2468 }
0x26ed   :  { %v2475_v8 = vsel %vm386_vm3, %v2469_v14, %v2473_v2  ;;  %v2701_v2 = vld [vmem:[#allocation2 + $0xe] sm:$0x3] }
0x26ee   :  { %3797 = vmatmul.mubr.msk.f32.vlgmr.msra.gmra.mrb[36].mxu1 %vm388_vm4, %v2475_v8  ;;  %v2706_v14 = vsel %vm382_vm5, %v2701_v2, %v2704_v0 }
0x26ef   :  { %4097 = vmatpush3.bf16.msra.mxu1 %v4845_v6  ;;  %3834 = vmatprep.mubr.msk.f32.mxu1 %vm4309_vm0, %v4310_v32 }
0x26f0   :  { %4098 = vmatprep.subr.bf16.mxu1 %v4308_v27 }
0x26f3   :  { %4100 = vmatpush3.bf16.msra.mxu1 %v4859_v1 }
0x26f4   :  { %4101 = vmatprep.subr.bf16.mxu1 %v4308_v27 }
0x26f7   :  { %4103 = vmatpush3.bf16.msra.mxu1 %v4872_v3 }
0x26f8   :  { %4104 = vmatprep.subr.bf16.mxu1 %v4308_v27 }
0x26fb   :  { %4106 = vmatpush3.bf16.msra.mxu1 %v4884_v15 }
0x26fc   :  { %4119 = vmatprep.subr.bf16.mxu1 %v4308_v27 }
0x27c1   :  { %v2545_v18 = vpop.f32.mrb[36].mxu1 }
0x27c2   :  { %v2549_v19 = vadd.f32 %v2545_v18, %v2464_v17  ;;  %v3798_v20 = vpop.f32.mrb[37].mxu1 }
0x27c4   :  { %4248 = vtanh.f32 %v2549_v19  ;;  %v3200_v22 = vmul.f32 -1.442695, %v2549_v19 }
0x27c6   :  { %4250 = vpow2.f32 %v3200_v22 }
0x27ce   :  { %v4249_v21 = vpop.eup %4248 }
0x27cf   :  { %2559 = vrot.lane.b32.xlu1 %v4249_v21, %s4311_s3 }
0x27d0   :  { %v4251_v23 = vpop.eup %4250 }
0x27d1   :  { %v2553_v53 = vadd.f32 1.0, %v4251_v23 }
0x27d3   :  { %4252 = vrcp.f32 %v2553_v53 }
0x27dd   :  { %v4253_v30 = vpop.eup %4252 }
0x27de   :  { %v2557_v31 = vmul.f32 %v4253_v30, %v2446_v28 }
0x2841   :  { %v2560_v33 = vpop.permute.xlu1 %2559 }
0x2842   :  { %v2562_v25 = vmul.f32 %v4253_v30, %v2560_v33 }
0x2844   :  { %2564 = vrot.lane.b32.xlu0 %v2562_v25, %s4312_s16 }
0x28b6   :  { %v2565_v35 = vpop.permute.xlu0 %2564 }
0x28b7   :  { %v2567_v40 = vadd.f32 %v2565_v35, %v2557_v31 }
0x28b9   :  { %4254 = vtanh.f32 %v2567_v40 }
0x28c3   :  { %v4255_v45 = vpop.eup %4254 }
0x28c4   :  { %2570 = vrot.lane.b32.xlu1 %v4255_v45, %s4311_s3 }
0x2936   :  { %v2571_v34 = vpop.permute.xlu1 %2570 }
0x2937   :  { %v5063_v38 = vmul.f32 %v4253_v30, %v2571_v34 }
0x2939   :  { %v2587_v48 = vmul.f32 %v5063_v38, %v4569_v47  ;;  %v2586_v43 = vmul.f32 %v4552_v44, %v5063_v38 }
0x293b   :  { %2593 = vrot.lane.b32.xlu1 %v2587_v48, %s4311_s3  ;;  %2589 = vrot.lane.b32.xlu0 %v2586_v43, %s4312_s16  ;;  %v2823_v43 = vld [vmem:[#allocation3] sm:$0x3] }
0x29ad   :  { %v2594_v54 = vpop.permute.xlu1 %2593  ;;  %v2590_v37 = vpop.permute.xlu0 %2589 }
0x29ae   :  { %v2596_v52 = vsel %vm386_vm3, %v2590_v37, %v2594_v54  ;;  %v2825_v54 = vrot.slane %v2823_v43, 6  ;;  %v2822_v37 = vld [vmem:[#allocation2 + $0x10] sm:$0x3] }
0x29af   :  { %3816 = vmatmul.mubr.msk.f32.vlgmr.msra.gmra.mrb[28].mxu0 %vm388_vm4, %v2596_v52 }
0x29b0   :  { %4109 = vmatpush3.bf16.msra.mxu0 %v4845_v6  ;;  %3853 = vmatprep.mubr.msk.f32.mxu0 %vm4309_vm0, %v4310_v32  ;;  %v2585_v6 = vsel %vm382_vm5, %v2580_v41, %v2583_v58  ;;  %v2827_v52 = vsel %vm382_vm5, %v2822_v37, %v2825_v54 }
0x29b1   :  { %4110 = vmatprep.subr.bf16.mxu0 %v4308_v27 }
0x29b4   :  { %4112 = vmatpush3.bf16.msra.mxu0 %v4859_v1 }
0x29b5   :  { %4113 = vmatprep.subr.bf16.mxu0 %v4308_v27 }
0x29b8   :  { %4115 = vmatpush3.bf16.msra.mxu0 %v4872_v3 }
0x29b9   :  { %4116 = vmatprep.subr.bf16.mxu0 %v4308_v27 }
0x29bc   :  { %4118 = vmatpush3.bf16.msra.mxu0 %v4884_v15 }
0x2a82   :  { %v2666_v59 = vpop.f32.mrb[28].mxu0 }
0x2a83   :  { %v2670_v46 = vadd.f32 %v2666_v59, %v2585_v6  ;;  %v3817_v62 = vpop.f32.mrb[29].mxu0 }
0x2a85   :  { %4256 = vtanh.f32 %v2670_v46  ;;  %v3202_v1 = vmul.f32 -1.442695, %v2670_v46 }
0x2a87   :  { %4258 = vpow2.f32 %v3202_v1 }
0x2a8f   :  { %v4257_v49 = vpop.eup %4256 }
0x2a90   :  { %2680 = vrot.lane.b32.xlu0 %v4257_v49, %s4311_s3 }
0x2a91   :  { %v4259_v39 = vpop.eup %4258 }
0x2a92   :  { %v2674_v3 = vadd.f32 1.0, %v4259_v39 }
0x2a94   :  { %4260 = vrcp.f32 %v2674_v3 }
0x2a9e   :  { %v4261_v29 = vpop.eup %4260 }
0x2a9f   :  { %v2678_v61 = vmul.f32 %v4261_v29, %v2567_v40 }
0x2b02   :  { %v2681_v60 = vpop.permute.xlu0 %2680 }
0x2b03   :  { %v2683_v15 = vmul.f32 %v4261_v29, %v2681_v60 }
0x2b05   :  { %2685 = vrot.lane.b32.xlu1 %v2683_v15, %s4312_s16  ;;  %v2952_v15 = vld [vmem:[%s5208_s7] sm:$0xff] }
0x2b77   :  { %v2686_v50 = vpop.permute.xlu1 %2685 }
0x2b78   :  { %v2688_v63 = vadd.f32 %v2686_v50, %v2678_v61  ;;  %v2953_v61 = vld [vmem:[%s5208_s7 + $0x8] sm:$0xff] }
0x2b79   :  { %v4120_v50 = vpack.c.bf16 %v2953_v61, %v2952_v15 }
0x2b7a   :  { %4262 = vtanh.f32 %v2688_v63 }
0x2b84   :  { %v4263_v56 = vpop.eup %4262 }
0x2b85   :  { %2691 = vrot.lane.b32.xlu0 %v4263_v56, %s4311_s3 }
0x2bf7   :  { %v2692_v42 = vpop.permute.xlu0 %2691 }
0x2bf8   :  { %v5086_v36 = vmul.f32 %v4261_v29, %v2692_v42 }
0x2bfa   :  { %v2708_v24 = vmul.f32 %v5086_v36, %v4569_v47  ;;  %v2707_v26 = vmul.f32 %v4552_v44, %v5086_v36 }
0x2bfc   :  { %2714 = vrot.lane.b32.xlu0 %v2708_v24, %s4311_s3  ;;  %2710 = vrot.lane.b32.xlu1 %v2707_v26, %s4312_s16  ;;  %v3058_v26 = vld [vmem:[%s5211_s10] sm:$0xff] }
0x2c6e   :  { %v2715_v28 = vpop.permute.xlu0 %2714  ;;  %v2711_v4 = vpop.permute.xlu1 %2710 }
0x2c6f   :  { %v2717_v5 = vsel %vm386_vm3, %v2711_v4, %v2715_v28  ;;  %v3059_v28 = vld [vmem:[%s5211_s10 + $0x8] sm:$0xff]  ;;  %v3060_v4 = vld [vmem:[%s5211_s10 + $0x10] sm:$0x3] }
0x2c70   :  { %3835 = vmatmul.mubr.msk.f32.vlgmr.msra.gmra.mrb[38].mxu1 %vm388_vm4, %v2717_v5 }
0x2c71   :  { %3864 = vmatprep.mubr.msk.f32.mxu1 %vm4309_vm0, %v4310_v32  ;;  %4121 = vmatpush3.bf16.msra.mxu1 %v4120_v50 }
0x2c72   :  { %4122 = vmatprep.subr.bf16.mxu1 %v4308_v27  ;;  %v4313_v27 = vmov 0  }
0x2c73   :  { %4206 = vset.pattern.permute.xlu0 %v4313_v27  ;;  %4207 = vset.pattern.permute.xlu1 %v4313_v27 }
0x2d43   :  { %v2787_v8 = vpop.f32.mrb[38].mxu1 }
0x2d44   :  { %v2791_v9 = vadd.f32 %v2787_v8, %v2706_v14  ;;  %v3836_v16 = vpop.f32.mrb[39].mxu1 }
0x2d46   :  { %4264 = vtanh.f32 %v2791_v9  ;;  %v3204_v17 = vmul.f32 -1.442695, %v2791_v9 }
0x2d48   :  { %4266 = vpow2.f32 %v3204_v17 }
0x2d50   :  { %v4265_v10 = vpop.eup %4264 }
0x2d51   :  { %2801 = vrot.lane.b32.xlu1 %v4265_v10, %s4311_s3 }
0x2d52   :  { %v4267_v18 = vpop.eup %4266 }
0x2d53   :  { %v2795_v19 = vadd.f32 1.0, %v4267_v18 }
0x2d55   :  { %4268 = vrcp.f32 %v2795_v19  ;;  %v3207_v19 = vld [vmem:[%s5209_s8] ss:$0 sm:$0xff] }
0x2d5f   :  { %v4269_v20 = vpop.eup %4268 }
0x2d60   :  { %v2799_v23 = vmul.f32 %v4269_v20, %v2688_v63 }
0x2dc3   :  { %v2802_v21 = vpop.permute.xlu1 %2801 }
0x2dc4   :  { %v2804_v22 = vmul.f32 %v4269_v20, %v2802_v21  ;;  %v3052_v21 = vld [vmem:[%s5210_s9] sm:$0xff] }
0x2dc6   :  { %2806 = vrot.lane.b32.xlu0 %v2804_v22, %s4312_s16 }
0x2e38   :  { %v2807_v53 = vpop.permute.xlu0 %2806 }
0x2e39   :  { %v2809_v30 = vadd.f32 %v2807_v53, %v2799_v23 }
0x2e3b   :  { %4270 = vtanh.f32 %v2809_v30 }
0x2e45   :  { %v4271_v33 = vpop.eup %4270 }
0x2e46   :  { %2812 = vrot.lane.b32.xlu1 %v4271_v33, %s4311_s3 }
0x2eb8   :  { %v2813_v25 = vpop.permute.xlu1 %2812 }
0x2eb9   :  { %v2815_v31 = vmul.f32 %v4269_v20, %v2813_v25 }
0x2ebb   :  { %v2829_v35 = vmul.f32 %v2815_v31, %v4569_v47  ;;  %v2828_v40 = vmul.f32 %v4552_v44, %v2815_v31 }
0x2ebd   :  { %2835 = vrot.lane.b32.xlu1 %v2829_v35, %s4311_s3  ;;  %2831 = vrot.lane.b32.xlu0 %v2828_v40, %s4312_s16 }
0x2f2f   :  { %v2836_v45 = vpop.permute.xlu1 %2835  ;;  %v2832_v34 = vpop.permute.xlu0 %2831 }
0x2f30   :  { %v2838_v48 = vsel %vm386_vm3, %v2832_v34, %v2836_v45 }
0x2f31   :  { %3854 = vmatmul.mubr.msk.f32.vlgmr.msra.gmra.mrb[30].mxu0 %vm388_vm4, %v2838_v48  ;;  %v3054_v48 = vld [vmem:[%s5210_s9 + $0x10] sm:$0x3] }
0x3004   :  { %v2908_v55 = vpop.f32.mrb[30].mxu0 }
0x3005   :  { %v2912_v58 = vadd.f32 %v2908_v55, %v2827_v52  ;;  %v3855_v47 = vpop.f32.mrb[31].mxu0 }
0x3007   :  { %4272 = vtanh.f32 %v2912_v58  ;;  %v3206_v41 = vmul.f32 -1.442695, %v2912_v58 }
0x3009   :  { %4274 = vpow2.f32 %v3206_v41 }
0x3011   :  { %v4273_v44 = vpop.eup %4272 }
0x3012   :  { %2922 = vrot.lane.b32.xlu0 %v4273_v44, %s4311_s3 }
0x3013   :  { %v4275_v6 = vpop.eup %4274 }
0x3014   :  { %v2916_v59 = vadd.f32 1.0, %v4275_v6 }
0x3016   :  { %4276 = vrcp.f32 %v2916_v59 }
0x3020   :  { %v4277_v46 = vpop.eup %4276 }
0x3021   :  { %v2920_v1 = vmul.f32 %v4277_v46, %v2809_v30 }
0x3084   :  { %v2923_v62 = vpop.permute.xlu0 %2922 }
0x3085   :  { %v2925_v49 = vmul.f32 %v4277_v46, %v2923_v62 }
0x3087   :  { %2927 = vrot.lane.b32.xlu1 %v2925_v49, %s4312_s16 }
0x308b   :  { %1970 = vrot.lane.b32.xlu1 %v4943_v11, %s4312_s16 }
0x308f   :  { %2212 = vrot.lane.b32.xlu1 %v4991_v13, %s4312_s16 }
0x3093   :  { %2575 = vrot.lane.b32.xlu1 %v5063_v38, %s4312_s16 }
0x3097   :  { %2817 = vrot.lane.b32.xlu1 %v2815_v31, %s4312_s16 }
0x309b   :  { %2454 = vrot.lane.b32.xlu1 %v5039_v12, %s4312_s16 }
0x309f   :  { %3068 = vperm.xlu1 %4207, %v3059_v28  }
0x30a3   :  { %3073 = vperm.xlu1 %4207, %v3060_v4  }
0x30f9   :  { %v2928_v39 = vpop.permute.xlu1 %2927 }
0x30fa   :  { %v2930_v3 = vadd.f32 %v2928_v39, %v2920_v1 }
0x30fc   :  { %4278 = vtanh.f32 %v2930_v3 }
0x30fd   :  { %v1971_v29 = vpop.permute.xlu1 %1970 }
0x30fe   :  { %1973 = vst.msk [vmem:[#allocation4] sm:$0x3] %vm491_vm6, %v1971_v29 }
0x30ff   :  { %1974 = vst.msk [vmem:[#allocation5 + $0xe] sm:$0xc] %vm493_vm7, %v1971_v29 }
0x3101   :  { %v2213_v11 = vpop.permute.xlu1 %2212 }
0x3102   :  { %2215 = vst.msk [vmem:[#allocation4 + $0x4] sm:$0x3] %vm491_vm6, %v2213_v11 }
0x3103   :  { %2216 = vst.msk [vmem:[#allocation5 + $0xa] sm:$0xc] %vm493_vm7, %v2213_v11 }
0x3105   :  { %v2576_v13 = vpop.permute.xlu1 %2575 }
0x3106   :  { %v4279_v38 = vpop.eup %4278  ;;  %2578 = vst.msk [vmem:[#allocation4 + $0xa] sm:$0x3] %vm491_vm6, %v2576_v13  ;;  %v2948_v17 = vld [vmem:[#allocation5 + $0x10] sm:$0x3] }
0x3107   :  { %2579 = vst.msk [vmem:[#allocation5 + $0x4] sm:$0xc] %vm493_vm7, %v2576_v13  ;;  %2933 = vrot.lane.b32.xlu0 %v4279_v38, %s4311_s3 }
0x3109   :  { %v2818_v12 = vpop.permute.xlu1 %2817 }
0x310a   :  { %2820 = vst.msk [vmem:[#allocation4 + $0xe] sm:$0x3] %vm491_vm6, %v2818_v12 }
0x310b   :  { %2821 = vst.msk [vmem:[#allocation5] sm:$0xc] %vm493_vm7, %v2818_v12  ;;  %2091 = vrot.lane.b32.xlu0 %v4967_v57, %s4312_s16  ;;  %v2954_v57 = vld [vmem:[%s5208_s7 + $0x10] sm:$0xff] }
0x310d   :  { %v2455_v60 = vpop.permute.xlu1 %2454 }
0x310e   :  { %2457 = vst.msk [vmem:[#allocation4 + $0x8] sm:$0x3] %vm491_vm6, %v2455_v60 }
0x310f   :  { %2458 = vst.msk [vmem:[#allocation5 + $0x6] sm:$0xc] %vm493_vm7, %v2455_v60  ;;  %2333 = vrot.lane.b32.xlu0 %v5015_v51, %s4312_s16  ;;  %v2955_v51 = vld [vmem:[%s5208_s7 + $0x18] sm:$0xff] }
0x3110   :  { %v4123_v63 = vpack.c.bf16 %v2955_v51, %v2954_v57 }
0x3112   :  { %4124 = vmatpush3.bf16.msra.mxu1 %v4123_v63 }
0x3113   :  { %2696 = vrot.lane.b32.xlu0 %v5086_v36, %s4312_s16 }
0x311e   :  { %v3069_v40 = vpop.permute.xlu1 %3068 }
0x3122   :  { %v3074_v47 = vpop.permute.xlu1 %3073 }
0x3179   :  { %v2934_v56 = vpop.permute.xlu0 %2933 }
0x317a   :  { %v2936_v42 = vmul.f32 %v4277_v46, %v2934_v56 }
0x317c   :  { %2938 = vrot.lane.b32.xlu0 %v2936_v42, %s4312_s16 }
0x317d   :  { %v2092_v36 = vpop.permute.xlu0 %2091 }
0x317e   :  { %2094 = vst.msk [vmem:[#allocation4 + $0x2] sm:$0x3] %vm491_vm6, %v2092_v36 }
0x317f   :  { %2095 = vst.msk [vmem:[#allocation5 + $0xc] sm:$0xc] %vm493_vm7, %v2092_v36 }
0x3180   :  { %3063 = vperm.xlu0 %4206, %v3058_v26  }
0x3181   :  { %v2334_v24 = vpop.permute.xlu0 %2333 }
0x3182   :  { %2336 = vst.msk [vmem:[#allocation4 + $0x6] sm:$0x3] %vm491_vm6, %v2334_v24 }
0x3183   :  { %2337 = vst.msk [vmem:[#allocation5 + $0x8] sm:$0xc] %vm493_vm7, %v2334_v24 }
0x3185   :  { %v2697_v5 = vpop.permute.xlu0 %2696 }
0x3186   :  { %2699 = vst.msk [vmem:[#allocation4 + $0xc] sm:$0x3] %vm491_vm6, %v2697_v5 }
0x3187   :  { %2700 = vst.msk [vmem:[#allocation5 + $0x2] sm:$0xc] %vm493_vm7, %v2697_v5 }
0x3189   :  { %v2943_v0 = vld [vmem:[#allocation4] sm:$0xff] }
0x318a   :  { %v2947_v9 = vld [vmem:[#allocation5 + $0x8] sm:$0xff] }
0x318d   :  { %v2944_v8 = vld [vmem:[#allocation4 + $0x8] sm:$0xff] }
0x318e   :  { %v2950_v16 = vadd.f32 %v2947_v9, %v2944_v8 }
0x31ee   :  { %v2939_v7 = vpop.permute.xlu0 %2938 }
0x31ef   :  { %2941 = vst.msk [vmem:[#allocation4 + $0x10] sm:$0x3] %vm491_vm6, %v2939_v7 }
0x31f0   :  { %2942 = vst.msk [vmem:[#allocation5 - $0x2] sm:$0xc] %vm493_vm7, %v2939_v7 }
0x31f6   :  { %v2945_v10 = vld [vmem:[#allocation4 + $0x10] sm:$0x3] }
0x31f7   :  { %v2946_v2 = vld [vmem:[#allocation5] sm:$0xff]  ;;  %v2951_v18 = vadd.f32 %v2948_v17, %v2945_v10 }
0x31f8   :  { %v2949_v14 = vadd.f32 %v2946_v2, %v2943_v0 }
0x31fa   :  { %3865 = vmatmul.mubr.msk.f32.vlgmr.msra.gmra.mrb[40].mxu1 %vm386_vm3, %v2949_v14 }
0x31fb   :  { %3867 = vmatprep.mubr.msk.f32.mxu1 %vm4309_vm0, %v4310_v32 }
0x31fe   :  { %3868 = vmatmul.mubr.msk.f32.gmra.mrb[42].mxu1 %vm386_vm3, %v2950_v16 }
0x31ff   :  { %3870 = vmatprep.mubr.msk.f32.mxu1 %vm4309_vm0, %v4310_v32  ;;  %v3064_v53 = vpop.permute.xlu0 %3063  ;;  %v3053_v32 = vld [vmem:[%s5210_s9 + $0x8] sm:$0xff]  ;;  %s4314_s9 = smov [#allocation9]  }
0x3200   :  { %s3107_s15 = sshll.u32 %s4314_s9, 4  ;;  %s3108_s15 = int_to_ptr.vmem [resolvable:$true] %s3107_s15 }
0x3201   :  { %s4280_s17 = scalar_lea.vmem %s3108_s15, 16  ;;  %s4284_s1 = scalar_lea.vmem %s3108_s15, 32 }
0x3202   :  { %3871 = vmatmul.mubr.msk.f32.gmra.mrb[44].mxu1 %vm386_vm3, %v2951_v18  ;;  %p4281_p0 = scmp.ne.s32.totalorder %s3108_s15, %s4280_s17  ;;  %p4285_p1 = scmp.lt.s32.totalorder %s3108_s15, %s3108_s15 }
0x3203   :  { %p4286_p2 = scmp.lt.s32.totalorder %s4284_s1, %s4280_s17 }
0x3205   :  { %p4287_p3 = por %p4286_p2, %p4285_p1 }
0x3207   :  { %p4288_p4 = pnand %p4287_p3, %p4281_p0 }
0x32cd   :  { %v3038_v20 = vpop.f32.mrb[40].mxu1 }
0x32ce   :  { %v3039_v22 = vadd.f32 %v3207_v19, %v3038_v20  ;;  %v3866_v23 = vpop.f32.mrb[41].mxu1 }
0x32d0   :  { %v3055_v30 = vsub.f32 %v3039_v22, %v3052_v21 }
0x32d1   :  { %v3043_v33 = vpop.f32.mrb[42].mxu1 }
0x32d2   :  { %v3076_v25 = vmul.f32 %v3064_v53, %v3055_v30  ;;  %v3044_v31 = vadd.f32 %v3207_v19, %v3043_v33  ;;  %v3869_v35 = vpop.f32.mrb[43].mxu1 }
0x32d4   :  { %v3056_v45 = vsub.f32 %v3044_v31, %v3053_v32  ;;  %v3079_v43 = vmul.f32 %v3076_v25, %v3076_v25 }
0x32d5   :  { %v3048_v34 = vpop.f32.mrb[44].mxu1 }
0x32d6   :  { %v3077_v54 = vmul.f32 %v3069_v40, %v3056_v45  ;;  %v3049_v37 = vadd.f32 %v3207_v19, %v3048_v34  ;;  %v3872_v52 = vpop.f32.mrb[45].mxu1  ;;  %v3082_v44 = vsel %vm182_vm1, %v3079_v43, 0.0 }
0x32d8   :  { %v3080_v55 = vmul.f32 %v3077_v54, %v3077_v54  ;;  %v3057_v58 = vsub.f32 %v3049_v37, %v3054_v48 }
0x32da   :  { %v3083_v41 = vsel %vm182_vm1, %v3080_v55, 0.0  ;;  %v3078_v6 = vmul.f32 %v3074_v47, %v3057_v58 }
0x32db   :  { %v3084_v59 = vadd.f32 %v3083_v41, %v3082_v44 }
0x32dc   :  { %v3081_v46 = vmul.f32 %v3078_v6, %v3078_v6 }
0x32de   :  { %v3086_v62 = vsel %vm3085_vm8, %v3081_v46, 0.0 }
0x32df   :  { %v3087_v49 = vadd.f32 %v3086_v62, %v3084_v59 }
0x32e1   :  { %3088 = vadd.xlane.f32.xlu0 %v3087_v49 }
0x336e   :  { %v3089_v1 = vpop.xlane.xlu0 %3088 }
0x336f   :  { %v3090_v39 = vrot.slane %v3089_v1, 4 }
0x3371   :  { %v3091_v3 = vadd.f32 %v3090_v39, %v3089_v1 }
0x3373   :  { %v3092_v29 = vrot.slane %v3091_v3, 2 }
0x3375   :  { %v3093_v11 = vadd.f32 %v3092_v29, %v3091_v3 }
0x3377   :  { %v3094_v13 = vrot.slane %v3093_v11, 1 }
0x3379   :  { %v3095_v38 = vadd.f32 %v3094_v13, %v3093_v11 }
0x337b   :  { %4125 = vpush %v3095_v38 }
0x33ac   :  { %s4126_s3 = spop %4125 }
0x33ad   :  { %s3097_s16 = smul.f32 0.0034722222, %s4126_s3 }
0x33af   :  { %v3098_v12 = vstv %s3097_s16 }
0x33b0   :  { %3100 = vst.msk [vmem:[#allocation9] sm:$0x1] %vm3099_vm9, %v3098_v12 }
0x33b1   :  { %4291 = shalt.err (!%p4288_p4)
}
0x33b2   :  { %s4292_s6 = scalar_lea.hbm %s5212_s11, 16 }
0x33b3   :  { %p4293_p5 = scmp.ne.s32.totalorder %s5212_s11, %s4292_s6  ;;  %p4296_p6 = scmp.lt.u32.totalorder %s4292_s6, %s5212_s11 }
0x33b5   :  { %p4298_p7 = pnand %p4296_p6, %p4293_p5 }
0x33b7   :  { %4301 = shalt.err (!%p4298_p7)
}
0x33b8   :  { %3110 = dma.vmem_to_hbm [thread:$0]  %s3108_s15, 16, %s5212_s11, [#allocation10]  }
0x33b9   :  { %4306 = dma.done.wait [#allocation10], 16  }
0x33ba   :  { %4307 = vsyncadd [#allocation10], 4294967280 }
0x33bb   :  { %3114 = vsyncpa [#allocation10], 1 }
0x33bc   :  { %3115 = vsyncmov [#allocation8] }
0x33bf   :  { %s3116_s25 = vpop.sfrf %3115 }
0x33c0   :  { %p3211_p8 = scmp.ne.s32.totalorder %s3116_s25, 0 }
0x33c2   :  { %3120 = shalt.err (%p3211_p8)  }
0x33c3   :  { %3122 = vsyncmov [#allocation8 + $0x1] }
0x33c6   :  { %s3123_s26 = vpop.sfrf %3122 }
0x33c7   :  { %p3212_p9 = scmp.ne.s32.totalorder %s3123_s26, 0 }
0x33c9   :  { %3127 = shalt.err (%p3212_p9)  }

</bundles_post_ra>
